<compile_context>
chip_gen: v5e
topology: v5e:2x2
jax: 0.10.0
libtpu: 0.0.40
codegen_flags: <defaults>
</compile_context>

<pallas_src>
import jax
import jax.numpy as jnp
from jax.experimental import pallas as pl
from jax.experimental.pallas import tpu as pltpu


D_IN, D_HID, D_OUT = 768, 32, 2

# f32 inputs on the MXU default to reduced-precision multi-pass accumulation;
# the MXU has huge slack in this bandwidth-bound kernel, so full-f32 passes are
# free and keep parity with the fp32 PyTorch reference.
_PRECISION = jax.lax.Precision.HIGHEST


def _round_up(n, m):
    return (n + m - 1) // m * m


def _mlp_kernel(x_ref, w1_ref, b1_ref, w2t_ref, b2t_ref, ot_ref):
    """One batch tile of the MLP.

    x:(TB,768)  w1:(768,32)  b1:(1,32)  w2t:(2,32)  b2t:(2,1)  ot:(2,TB)

    The output is stored transposed (features on sublanes, batch on lanes) so
    the HBM writeback is a lane-dense full-width store rather than a masked
    2-lane partial store per grid step.  On a partial tail tile the rows past B
    hold unspecified VMEM data; their results land in output columns that
    Pallas masks off at writeback, so they never reach HBM.
    """
    x = x_ref[...]
    h = jnp.tanh(
        jnp.dot(x, w1_ref[...], precision=_PRECISION,
                preferred_element_type=jnp.float32)
        + b1_ref[...]
    )
    # y^T[d, b] = sum_n w2t[d, n] * h[b, n] — explicit contraction on the last
    # axes of both operands (no transpose/retile of the (TB, 32) h).
    y_t = jax.lax.dot_general(
        w2t_ref[...], h,
        dimension_numbers=(((1,), (1,)), ((), ())),
        precision=_PRECISION,
        preferred_element_type=jnp.float32,
    ) + b2t_ref[...]
    ot_ref[...] = y_t.astype(ot_ref.dtype)


def _spec(block_shape, index_map, n_buffers=None):
    """BlockSpec with an optional buffer-count hint (skipped if unsupported)."""
    if n_buffers is not None and hasattr(pl, "Buffered"):
        try:
            return pl.BlockSpec(block_shape, index_map,
                                pipeline_mode=pl.Buffered(n_buffers))
        except TypeError:  # older jax without pipeline_mode / Buffered kwarg
            pass
    return pl.BlockSpec(block_shape, index_map)


def coherence_forward(x, w1, b1, w2, b2, *, tile_b=None, use_pallas=None):
    """Forward pass of CoherencePredictionModel.

    x : (B, 768) float32
    w1: (768, 32), b1: (32,) or (1, 32)
    w2: (32, 2),   b2: (2,)  or (1, 2)
    returns (B, 2) float32
    """
    B, d_in = x.shape
    d_hid = w1.shape[1]
    d_out = w2.shape[1]
    b1 = b1.reshape(1, d_hid)
    b2 = b2.reshape(1, d_out)

    if use_pallas is None:
        # Below this the pallas_call launch / per-step overhead dominates and
        # plain XLA is at least as fast.
        use_pallas = B >= 256
    if not use_pallas:
        return jnp.tanh(x @ w1 + b1) @ w2 + b2

    # ---- batch tiling ------------------------------------------------------
    # 128-row multiples keep the (tile_b, 768) x block and the (2, tile_b)
    # transposed output block (8,128)-aligned.  Target >= 4 grid steps so the
    # batch axis can shard across both v7x TensorCores and the DMA pipeline has
    # something to overlap; cap at 2048 rows (6 MiB per buffer).
    if tile_b is None:
        tile_b = max(128, min(2048, _round_up(pl.cdiv(B, 4), 128)))
    tile_b = max(128, _round_up(tile_b, 128))

    # Batches smaller than one tile: pad x up to a single full tile (one grid
    # step, negligible extra traffic).  Larger ragged batches run a
    # non-divisible grid with a masked tail block and NO extra pass over x.
    b_alloc = B
    if B < tile_b:
        b_alloc = tile_b
        x = jnp.pad(x, ((0, tile_b - B), (0, 0)))
    grid_steps = pl.cdiv(b_alloc, tile_b)

    w2_t = w2.T                    # (2, 32)
    b2_t = b2.reshape(d_out, 1)    # (2, 1)

    cost = pl.CostEstimate(
        flops=2 * B * (d_in * d_hid + d_hid * d_out),
        transcendentals=B * d_hid,
        bytes_accessed=4 * (B * d_in + B * d_out
                            + d_in * d_hid + d_hid + d_hid * d_out + d_out),
    )

    out_t = pl.pallas_call(
        _mlp_kernel,
        out_shape=jax.ShapeDtypeStruct((d_out, b_alloc), x.dtype),
        grid_spec=pltpu.PrefetchScalarGridSpec(
            num_scalar_prefetch=0,
            grid=(grid_steps,),
            in_specs=[
                # x: streamed; triple-buffer when there are enough steps to
                # hide DMA jitter (~1 us per 2048-row tile on v7x HBM).
                _spec((tile_b, d_in), lambda i: (i, 0),
                      n_buffers=3 if grid_steps >= 3 else None),
                # Invariant operands: fetched once, single buffer.
                _spec((d_in, d_hid), lambda i: (0, 0), n_buffers=1),   # w1
                _spec((1, d_hid), lambda i: (0, 0), n_buffers=1),      # b1
                _spec((d_out, d_hid), lambda i: (0, 0), n_buffers=1),  # w2^T
                _spec((d_out, 1), lambda i: (0, 0), n_buffers=1),      # b2^T
            ],
            out_specs=pl.BlockSpec((d_out, tile_b), lambda i: (0, i)),
        ),
        compiler_params=pltpu.CompilerParams(
            # Batch axis is embarrassingly parallel -> sharded across both
            # TensorCores on v7x (no-op on single-TC v5e/v6e).
            dimension_semantics=("parallel",),
            # <= 3 x 6 MiB x-buffers + ~1 MiB of weights: 32 MiB is ample and
            # stays well under v7x's 64 MiB physical VMEM.
            vmem_limit_bytes=32 * 1024 * 1024,
        ),
        cost_estimate=cost,
    )(x, w1, b1, w2_t, b2_t)

    # TODO(synk): optionally stream x as bfloat16 (f32 accumulation kept via
    # preferred_element_type) for ~2x less HBM traffic if quantization is OK.

    # Slice valid columns first (don't transpose dead padded columns), then
    # transpose back to (B, 2).
    return out_t[:, :B].T


if __name__ == "__main__":
    key = jax.random.PRNGKey(0)
    k_x, k_w1, k_b1, k_w2, k_b2 = jax.random.split(key, 5)

    # Deterministic synthetic parameters (shapes match torch.nn.Linear(768,32)
    # and torch.nn.Linear(32,2), stored transposed for x @ W layout).
    B = 8
    x = jax.random.normal(k_x, (B, D_IN), dtype=jnp.float32)
    w1 = jax.random.normal(k_w1, (D_IN, D_HID), dtype=jnp.float32) * 0.02
    b1 = jax.random.normal(k_b1, (D_HID,), dtype=jnp.float32) * 0.02
    w2 = jax.random.normal(k_w2, (D_HID, D_OUT), dtype=jnp.float32) * 0.02
    b2 = jax.random.normal(k_b2, (D_OUT,), dtype=jnp.float32) * 0.02

    def ref(xv):
        return jnp.tanh(xv @ w1 + b1.reshape(1, -1)) @ w2 + b2.reshape(1, -1)

    # Small-shape demo: force the Pallas path (auto-dispatch would use XLA).
    out_small = jax.block_until_ready(
        coherence_forward(x, w1, b1, w2, b2, use_pallas=True))
    assert out_small.shape == (B, D_OUT)
    assert jnp.allclose(out_small, ref(x), atol=1e-5, rtol=1e-4), "small mismatch"

    # Ragged, multi-step case: exercises the non-divisible grid (masked tail
    # block, no full-array pad) and lane-dense transposed output stores across
    # several grid steps.
    B2 = 300
    x2 = jax.random.normal(jax.random.PRNGKey(1), (B2, D_IN), dtype=jnp.float32)
    out_big = jax.block_until_ready(
        coherence_forward(x2, w1, b1, w2, b2, tile_b=128, use_pallas=True))
    assert out_big.shape == (B2, D_OUT)
    assert jnp.allclose(out_big, ref(x2), atol=1e-5, rtol=1e-4), "ragged mismatch"

    print("KERNEL_OK")
</pallas_src>

<mosaic_0001>
module attributes {stable_mosaic.version = 11 : i64} {
  func.func @_mlp_kernel(%arg0: i32, %arg1: memref<128x768xf32, #tpu.memory_space<vmem>>, %arg2: memref<768x32xf32, #tpu.memory_space<vmem>>, %arg3: memref<1x32xf32, #tpu.memory_space<vmem>>, %arg4: memref<2x32xf32, #tpu.memory_space<vmem>>, %arg5: memref<2x1xf32, #tpu.memory_space<vmem>>, %arg6: memref<2x128xf32, #tpu.memory_space<vmem>>) attributes {dimension_semantics = [#tpu.dimension_semantics<parallel>], iteration_bounds = array<i64: 1>, scalar_prefetch = 0 : i64, scratch_operands = 0 : i64, tpu.core_type = #tpu.core_type<tc>, window_params = [{transform_indices = @transform_0, window_bounds = array<i64: 128, 768>}, {pipeline_mode = #tpu.pipeline_mode<synchronous>, transform_indices = @transform_1, window_bounds = array<i64: 768, 32>}, {pipeline_mode = #tpu.pipeline_mode<synchronous>, transform_indices = @transform_2, window_bounds = array<i64: 1, 32>}, {pipeline_mode = #tpu.pipeline_mode<synchronous>, transform_indices = @transform_3, window_bounds = array<i64: 2, 32>}, {pipeline_mode = #tpu.pipeline_mode<synchronous>, transform_indices = @transform_4, window_bounds = array<i64: 2, 1>}, {transform_indices = @transform_5, window_bounds = array<i64: 2, 128>}]} {
    %c0 = arith.constant 0 : index
    %c0_0 = arith.constant 0 : index
    %0 = vector.load %arg1[%c0, %c0_0] : memref<128x768xf32, #tpu.memory_space<vmem>>, vector<128x768xf32>
    %c0_1 = arith.constant 0 : index
    %c0_2 = arith.constant 0 : index
    %1 = vector.load %arg2[%c0_1, %c0_2] : memref<768x32xf32, #tpu.memory_space<vmem>>, vector<768x32xf32>
    %cst = arith.constant dense<0.000000e+00> : vector<128x32xf32>
    %2 = tpu.matmul %0, %1, %cst {dimension_numbers = #tpu.dot_dimension_numbers<[1], [0], [0], [1], [0, 0, 1, 1], [], []>, precision = #tpu.contract_precision<fp32>} : vector<128x768xf32>, vector<768x32xf32>, vector<128x32xf32> -> vector<128x32xf32>
    %c0_3 = arith.constant 0 : index
    %c0_4 = arith.constant 0 : index
    %3 = vector.load %arg3[%c0_3, %c0_4] : memref<1x32xf32, #tpu.memory_space<vmem>>, vector<1x32xf32>
    %4 = vector.broadcast %3 : vector<1x32xf32> to vector<128x32xf32>
    %5 = arith.addf %2, %4 : vector<128x32xf32>
    %6 = math.tanh %5 : vector<128x32xf32>
    %c0_5 = arith.constant 0 : index
    %c0_6 = arith.constant 0 : index
    %7 = vector.load %arg4[%c0_5, %c0_6] : memref<2x32xf32, #tpu.memory_space<vmem>>, vector<2x32xf32>
    %cst_7 = arith.constant dense<0.000000e+00> : vector<2x128xf32>
    %8 = tpu.matmul %7, %6, %cst_7 {dimension_numbers = #tpu.dot_dimension_numbers<[1], [1], [0], [0], [0, 0, 1, 0], [], []>, precision = #tpu.contract_precision<fp32>} : vector<2x32xf32>, vector<128x32xf32>, vector<2x128xf32> -> vector<2x128xf32>
    %c0_8 = arith.constant 0 : index
    %c0_9 = arith.constant 0 : index
    %9 = vector.load %arg5[%c0_8, %c0_9] : memref<2x1xf32, #tpu.memory_space<vmem>>, vector<2x1xf32>
    %10 = vector.broadcast %9 : vector<2x1xf32> to vector<2x128xf32>
    %11 = arith.addf %8, %10 : vector<2x128xf32>
    %c0_10 = arith.constant 0 : index
    %c0_11 = arith.constant 0 : index
    %12 = vector.load %arg6[%c0_10, %c0_11] : memref<2x128xf32, #tpu.memory_space<vmem>>, vector<2x128xf32>
    tpu.vector_store %arg6[%c0_10, %c0_11], %11 {strides = array<i32>} : memref<2x128xf32, #tpu.memory_space<vmem>>, vector<2x128xf32>,
    return
  }
  func.func @transform_0(%arg0: i32) -> (i32, i32) {
    %c0_i32 = arith.constant 0 : i32
    %c0_i32_0 = arith.constant 0 : i32
    return %arg0, %c0_i32 : i32, i32
  }
  func.func @transform_1(%arg0: i32) -> (i32, i32) {
    %c0_i32 = arith.constant 0 : i32
    %c0_i32_0 = arith.constant 0 : i32
    %c0_i32_1 = arith.constant 0 : i32
    return %c0_i32, %c0_i32_0 : i32, i32
  }
  func.func @transform_2(%arg0: i32) -> (i32, i32) {
    %c0_i32 = arith.constant 0 : i32
    %c0_i32_0 = arith.constant 0 : i32
    %c0_i32_1 = arith.constant 0 : i32
    return %c0_i32, %c0_i32_0 : i32, i32
  }
  func.func @transform_3(%arg0: i32) -> (i32, i32) {
    %c0_i32 = arith.constant 0 : i32
    %c0_i32_0 = arith.constant 0 : i32
    %c0_i32_1 = arith.constant 0 : i32
    return %c0_i32, %c0_i32_0 : i32, i32
  }
  func.func @transform_4(%arg0: i32) -> (i32, i32) {
    %c0_i32 = arith.constant 0 : i32
    %c0_i32_0 = arith.constant 0 : i32
    %c0_i32_1 = arith.constant 0 : i32
    return %c0_i32, %c0_i32_0 : i32, i32
  }
  func.func @transform_5(%arg0: i32) -> (i32, i32) {
    %c0_i32 = arith.constant 0 : i32
    %c0_i32_0 = arith.constant 0 : i32
    return %c0_i32, %arg0 : i32, i32
  }
}

</mosaic_0001>

<bundles_post_ra>
// kernel: tpu_custom_call.1
= control target key start
LH: loop header
LB: loop body
LE: loop exit
PB: predicated region body
PF: predicated region fallthrough
CT: control target
= control target key end

     0   :  { %s10513_s0 = inlined_call_operand.vmem [shape: f32[128,768], index: 0, kind: input, shape index: {}]   ;;  %s10514_s1 = inlined_call_operand.vmem [shape: f32[768,32], index: 1, kind: input, shape index: {}]   ;;  %s10515_s2 = inlined_call_operand.vmem [shape: f32[1,32], index: 2, kind: input, shape index: {}]   ;;  %s10516_s3 = inlined_call_operand.vmem [shape: f32[2,32], index: 3, kind: input, shape index: {}]   ;;  %s10517_s4 = inlined_call_operand.vmem [shape: f32[2,1], index: 4, kind: input, shape index: {}]   ;;  %s10518_s5 = inlined_call_operand.hbm [shape: f32[2,128], index: 5, kind: output, shape index: {}]  }
   0x1   :  { %v132_v0 = vld [vmem:[%s10514_s1 + $0x78] sm:$0xff]  ;;  %v131_v1 = vld [vmem:[%s10514_s1 + $0x70] sm:$0xff]  ;;  %v130_v2 = vld [vmem:[%s10514_s1 + $0x68] sm:$0xff] }
   0x2   :  { %v5621_v3 = vand.u32 4294901760, %v132_v0  ;;  %v5623_v4 = vand.u32 4294901760, %v131_v1  ;;  %v5625_v5 = vand.u32 4294901760, %v130_v2  ;;  %v129_v6 = vld [vmem:[%s10514_s1 + $0x60] sm:$0xff]  ;;  %v128_v7 = vld [vmem:[%s10514_s1 + $0x58] sm:$0xff]  ;;  %v127_v8 = vld [vmem:[%s10514_s1 + $0x50] sm:$0xff] }
   0x3   :  { %v5636_v9 = vand.u32 4294901760, %v129_v6  ;;  %v5638_v10 = vand.u32 4294901760, %v128_v7  ;;  %v5640_v11 = vand.u32 4294901760, %v127_v8  ;;  %v126_v12 = vld [vmem:[%s10514_s1 + $0x48] sm:$0xff]  ;;  %v125_v16 = vld [vmem:[%s10514_s1 + $0x40] sm:$0xff]  ;;  %v124_v19 = vld [vmem:[%s10514_s1 + $0x38] sm:$0xff] }
   0x4   :  { %218 = vmatpush.msra.mxu0 %v5621_v3  ;;  %5486 = vmatpush.msra.mxu2 %v5621_v3  ;;  %v5648_v13 = vsub.f32 %v132_v0, %v5621_v3  ;;  %v5651_v14 = vsub.f32 %v131_v1, %v5623_v4  ;;  %v5654_v15 = vsub.f32 %v130_v2, %v5625_v5  ;;  %v5659_v17 = vand.u32 4294901760, %v126_v12  ;;  %v123_v26 = vld [vmem:[%s10514_s1 + $0x30] sm:$0xff] }
   0x5   :  { %v5662_v18 = vsub.f32 %v129_v6, %v5636_v9  ;;  %v5668_v20 = vsub.f32 %v128_v7, %v5638_v10  ;;  %v5675_v24 = vand.u32 4294901760, %v125_v16  ;;  %v5682_v27 = vsub.f32 %v127_v8, %v5640_v11 }
   0x6   :  { %220 = vmatpush.msra.mxu0 %v5623_v4  ;;  %5487 = vmatpush.msra.mxu2 %v5623_v4  ;;  %v380_v21 = vand.u32 4294901760, %v5648_v13  ;;  %v386_v22 = vand.u32 4294901760, %v5651_v14  ;;  %v392_v23 = vand.u32 4294901760, %v5654_v15  ;;  %v5692_v30 = vand.u32 4294901760, %v124_v19 }
   0x7   :  { %v398_v25 = vand.u32 4294901760, %v5662_v18 }
   0x8   :  { %222 = vmatpush.msra.mxu0 %v5625_v5  ;;  %5488 = vmatpush.msra.mxu2 %v5625_v5  ;;  %v381_v28 = vsub.f32 %v5648_v13, %v380_v21  ;;  %v387_v29 = vsub.f32 %v5651_v14, %v386_v22 }
   0x9   :  { %10 = vsyncpa [#allocation3], 0  ;;  %v393_v31 = vsub.f32 %v5654_v15, %v392_v23  ;;  %v404_v32 = vand.u32 4294901760, %v5668_v20  ;;  %v5699_v33 = vsub.f32 %v126_v12, %v5659_v17  ;;  %v5703_v35 = vand.u32 4294901760, %v123_v26  ;;  %v122_v36 = vld [vmem:[%s10514_s1 + $0x28] sm:$0xff]  ;;  %v121_v40 = vld [vmem:[%s10514_s1 + $0x20] sm:$0xff] }
   0xa   :  { %224 = vmatpush.msra.mxu0 %v5636_v9  ;;  %5489 = vmatpush.msra.mxu2 %v5636_v9  ;;  %v382_v34 = vand.u32 4294901760, %v381_v28  ;;  %v388_v37 = vand.u32 4294901760, %v387_v29  ;;  %v399_v38 = vsub.f32 %v5662_v18, %v398_v25  ;;  %v410_v39 = vand.u32 4294901760, %v5682_v27  ;;  %v21_v47 = vld [vmem:[%s10513_s0] sm:$0xff]  ;;  %v120_v50 = vld [vmem:[%s10514_s1 + $0x18] sm:$0xff]  ;;  %v119_v54 = vld [vmem:[%s10514_s1 + $0x10] sm:$0xff] }
   0xb   :  { %v5716_v41 = vsub.f32 %v125_v16, %v5675_v24  ;;  %v5721_v42 = vsub.f32 %v124_v19, %v5692_v30  ;;  %v394_v43 = vand.u32 4294901760, %v393_v31  ;;  %v405_v44 = vsub.f32 %v5668_v20, %v404_v32  ;;  %v93_v48 = vld [vmem:[%s10513_s0 + $0x240] sm:$0xff]  ;;  %v118_v0 = vld [vmem:[%s10514_s1 + $0x8] sm:$0xff]  ;;  %s5477_s20 = sshll.u32 %s10518_s5, 4  ;;  %s5478_s20 = int_to_ptr.hbm [resolvable:$true] %s5477_s20 }
   0xc   :  { %226 = vmatpush.msra.mxu0 %v5638_v10  ;;  %5490 = vmatpush.msra.mxu2 %v5638_v10  ;;  %v5726_v45 = vand.u32 4294901760, %v122_v36  ;;  %v10528_v46 = vand.u32 4294901760, %v5699_v33  ;;  %v5737_v49 = vand.u32 4294901760, %v121_v40  ;;  %v400_v51 = vand.u32 4294901760, %v399_v38  ;;  %v117_v7 = vld [vmem:[%s10514_s1] sm:$0xff] }
   0xd   :  { %383 = vmatpush.msra.mxu1 %v382_v34  ;;  %5502 = vmatpush.msra.mxu3 %v382_v34  ;;  %v411_v52 = vsub.f32 %v5682_v27, %v410_v39  ;;  %v10526_v53 = vand.u32 4294901760, %v5716_v41  ;;  %v5750_v55 = vsub.f32 %v123_v26, %v5703_v35  ;;  %v10525_v56 = vand.u32 4294901760, %v5721_v42  ;;  %v27_v34 = vld [vmem:[%s10513_s0 + $0x30] sm:$0xff] }
   0xe   :  { %228 = vmatpush.msra.mxu0 %v5640_v11  ;;  %5491 = vmatpush.msra.mxu2 %v5640_v11  ;;  %v5755_v57 = vand.u32 4294901760, %v21_v47  ;;  %v5757_v58 = vand.u32 4294901760, %v93_v48  ;;  %v406_v59 = vand.u32 4294901760, %v405_v44  ;;  %v417_v60 = vsub.f32 %v5699_v33, %v10528_v46 }
   0xf   :  { %389 = vmatpush.msra.mxu1 %v388_v37  ;;  %5503 = vmatpush.msra.mxu3 %v388_v37  ;;  %v5762_v61 = vand.u32 4294901760, %v120_v50  ;;  %v5765_v62 = vsub.f32 %v122_v36, %v5726_v45  ;;  %v5769_v63 = vand.u32 4294901760, %v119_v54  ;;  %v412_v1 = vand.u32 4294901760, %v411_v52  ;;  %v99_v37 = vld [vmem:[%s10513_s0 + $0x270] sm:$0xff] }
  0x10   :  { %230 = vmatpush.msra.mxu0 %v5659_v17  ;;  %5492 = vmatpush.msra.mxu2 %v5659_v17  ;;  %v423_v2 = vsub.f32 %v5716_v41, %v10526_v53  ;;  %v10521_v6 = vand.u32 4294901760, %v5750_v55  ;;  %v5782_v8 = vsub.f32 %v121_v40, %v5737_v49  ;;  %v429_v12 = vsub.f32 %v5721_v42, %v10525_v56 }
  0x11   :  { %395 = vmatpush.msra.mxu1 %v394_v43  ;;  %5504 = vmatpush.msra.mxu3 %v394_v43  ;;  %v5790_v16 = vsub.f32 %v21_v47, %v5755_v57  ;;  %v5793_v19 = vsub.f32 %v93_v48, %v5757_v58  ;;  %v418_v26 = vand.u32 4294901760, %v417_v60  ;;  %v5795_v28 = vand.u32 4294901760, %v118_v0 }
  0x12   :  { %232 = vmatpush.msra.mxu0 %v5675_v24  ;;  %5493 = vmatpush.msra.mxu2 %v5675_v24  ;;  %v10520_v29 = vand.u32 4294901760, %v5765_v62  ;;  %v5799_v31 = vsub.f32 %v120_v50, %v5762_v61  ;;  %v5806_v36 = vand.u32 4294901760, %v117_v7  ;;  %v424_v38 = vand.u32 4294901760, %v423_v2 }
  0x13   :  { %401 = vmatpush.msra.mxu1 %v400_v51  ;;  %5505 = vmatpush.msra.mxu3 %v400_v51  ;;  %v435_v40 = vsub.f32 %v5750_v55, %v10521_v6  ;;  %v10519_v43 = vand.u32 4294901760, %v5782_v8  ;;  %v5816_v44 = vsub.f32 %v119_v54, %v5769_v63  ;;  %v430_v47 = vand.u32 4294901760, %v429_v12 }
  0x14   :  { %234 = vmatpush.msra.mxu0 %v5692_v30  ;;  %5494 = vmatpush.msra.mxu2 %v5692_v30  ;;  %v10522_v48 = vand.u32 4294901760, %v5790_v16  ;;  %v10523_v50 = vand.u32 4294901760, %v5793_v19  ;;  %v5822_v51 = vand.u32 4294901760, %v27_v34  ;;  %v441_v52 = vsub.f32 %v5765_v62, %v10520_v29 }
  0x15   :  { %407 = vmatpush.msra.mxu1 %v406_v59  ;;  %5506 = vmatpush.msra.mxu3 %v406_v59  ;;  %v10524_v54 = vand.u32 4294901760, %v5799_v31  ;;  %v5829_v59 = vsub.f32 %v118_v0, %v5795_v28  ;;  %v5831_v60 = vand.u32 4294901760, %v99_v37  ;;  %v447_v2 = vsub.f32 %v5782_v8, %v10519_v43 }
  0x16   :  { %236 = vmatpush.msra.mxu0 %v5703_v35  ;;  %5495 = vmatpush.msra.mxu2 %v5703_v35  ;;  %v10527_v12 = vand.u32 4294901760, %v5816_v44  ;;  %v252_v0 = vsub.f32 %v5790_v16, %v10522_v48  ;;  %v442_v43 = vand.u32 4294901760, %v441_v52  ;;  %v33_v48 = vld [vmem:[%s10513_s0 + $0x60] sm:$0xff]  ;;  %vm5076_vm0 = vcmask 261120  }
  0x17   :  { %413 = vmatpush.msra.mxu1 %v412_v1  ;;  %5507 = vmatpush.msra.mxu3 %v412_v1  ;;  %v436_v1 = vand.u32 4294901760, %v435_v40  ;;  %v5851_v40 = vsub.f32 %v27_v34, %v5822_v51  ;;  %v10529_v29 = vand.u32 4294901760, %v5829_v59  ;;  %v5858_v6 = vsub.f32 %v99_v37, %v5831_v60  ;;  %v105_v34 = vld [vmem:[%s10513_s0 + $0x2a0] sm:$0xff] }
  0x18   :  { %238 = vmatpush.msra.mxu0 %v5726_v45  ;;  %5496 = vmatpush.msra.mxu2 %v5726_v45  ;;  %v459_v37 = vsub.f32 %v5816_v44, %v10527_v12  ;;  %v5875_v53 = vand.u32 4294901760, %v33_v48  ;;  %v5881_v46 = vand.u32 4294901760, %v105_v34 }
  0x19   :  { %419 = vmatpush.msra.mxu1 %v418_v26  ;;  %5508 = vmatpush.msra.mxu3 %v418_v26  ;;  %v5840_v26 = vsub.f32 %v117_v7, %v5806_v36  ;;  %v453_v7 = vsub.f32 %v5799_v31, %v10524_v54  ;;  %v259_v56 = vand.u32 4294901760, %v5851_v40  ;;  %v10540_v12 = vand.u32 4294901760, %v5858_v6 }
  0x1a   :  { %240 = vmatpush.msra.mxu0 %v5737_v49  ;;  %5497 = vmatpush.msra.mxu2 %v5737_v49 }
  0x1b   :  { %425 = vmatpush.msra.mxu1 %v424_v38  ;;  %5509 = vmatpush.msra.mxu3 %v424_v38  ;;  %v348_v38 = vsub.f32 %v5793_v19, %v10523_v50  ;;  %v470_v52 = vand.u32 4294901760, %v5840_v26  ;;  %v253_v50 = vand.u32 4294901760, %v252_v0  ;;  %v460_v0 = vand.u32 4294901760, %v459_v37 }
  0x1c   :  { %242 = vmatpush.msra.mxu0 %v5762_v61  ;;  %5498 = vmatpush.msra.mxu2 %v5762_v61  ;;  %v5898_v37 = vsub.f32 %v105_v34, %v5881_v46 }
  0x1d   :  { %431 = vmatpush.msra.mxu1 %v430_v47  ;;  %5510 = vmatpush.msra.mxu3 %v430_v47  ;;  %v448_v47 = vand.u32 4294901760, %v447_v2  ;;  %v349_v54 = vand.u32 4294901760, %v348_v38  ;;  %v465_v2 = vsub.f32 %v5829_v59, %v10529_v29  ;;  %v260_v38 = vsub.f32 %v5851_v40, %v259_v56 }
  0x1e   :  { %244 = vmatpush.msra.mxu0 %v5769_v63  ;;  %5499 = vmatpush.msra.mxu2 %v5769_v63 }
  0x1f   :  { %437 = vmatpush.msra.mxu1 %v436_v1  ;;  %5511 = vmatpush.msra.mxu3 %v436_v1  ;;  %v454_v1 = vand.u32 4294901760, %v453_v7  ;;  %v5892_v7 = vsub.f32 %v33_v48, %v5875_v53  ;;  %v466_v29 = vand.u32 4294901760, %v465_v2  ;;  %v261_v34 = vand.u32 4294901760, %v260_v38 }
  0x20   :  { %246 = vmatpush.msra.mxu0 %v5795_v28  ;;  %5500 = vmatpush.msra.mxu2 %v5795_v28 }
  0x21   :  { %443 = vmatpush.msra.mxu1 %v442_v43  ;;  %5512 = vmatpush.msra.mxu3 %v442_v43  ;;  %v471_v43 = vsub.f32 %v5840_v26, %v470_v52 }
  0x22   :  { %248 = vmatpush.msra.mxu0 %v5806_v36  ;;  %5501 = vmatpush.msra.mxu2 %v5806_v36 }
  0x23   :  { %449 = vmatpush.msra.mxu1 %v448_v47  ;;  %5513 = vmatpush.msra.mxu3 %v448_v47  ;;  %v356_v47 = vsub.f32 %v5858_v6, %v10540_v12  ;;  %v472_v48 = vand.u32 4294901760, %v471_v43 }
  0x24   :  { %254 = vmatmul.f32.vlgmr.msra.gmra.mxu0 %v253_v50  ;;  %350 = vmatmul.f32.vlgmr.msra.gmra.mxu2 %v349_v54  ;;  %v39_v50 = vld [vmem:[%s10513_s0 + $0x90] sm:$0xff] }
  0x25   :  { %455 = vmatpush.msra.mxu1 %v454_v1  ;;  %5514 = vmatpush.msra.mxu3 %v454_v1  ;;  %v111_v54 = vld [vmem:[%s10513_s0 + $0x2d0] sm:$0xff]  ;;  %v267_v1 = vand.u32 4294901760, %v5892_v7  ;;  %v5911_v2 = vand.u32 4294901760, %v39_v50 }
  0x26   :  { %541 = vmatpush.msrb.mxu2 %v5648_v13  ;;  %800 = vmatpush.msrb.mxu0 %v380_v21  ;;  %v357_v13 = vand.u32 4294901760, %v356_v47  ;;  %v10531_v21 = vand.u32 4294901760, %v5898_v37 }
  0x27   :  { %461 = vmatpush.msra.mxu1 %v460_v0  ;;  %5515 = vmatpush.msra.mxu3 %v460_v0  ;;  %v5917_v0 = vand.u32 4294901760, %v111_v54 }
  0x28   :  { %544 = vmatpush.msrb.mxu2 %v5651_v14  ;;  %804 = vmatpush.msrb.mxu0 %v386_v22  ;;  %v268_v14 = vsub.f32 %v5892_v7, %v267_v1  ;;  %v5926_v22 = vsub.f32 %v39_v50, %v5911_v2 }
  0x29   :  { %467 = vmatpush.msra.mxu1 %v466_v29  ;;  %5516 = vmatpush.msra.mxu3 %v466_v29  ;;  %v5938_v29 = vsub.f32 %v111_v54, %v5917_v0 }
  0x2a   :  { %547 = vmatpush.msrb.mxu2 %v5654_v15  ;;  %808 = vmatpush.msrb.mxu0 %v392_v23  ;;  %v364_v15 = vsub.f32 %v5898_v37, %v10531_v21  ;;  %v45_v23 = vld [vmem:[%s10513_s0 + $0xc0] sm:$0xff]  ;;  %v269_v43 = vand.u32 4294901760, %v268_v14  ;;  %v275_v38 = vand.u32 4294901760, %v5926_v22  ;;  %v10749_v14 = vand.u32 4294901760, %v5721_v42 }
  0x2b   :  { %473 = vmatpush.msra.mxu1 %v472_v48  ;;  %5517 = vmatpush.msra.mxu3 %v472_v48  ;;  %v5945_v47 = vand.u32 4294901760, %v45_v23  ;;  %v10747_v48 = vand.u32 4294901760, %v5699_v33 }
  0x2c   :  { %550 = vmatpush.msrb.mxu2 %v5662_v18  ;;  %262 = vmatmul.f32.gmra.mxu0 %v261_v34  ;;  %v365_v50 = vand.u32 4294901760, %v364_v15  ;;  %v10530_v18 = vand.u32 4294901760, %v5938_v29  ;;  %v10748_v34 = vand.u32 4294901760, %v5716_v41  ;;  %v10750_v15 = vand.u32 4294901760, %v5750_v55 }
  0x2d   :  { %358 = vmatmul.f32.gmra.mxu2 %v357_v13  ;;  %475 = vmatmul.f32.vlgmr.msra.gmra.mxu1 %v5755_v57 }
  0x2e   :  { %523 = vmatmul.f32.vlgmr.msra.gmra.mxu3 %v5757_v58  ;;  %553 = vmatpush.msrb.mxu2 %v5668_v20  ;;  %v5962_v20 = vsub.f32 %v45_v23, %v5945_v47 }
  0x2f   :  { %669 = vmatpush.msrb.mxu3 %v5621_v3  ;;  %812 = vmatpush.msrb.mxu0 %v398_v25  ;;  %v372_v25 = vsub.f32 %v5938_v29, %v10530_v18 }
  0x30   :  { %556 = vmatpush.msrb.mxu2 %v5682_v27  ;;  %927 = vmatpush.msrb.mxu1 %v5621_v3  ;;  %v276_v3 = vsub.f32 %v5926_v22, %v275_v38 }
  0x31   :  { %671 = vmatpush.msrb.mxu3 %v5623_v4  ;;  %816 = vmatpush.msrb.mxu0 %v404_v32  ;;  %v283_v32 = vand.u32 4294901760, %v5962_v20  ;;  %v373_v54 = vand.u32 4294901760, %v372_v25 }
  0x32   :  { %559 = vmatpush.msrb.mxu2 %v5699_v33  ;;  %929 = vmatpush.msrb.mxu1 %v5623_v4  ;;  %v51_v4 = vld [vmem:[%s10513_s0 + $0xf0] sm:$0xff]  ;;  %v277_v27 = vand.u32 4294901760, %v276_v3  ;;  %v10752_v3 = vand.u32 4294901760, %v5782_v8 }
  0x33   :  { %673 = vmatpush.msrb.mxu3 %v5625_v5  ;;  %820 = vmatpush.msrb.mxu0 %v410_v39  ;;  %v5976_v39 = vand.u32 4294901760, %v51_v4  ;;  %v284_v33 = vsub.f32 %v5962_v20, %v283_v32 }
  0x34   :  { %562 = vmatpush.msrb.mxu2 %v5716_v41  ;;  %270 = vmatmul.f32.gmra.mxu0 %v269_v43 }
  0x35   :  { %675 = vmatpush.msrb.mxu3 %v5636_v9  ;;  %366 = vmatmul.f32.gmra.mxu2 %v365_v50  ;;  %v285_v41 = vand.u32 4294901760, %v284_v33 }
  0x36   :  { %479 = vmatmul.f32.gmra.mxu1 %v5822_v51  ;;  %527 = vmatmul.f32.gmra.mxu3 %v5831_v60 }
  0x37   :  { %565 = vmatpush.msrb.mxu2 %v5721_v42  ;;  %677 = vmatpush.msrb.mxu3 %v5638_v10 }
  0x38   :  { %824 = vmatpush.msrb.mxu0 %v10747_v48  ;;  %931 = vmatpush.msrb.mxu1 %v5625_v5  ;;  %v5992_v5 = vsub.f32 %v51_v4, %v5976_v39 }
  0x39   :  { %568 = vmatpush.msrb.mxu2 %v5750_v55  ;;  %679 = vmatpush.msrb.mxu3 %v5640_v11  ;;  %v10751_v55 = vand.u32 4294901760, %v5765_v62 }
  0x3a   :  { %828 = vmatpush.msrb.mxu0 %v10748_v34  ;;  %933 = vmatpush.msrb.mxu1 %v5636_v9  ;;  %v57_v9 = vld [vmem:[%s10513_s0 + $0x120] sm:$0xff]  ;;  %v87_v34 = vld [vmem:[%s10513_s0 + $0x210] sm:$0xff] }
  0x3b   :  { %571 = vmatpush.msrb.mxu2 %v5765_v62  ;;  %681 = vmatpush.msrb.mxu3 %v5659_v17  ;;  %v6005_v13 = vand.u32 4294901760, %v57_v9  ;;  %v10753_v62 = vand.u32 4294901760, %v5799_v31 }
  0x3c   :  { %278 = vmatmul.f32.gmra.mxu0 %v277_v27  ;;  %935 = vmatpush.msrb.mxu1 %v5638_v10  ;;  %v291_v10 = vand.u32 4294901760, %v5992_v5 }
  0x3d   :  { %574 = vmatpush.msrb.mxu2 %v5782_v8  ;;  %683 = vmatpush.msrb.mxu3 %v5675_v24  ;;  %v6021_v23 = vsub.f32 %v57_v9, %v6005_v13  ;;  %v10754_v8 = vand.u32 4294901760, %v5816_v44  ;;  %v6124_v9 = vand.u32 4294901760, %v87_v34 }
  0x3e   :  { %374 = vmatmul.f32.gmra.mxu2 %v373_v54  ;;  %483 = vmatmul.f32.gmra.mxu1 %v5875_v53  ;;  %v292_v42 = vsub.f32 %v5992_v5, %v291_v10  ;;  %v10756_v54 = vand.u32 4294901760, %v5829_v59 }
  0x3f   :  { %531 = vmatmul.f32.gmra.mxu3 %v5881_v46  ;;  %577 = vmatpush.msrb.mxu2 %v5799_v31  ;;  %v299_v43 = vand.u32 4294901760, %v6021_v23 }
  0x40   :  { %685 = vmatpush.msrb.mxu3 %v5692_v30  ;;  %832 = vmatpush.msrb.mxu0 %v10749_v14 }
  0x41   :  { %580 = vmatpush.msrb.mxu2 %v5816_v44  ;;  %937 = vmatpush.msrb.mxu1 %v5640_v11  ;;  %v63_v11 = vld [vmem:[%s10513_s0 + $0x150] sm:$0xff]  ;;  %v300_v4 = vsub.f32 %v6021_v23, %v299_v43 }
  0x42   :  { %687 = vmatpush.msrb.mxu3 %v5703_v35  ;;  %836 = vmatpush.msrb.mxu0 %v10750_v15  ;;  %v6035_v50 = vand.u32 4294901760, %v63_v11  ;;  %v75_v44 = vld [vmem:[%s10513_s0 + $0x1b0] sm:$0xff] }
  0x43   :  { %583 = vmatpush.msrb.mxu2 %v5829_v59  ;;  %939 = vmatpush.msrb.mxu1 %v5659_v17  ;;  %v293_v17 = vand.u32 4294901760, %v292_v42  ;;  %v301_v31 = vand.u32 4294901760, %v300_v4  ;;  %v6086_v59 = vand.u32 4294901760, %v75_v44  ;;  %v147_v42 = vld [vmem:[%s10514_s1 + $0xf0] sm:$0xff]  ;;  %v146_v4 = vld [vmem:[%s10514_s1 + $0xe8] sm:$0xff] }
  0x44   :  { %689 = vmatpush.msrb.mxu3 %v5726_v45  ;;  %286 = vmatmul.f32.gmra.mxu0 %v285_v41  ;;  %v6049_v25 = vsub.f32 %v63_v11, %v6035_v50 }
  0x45   :  { %586 = vmatpush.msrb.mxu2 %v5840_v26  ;;  %840 = vmatpush.msrb.mxu0 %v10751_v55  ;;  %v6094_v26 = vsub.f32 %v75_v44, %v6086_v59 }
  0x46   :  { %691 = vmatpush.msrb.mxu3 %v5737_v49  ;;  %487 = vmatmul.f32.gmra.mxu1 %v5911_v2  ;;  %v307_v27 = vand.u32 4294901760, %v6049_v25 }
  0x47   :  { %535 = vmatmul.f32.gmra.mxu3 %v5917_v0  ;;  %589 = vmatmul.f32.vlgmr.msrb.gmra.mxu2 %v5790_v16 }
  0x48   :  { %693 = vmatpush.msrb.mxu3 %v5762_v61  ;;  %844 = vmatpush.msrb.mxu0 %v10752_v3 }
  0x49   :  { %941 = vmatpush.msrb.mxu1 %v5675_v24  ;;  %v69_v24 = vld [vmem:[%s10513_s0 + $0x180] sm:$0xff] }
  0x4a   :  { %695 = vmatpush.msrb.mxu3 %v5769_v63  ;;  %848 = vmatpush.msrb.mxu0 %v10753_v62  ;;  %v6063_v48 = vand.u32 4294901760, %v69_v24 }
  0x4b   :  { %943 = vmatpush.msrb.mxu1 %v5692_v30  ;;  %v10755_v30 = vand.u32 4294901760, %v5790_v16 }
  0x4c   :  { %697 = vmatpush.msrb.mxu3 %v5795_v28  ;;  %294 = vmatmul.f32.gmra.mxu0 %v293_v17  ;;  %v6075_v16 = vsub.f32 %v69_v24, %v6063_v48  ;;  %v6149_v17 = vand.u32 4294901760, %v147_v42 }
  0x4d   :  { %852 = vmatpush.msrb.mxu0 %v10754_v8  ;;  %945 = vmatpush.msrb.mxu1 %v5703_v35  ;;  %v308_v35 = vsub.f32 %v6049_v25, %v307_v27  ;;  %v6169_v8 = vand.u32 4294901760, %v146_v4 }
  0x4e   :  { %699 = vmatpush.msrb.mxu3 %v5806_v36  ;;  %491 = vmatmul.f32.gmra.mxu1 %v5945_v47  ;;  %v6164_v62 = vsub.f32 %v147_v42, %v6149_v17  ;;  %v141_v42 = vld [vmem:[%s10514_s1 + $0xc0] sm:$0xff] }
  0x4f   :  { %594 = vmatmul.f32.gmra.mxu2 %v5851_v40  ;;  %703 = vmatmul.f32.vlgmr.msrb.gmra.mxu3 %v10755_v30 }
  0x50   :  { %856 = vmatpush.msrb.mxu0 %v10756_v54  ;;  %947 = vmatpush.msrb.mxu1 %v5726_v45  ;;  %v309_v45 = vand.u32 4294901760, %v308_v35  ;;  %v1192_v30 = vand.u32 4294901760, %v6164_v62  ;;  %v145_v35 = vld [vmem:[%s10514_s1 + $0xe0] sm:$0xff] }
  0x52   :  { %860 = vmatpush.msrb.mxu0 %v470_v52  ;;  %949 = vmatpush.msrb.mxu1 %v5737_v49  ;;  %v315_v49 = vand.u32 4294901760, %v6075_v16 }
  0x54   :  { %302 = vmatmul.f32.gmra.mxu0 %v301_v31  ;;  %951 = vmatpush.msrb.mxu1 %v5762_v61  ;;  %v316_v61 = vsub.f32 %v6075_v16, %v315_v49  ;;  %v6183_v31 = vsub.f32 %v146_v4, %v6169_v8  ;;  %v140_v4 = vld [vmem:[%s10514_s1 + $0xb8] sm:$0xff] }
  0x56   :  { %495 = vmatmul.f32.gmra.mxu1 %v5976_v39  ;;  %v10543_v54 = vand.u32 4294901760, %v6183_v31 }
  0x57   :  { %599 = vmatmul.f32.gmra.mxu2 %v5892_v7  ;;  %709 = vmatmul.f32.gmra.mxu3 %v259_v56  ;;  %v81_v56 = vld [vmem:[%s10513_s0 + $0x1e0] sm:$0xff]  ;;  %v148_v7 = vld [vmem:[%s10514_s1 + $0xf8] sm:$0xff] }
  0x58   :  { %953 = vmatpush.msrb.mxu1 %v5769_v63  ;;  %v317_v63 = vand.u32 4294901760, %v316_v61  ;;  %v6105_v40 = vand.u32 4294901760, %v81_v56  ;;  %v6126_v41 = vand.u32 4294901760, %v148_v7  ;;  %v1199_v44 = vsub.f32 %v6183_v31, %v10543_v54 }
  0x5a   :  { %955 = vmatpush.msrb.mxu1 %v5795_v28  ;;  %v323_v28 = vand.u32 4294901760, %v6094_v26  ;;  %v6111_v52 = vsub.f32 %v81_v56, %v6105_v40  ;;  %1024 = vmatpush.msra.mxu2 %v6126_v41  ;;  %v6131_v14 = vsub.f32 %v148_v7, %v6126_v41 }
  0x5c   :  { %310 = vmatmul.f32.gmra.mxu0 %v309_v45  ;;  %957 = vmatpush.msrb.mxu1 %v5806_v36  ;;  %v324_v36 = vsub.f32 %v6094_v26, %v323_v28  ;;  %v331_v33 = vand.u32 4294901760, %v6111_v52  ;;  %v1186_v15 = vand.u32 4294901760, %v6131_v14  ;;  %v6193_v45 = vand.u32 4294901760, %v145_v35 }
  0x5d   :  { %1347 = vmatpush.msra.mxu0 %v6131_v14  ;;  %1026 = vmatpush.msra.mxu2 %v6149_v17 }
  0x5e   :  { %499 = vmatmul.f32.gmra.mxu1 %v6005_v13  ;;  %v1187_v3 = vsub.f32 %v6131_v14, %v1186_v15  ;;  %v10757_v14 = vand.u32 4294901760, %v5793_v19 }
  0x5f   :  { %604 = vmatmul.f32.gmra.mxu2 %v5926_v22  ;;  %715 = vmatmul.f32.gmra.mxu3 %v267_v1  ;;  %v325_v1 = vand.u32 4294901760, %v324_v36  ;;  %v332_v22 = vsub.f32 %v6111_v52, %v331_v33 }
  0x60   :  { %1475 = vmatpush.msra.mxu1 %v6126_v41  ;;  %1350 = vmatpush.msra.mxu0 %v6164_v62 }
  0x61   :  { %v333_v11 = vand.u32 4294901760, %v332_v22  ;;  %1028 = vmatpush.msra.mxu2 %v6169_v8 }
  0x62   :  { %1477 = vmatpush.msra.mxu1 %v6149_v17  ;;  %1353 = vmatpush.msra.mxu0 %v6183_v31 }
  0x63   :  { %1030 = vmatpush.msra.mxu2 %v6193_v45 }
  0x64   :  { %318 = vmatmul.f32.gmra.mxu0 %v317_v63  ;;  %1479 = vmatpush.msra.mxu1 %v6169_v8  ;;  %v144_v63 = vld [vmem:[%s10514_s1 + $0xd8] sm:$0xff] }
  0x66   :  { %503 = vmatmul.f32.gmra.mxu1 %v6035_v50 }
  0x67   :  { %609 = vmatmul.f32.gmra.mxu2 %v5962_v20  ;;  %721 = vmatmul.f32.gmra.mxu3 %v275_v38  ;;  %v6137_v38 = vsub.f32 %v87_v34, %v6124_v9  ;;  %v1188_v20 = vand.u32 4294901760, %v1187_v3  ;;  %v143_v34 = vld [vmem:[%s10514_s1 + $0xd0] sm:$0xff] }
  0x68   :  { %1481 = vmatpush.msra.mxu1 %v6193_v45  ;;  %v6227_v7 = vand.u32 4294901760, %v143_v34 }
  0x69   :  { %v339_v55 = vand.u32 4294901760, %v6137_v38  ;;  %1189 = vmatpush.msra.mxu3 %v1188_v20 }
  0x6c   :  { %326 = vmatmul.f32.gmra.mxu0 %v325_v1  ;;  %v142_v1 = vld [vmem:[%s10514_s1 + $0xc8] sm:$0xff] }
  0x6e   :  { %507 = vmatmul.f32.gmra.mxu1 %v6063_v48 }
  0x6f   :  { %614 = vmatmul.f32.gmra.mxu2 %v5992_v5  ;;  %727 = vmatmul.f32.gmra.mxu3 %v283_v32  ;;  %v340_v32 = vsub.f32 %v6137_v38, %v339_v55  ;;  %v1193_v5 = vsub.f32 %v6164_v62, %v1192_v30 }
  0x71   :  { %v341_v24 = vand.u32 4294901760, %v340_v32 }
  0x74   :  { %334 = vmatmul.f32.gmra.mxu0 %v333_v11  ;;  %v6250_v11 = vand.u32 4294901760, %v141_v42 }
  0x76   :  { %511 = vmatmul.f32.gmra.mxu1 %v6086_v59 }
  0x77   :  { %619 = vmatmul.f32.gmra.mxu2 %v6021_v23  ;;  %733 = vmatmul.f32.gmra.mxu3 %v291_v10  ;;  %v1194_v10 = vand.u32 4294901760, %v1193_v5  ;;  %v1200_v23 = vand.u32 4294901760, %v1199_v44 }
  0x79   :  { %1195 = vmatpush.msra.mxu3 %v1194_v10 }
  0x7b   :  { %1201 = vmatpush.msra.mxu3 %v1200_v23 }
  0x7c   :  { %342 = vmatmul.f32.gmra.mxu0 %v341_v24  ;;  %v6263_v24 = vand.u32 4294901760, %v140_v4 }
  0x7e   :  { %515 = vmatmul.f32.gmra.mxu1 %v6105_v40 }
  0x7f   :  { %624 = vmatmul.f32.gmra.mxu2 %v6049_v25  ;;  %739 = vmatmul.f32.gmra.mxu3 %v299_v43  ;;  %v6203_v43 = vsub.f32 %v145_v35, %v6193_v45  ;;  %v6214_v25 = vand.u32 4294901760, %v144_v63  ;;  %v6270_v35 = vsub.f32 %v141_v42, %v6250_v11  ;;  %v137_v42 = vld [vmem:[%s10514_s1 + $0xa0] sm:$0xff] }
  0x81   :  { %v10541_v61 = vand.u32 4294901760, %v6203_v43  ;;  %1356 = vmatpush.msra.mxu0 %v6203_v43  ;;  %1032 = vmatpush.msra.mxu2 %v6214_v25  ;;  %v6222_v36 = vsub.f32 %v144_v63, %v6214_v25  ;;  %v10533_v63 = vand.u32 4294901760, %v6270_v35  ;;  %v10759_v62 = vand.u32 4294901760, %v6203_v43 }
  0x82   :  { %1483 = vmatpush.msra.mxu1 %v6214_v25 }
  0x83   :  { %v1205_v56 = vsub.f32 %v6203_v43, %v10541_v61  ;;  %1359 = vmatpush.msra.mxu0 %v6222_v36  ;;  %1034 = vmatpush.msra.mxu2 %v6227_v7 }
  0x84   :  { %862 = vmatmul.f32.vlgmr.msrb.gmra.mxu0 %v5755_v57  ;;  %1485 = vmatpush.msra.mxu1 %v6227_v7 }
  0x86   :  { %519 = vmatmul.f32.gmra.mxu1 %v6124_v9 }
  0x87   :  { %629 = vmatmul.f32.gmra.mxu2 %v6075_v16  ;;  %745 = vmatmul.f32.gmra.mxu3 %v307_v27  ;;  %v1206_v27 = vand.u32 4294901760, %v1205_v56  ;;  %v6236_v16 = vand.u32 4294901760, %v142_v1 }
  0x89   :  { %1207 = vmatpush.msra.mxu3 %v1206_v27  ;;  %1036 = vmatpush.msra.mxu2 %v6236_v16  ;;  %v6254_v20 = vsub.f32 %v142_v1, %v6236_v16  ;;  %v1229_v1 = vsub.f32 %v6270_v35, %v10533_v63 }
  0x8a   :  { %1487 = vmatpush.msra.mxu1 %v6236_v16 }
  0x8b   :  { %1038 = vmatpush.msra.mxu2 %v6250_v11  ;;  %v10535_v10 = vand.u32 4294901760, %v6254_v20 }
  0x8c   :  { %866 = vmatmul.f32.gmra.mxu0 %v5822_v51  ;;  %1489 = vmatpush.msra.mxu1 %v6250_v11 }
  0x8d   :  { %1040 = vmatpush.msra.mxu2 %v6263_v24  ;;  %v1223_v56 = vsub.f32 %v6254_v20, %v10535_v10 }
  0x8e   :  { %959 = vmatmul.f32.vlgmr.msrb.gmra.mxu1 %v5755_v57  ;;  %v10538_v57 = vand.u32 4294901760, %v6222_v36 }
  0x8f   :  { %634 = vmatmul.f32.gmra.mxu2 %v6094_v26  ;;  %751 = vmatmul.f32.gmra.mxu3 %v315_v49  ;;  %v6239_v49 = vsub.f32 %v143_v34, %v6227_v7  ;;  %v138_v26 = vld [vmem:[%s10514_s1 + $0xa8] sm:$0xff]  ;;  %v1224_v34 = vand.u32 4294901760, %v1223_v56  ;;  %v136_v56 = vld [vmem:[%s10514_s1 + $0x98] sm:$0xff] }
  0x90   :  { %v1211_v22 = vsub.f32 %v6222_v36, %v10538_v57  ;;  %v6294_v27 = vand.u32 4294901760, %v138_v26  ;;  %1491 = vmatpush.msra.mxu1 %v6263_v24 }
  0x91   :  { %v10536_v3 = vand.u32 4294901760, %v6239_v49  ;;  %1362 = vmatpush.msra.mxu0 %v6239_v49 }
  0x92   :  { %v1212_v32 = vand.u32 4294901760, %v1211_v22 }
  0x93   :  { %v1217_v5 = vsub.f32 %v6239_v49, %v10536_v3  ;;  %1365 = vmatpush.msra.mxu0 %v6254_v20 }
  0x94   :  { %870 = vmatmul.f32.gmra.mxu0 %v5875_v53  ;;  %1213 = vmatpush.msra.mxu3 %v1212_v32 }
  0x95   :  { %v1218_v44 = vand.u32 4294901760, %v1217_v5  ;;  %1368 = vmatpush.msra.mxu0 %v6270_v35  ;;  %v1230_v5 = vand.u32 4294901760, %v1229_v1  ;;  %v6325_v1 = vand.u32 4294901760, %v136_v56 }
  0x96   :  { %963 = vmatmul.f32.gmra.mxu1 %v5822_v51  ;;  %v139_v51 = vld [vmem:[%s10514_s1 + $0xb0] sm:$0xff] }
  0x97   :  { %639 = vmatmul.f32.gmra.mxu2 %v6111_v52  ;;  %757 = vmatmul.f32.gmra.mxu3 %v323_v28  ;;  %v6279_v23 = vand.u32 4294901760, %v139_v51  ;;  %v6289_v28 = vsub.f32 %v140_v4, %v6263_v24  ;;  %v6310_v4 = vand.u32 4294901760, %v137_v42  ;;  %v6353_v52 = vsub.f32 %v136_v56, %v6325_v1 }
  0x98   :  { %1219 = vmatpush.msra.mxu3 %v1218_v44  ;;  %v6314_v44 = vsub.f32 %v138_v26, %v6294_v27 }
  0x99   :  { %1042 = vmatpush.msra.mxu2 %v6279_v23  ;;  %v6300_v22 = vsub.f32 %v139_v51, %v6279_v23  ;;  %v10532_v32 = vand.u32 4294901760, %v6289_v28  ;;  %1371 = vmatpush.msra.mxu0 %v6289_v28  ;;  %v6332_v21 = vsub.f32 %v137_v42, %v6310_v4  ;;  %v10542_v56 = vand.u32 4294901760, %v6353_v52 }
  0x9a   :  { %1225 = vmatpush.msra.mxu3 %v1224_v34  ;;  %v10537_v34 = vand.u32 4294901760, %v6314_v44  ;;  %1493 = vmatpush.msra.mxu1 %v6279_v23 }
  0x9b   :  { %1044 = vmatpush.msra.mxu2 %v6294_v27  ;;  %v10534_v51 = vand.u32 4294901760, %v6300_v22  ;;  %v1235_v18 = vsub.f32 %v6289_v28, %v10532_v32  ;;  %v10539_v10 = vand.u32 4294901760, %v6332_v21  ;;  %1374 = vmatpush.msra.mxu0 %v6300_v22 }
  0x9c   :  { %874 = vmatmul.f32.gmra.mxu0 %v5911_v2  ;;  %1231 = vmatpush.msra.mxu3 %v1230_v5  ;;  %v1247_v42 = vsub.f32 %v6314_v44, %v10537_v34  ;;  %v133_v34 = vld [vmem:[%s10514_s1 + $0x80] sm:$0xff] }
  0x9d   :  { %1046 = vmatpush.msra.mxu2 %v6310_v4  ;;  %v1241_v26 = vsub.f32 %v6300_v22, %v10534_v51  ;;  %v1236_v32 = vand.u32 4294901760, %v1235_v18  ;;  %v134_v18 = vld [vmem:[%s10514_s1 + $0x88] sm:$0xff]  ;;  %1377 = vmatpush.msra.mxu0 %v6314_v44 }
  0x9e   :  { %967 = vmatmul.f32.gmra.mxu1 %v5875_v53  ;;  %v135_v53 = vld [vmem:[%s10514_s1 + $0x90] sm:$0xff]  ;;  %v1248_v5 = vand.u32 4294901760, %v1247_v42 }
  0x9f   :  { %644 = vmatmul.f32.gmra.mxu2 %v6137_v38  ;;  %763 = vmatmul.f32.gmra.mxu3 %v331_v33  ;;  %v6341_v63 = vand.u32 4294901760, %v135_v53  ;;  %v1242_v51 = vand.u32 4294901760, %v1241_v26  ;;  %v6358_v33 = vand.u32 4294901760, %v134_v18  ;;  %v1253_v26 = vsub.f32 %v6332_v21, %v10539_v10  ;;  %v6407_v38 = vld [vmem:[%s10515_s2] ss:$0 sm:$0xff] }
  0xa0   :  { %1048 = vmatpush.msra.mxu2 %v6325_v1  ;;  %1237 = vmatpush.msra.mxu3 %v1236_v32  ;;  %v6373_v32 = vand.u32 4294901760, %v133_v34 }
  0xa1   :  { %v6347_v3 = vpop.f32.mrf.mxu0  ;;  %v6368_v57 = vsub.f32 %v135_v53, %v6341_v63  ;;  %1495 = vmatpush.msra.mxu1 %v6294_v27  ;;  %v1254_v42 = vand.u32 4294901760, %v1253_v26  ;;  %v6376_v10 = vsub.f32 %v134_v18, %v6358_v33  ;;  %v1259_v53 = vsub.f32 %v6353_v52, %v10542_v56  ;;  %1380 = vmatpush.msra.mxu0 %v6332_v21 }
  0xa2   :  { %1050 = vmatpush.msra.mxu2 %v6341_v63  ;;  %1243 = vmatpush.msra.mxu3 %v1242_v51  ;;  %v6387_v26 = vsub.f32 %v133_v34, %v6373_v32 }
  0xa3   :  { %v1264_v12 = vand.u32 4294901760, %v6368_v57  ;;  %v1270_v51 = vand.u32 4294901760, %v6376_v10  ;;  %v1260_v61 = vand.u32 4294901760, %v1259_v53  ;;  %1383 = vmatpush.msra.mxu0 %v6353_v52  ;;  %1497 = vmatpush.msra.mxu1 %v6310_v4 }
  0xa4   :  { %878 = vmatmul.f32.gmra.mxu0 %v5945_v47  ;;  %1052 = vmatpush.msra.mxu2 %v6358_v33  ;;  %v1276_v34 = vand.u32 4294901760, %v6387_v26 }
  0xa5   :  { %1249 = vmatpush.msra.mxu3 %v1248_v5  ;;  %v1265_v56 = vsub.f32 %v6368_v57, %v1264_v12  ;;  %1386 = vmatpush.msra.mxu0 %v6368_v57 }
  0xa6   :  { %971 = vmatmul.f32.gmra.mxu1 %v5911_v2  ;;  %1054 = vmatpush.msra.mxu2 %v6373_v32  ;;  %v1271_v2 = vsub.f32 %v6376_v10, %v1270_v51  ;;  %v1277_v53 = vsub.f32 %v6387_v26, %v1276_v34 }
  0xa7   :  { %649 = vmatmul.f32.gmra.mxu2 %v5793_v19  ;;  %769 = vmatmul.f32.gmra.mxu3 %v339_v55  ;;  %v351_v18 = vpop.f32.mrf.mxu2  ;;  %v1266_v54 = vand.u32 4294901760, %v1265_v56 }
  0xa8   :  { %1255 = vmatpush.msra.mxu3 %v1254_v42  ;;  %v1272_v42 = vand.u32 4294901760, %v1271_v2  ;;  %1606 = vmatpush.msrb.mxu2 %v1186_v15  ;;  %v1278_v56 = vand.u32 4294901760, %v1277_v53 }
  0xa9   :  { %v6400_v5 = vpop.f32.mrf.mxu0  ;;  %1499 = vmatpush.msra.mxu1 %v6325_v1  ;;  %1389 = vmatpush.msra.mxu0 %v6376_v10 }
  0xaa   :  { %v6409_v55 = vpop.f32.mrf.mxu1  ;;  %1261 = vmatpush.msra.mxu3 %v1260_v61  ;;  %v352_v61 = vadd.f32 %v6407_v38, %v351_v18  ;;  %1610 = vmatpush.msrb.mxu2 %v1192_v30  ;;  %v10760_v30 = vand.u32 4294901760, %v5858_v6 }
  0xab   :  { %1501 = vmatpush.msra.mxu1 %v6341_v63  ;;  %1392 = vmatpush.msra.mxu0 %v6387_v26 }
  0xac   :  { %882 = vmatmul.f32.gmra.mxu0 %v5976_v39  ;;  %1267 = vmatpush.msra.mxu3 %v1266_v54  ;;  %v22_v54 = vld [vmem:[%s10513_s0 + $0x8] sm:$0xff] }
  0xad   :  { %1503 = vmatpush.msra.mxu1 %v6358_v33  ;;  %v6440_v18 = vand.u32 4294901760, %v22_v54 }
  0xae   :  { %975 = vmatmul.f32.gmra.mxu1 %v5945_v47  ;;  %1273 = vmatpush.msra.mxu3 %v1272_v42  ;;  %v10758_v42 = vand.u32 4294901760, %v6183_v31 }
  0xaf   :  { %654 = vmatmul.f32.gmra.mxu2 %v5858_v6  ;;  %775 = vmatmul.f32.gmra.mxu3 %v10757_v14  ;;  %v10762_v6 = vand.u32 4294901760, %v6239_v49  ;;  %v10765_v49 = vand.u32 4294901760, %v5898_v37 }
  0xb0   :  { %v359_v15 = vpop.f32.mrf.mxu2  ;;  %1279 = vmatpush.msra.mxu3 %v1278_v56  ;;  %1505 = vmatpush.msra.mxu1 %v6373_v32 }
  0xb1   :  { %v524_v2 = vpop.f32.mrf.mxu3  ;;  %v6430_v53 = vpop.f32.mrf.mxu0  ;;  %1614 = vmatpush.msrb.mxu2 %v10758_v42 }
  0xb2   :  { %1733 = vmatpush.msrb.mxu3 %v6126_v41  ;;  %v6434_v47 = vadd.f32 %v524_v2, %v352_v61  ;;  %v360_v41 = vadd.f32 %v6407_v38, %v359_v15 }
  0xb3   :  { %v6438_v19 = vpop.f32.mrf.mxu1  ;;  %1618 = vmatpush.msrb.mxu2 %v10759_v62 }
  0xb4   :  { %1735 = vmatpush.msrb.mxu3 %v6149_v17  ;;  %886 = vmatmul.f32.gmra.mxu0 %v6005_v13  ;;  %v6456_v17 = vsub.f32 %v22_v54, %v6440_v18 }
  0xb6   :  { %1737 = vmatpush.msrb.mxu3 %v6169_v8  ;;  %979 = vmatmul.f32.gmra.mxu1 %v5976_v39  ;;  %v28_v8 = vld [vmem:[%s10513_s0 + $0x38] sm:$0xff]  ;;  %v10761_v39 = vand.u32 4294901760, %v6222_v36  ;;  %v1057_v15 = vand.u32 4294901760, %v6456_v17 }
  0xb7   :  { %659 = vmatmul.f32.gmra.mxu2 %v5898_v37  ;;  %781 = vmatmul.f32.gmra.mxu3 %v10760_v30  ;;  %v6474_v54 = vand.u32 4294901760, %v28_v8 }
  0xb8   :  { %v367_v56 = vpop.f32.mrf.mxu2  ;;  %1739 = vmatpush.msrb.mxu3 %v6193_v45  ;;  %1622 = vmatpush.msrb.mxu2 %v10761_v39  ;;  %v10763_v45 = vand.u32 4294901760, %v6254_v20  ;;  %v1058_v2 = vsub.f32 %v6456_v17, %v1057_v15 }
  0xb9   :  { %v528_v31 = vpop.f32.mrf.mxu3  ;;  %v6464_v43 = vpop.f32.mrf.mxu0  ;;  %v368_v36 = vadd.f32 %v6407_v38, %v367_v56  ;;  %v6491_v20 = vsub.f32 %v28_v8, %v6474_v54 }
  0xba   :  { %v6466_v61 = vadd.f32 %v528_v31, %v360_v41  ;;  %1741 = vmatpush.msrb.mxu3 %v6214_v25  ;;  %1626 = vmatpush.msrb.mxu2 %v10762_v6  ;;  %v10764_v25 = vand.u32 4294901760, %v6270_v35  ;;  %v10767_v41 = vand.u32 4294901760, %v6300_v22  ;;  %v1059_v56 = vand.u32 4294901760, %v1058_v2 }
  0xbb   :  { %v6471_v14 = vpop.f32.mrf.mxu1  ;;  %v1065_v8 = vand.u32 4294901760, %v6491_v20  ;;  %v256_v22 = vadd.f32 %v6407_v38, %v6347_v3  ;;  %v10770_v31 = vand.u32 4294901760, %v5938_v29 }
  0xbc   :  { %890 = vmatmul.f32.gmra.mxu0 %v6035_v50  ;;  %1630 = vmatpush.msrb.mxu2 %v10763_v45 }
  0xbd   :  { %1743 = vmatpush.msrb.mxu3 %v6227_v7  ;;  %v10766_v7 = vand.u32 4294901760, %v6289_v28 }
  0xbe   :  { %983 = vmatmul.f32.gmra.mxu1 %v6005_v13  ;;  %1634 = vmatpush.msrb.mxu2 %v10764_v25  ;;  %v34_v13 = vld [vmem:[%s10513_s0 + $0x68] sm:$0xff] }
  0xbf   :  { %664 = vmatmul.f32.gmra.mxu2 %v5938_v29  ;;  %787 = vmatmul.f32.gmra.mxu3 %v10765_v49  ;;  %v6509_v28 = vand.u32 4294901760, %v34_v13  ;;  %v477_v29 = vadd.f32 %v6409_v55, %v256_v22 }
  0xc0   :  { %1638 = vmatpush.msrb.mxu2 %v10766_v7  ;;  %1745 = vmatpush.msrb.mxu3 %v6236_v16  ;;  %v10768_v16 = vand.u32 4294901760, %v6314_v44  ;;  %v1066_v44 = vsub.f32 %v6491_v20, %v1065_v8 }
  0xc1   :  { %v375_v35 = vpop.f32.mrf.mxu2  ;;  %v6499_v42 = vpop.f32.mrf.mxu0 }
  0xc2   :  { %v532_v37 = vpop.f32.mrf.mxu3  ;;  %1642 = vmatpush.msrb.mxu2 %v10767_v41  ;;  %1747 = vmatpush.msrb.mxu3 %v6250_v11  ;;  %v10769_v11 = vand.u32 4294901760, %v6332_v21  ;;  %v376_v39 = vadd.f32 %v6407_v38, %v375_v35  ;;  %v10771_v21 = vand.u32 4294901760, %v6353_v52  ;;  %v1067_v49 = vand.u32 4294901760, %v1066_v44 }
  0xc3   :  { %v6504_v62 = vadd.f32 %v532_v37, %v368_v36  ;;  %v6506_v30 = vpop.f32.mrf.mxu1 }
  0xc4   :  { %894 = vmatmul.f32.gmra.mxu0 %v6063_v48  ;;  %1646 = vmatpush.msrb.mxu2 %v10768_v16 }
  0xc5   :  { %1749 = vmatpush.msrb.mxu3 %v6263_v24  ;;  %v6527_v24 = vsub.f32 %v34_v13, %v6509_v28 }
  0xc6   :  { %987 = vmatmul.f32.gmra.mxu1 %v6035_v50  ;;  %1650 = vmatpush.msrb.mxu2 %v10769_v11  ;;  %v40_v50 = vld [vmem:[%s10513_s0 + $0x98] sm:$0xff] }
  0xc7   :  { %793 = vmatmul.f32.gmra.mxu3 %v10770_v31  ;;  %1060 = vmatmul.f32.vlgmr.msra.gmra.mxu2 %v1059_v56  ;;  %v1073_v52 = vand.u32 4294901760, %v6527_v24  ;;  %v6546_v2 = vand.u32 4294901760, %v40_v50 }
  0xc8   :  { %1654 = vmatpush.msrb.mxu2 %v10771_v21  ;;  %1751 = vmatpush.msrb.mxu3 %v6279_v23 }
  0xc9   :  { %v6535_v3 = vpop.f32.mrf.mxu0  ;;  %v1074_v23 = vsub.f32 %v6527_v24, %v1073_v52  ;;  %v6562_v10 = vsub.f32 %v40_v50, %v6546_v2  ;;  %v58_v50 = vld [vmem:[%s10513_s0 + $0x128] sm:$0xff] }
  0xca   :  { %v536_v6 = vpop.f32.mrf.mxu3  ;;  %v590_v45 = vpop.f32.mrf.mxu2  ;;  %1658 = vmatpush.msrb.mxu2 %v1264_v12  ;;  %1753 = vmatpush.msrb.mxu3 %v6294_v27  ;;  %v264_v12 = vadd.f32 %v6407_v38, %v6400_v5  ;;  %v46_v27 = vld [vmem:[%s10513_s0 + $0xc8] sm:$0xff] }
  0xcb   :  { %v6541_v25 = vadd.f32 %v536_v6, %v376_v39  ;;  %v6543_v36 = vpop.f32.mrf.mxu1  ;;  %v591_v57 = vadd.f32 %v590_v45, %v477_v29  ;;  %v1075_v55 = vand.u32 4294901760, %v1074_v23  ;;  %v1081_v13 = vand.u32 4294901760, %v6562_v10 }
  0xcc   :  { %898 = vmatmul.f32.gmra.mxu0 %v6086_v59  ;;  %1662 = vmatpush.msrb.mxu2 %v1270_v51  ;;  %v6577_v7 = vand.u32 4294901760, %v46_v27  ;;  %v280_v39 = vadd.f32 %v6407_v38, %v6464_v43  ;;  %v288_v23 = vadd.f32 %v6407_v38, %v6499_v42 }
  0xcd   :  { %1755 = vmatpush.msrb.mxu3 %v6310_v4  ;;  %v481_v4 = vadd.f32 %v6438_v19, %v264_v12  ;;  %v1082_v19 = vsub.f32 %v6562_v10, %v1081_v13 }
  0xce   :  { %991 = vmatmul.f32.gmra.mxu1 %v6063_v48  ;;  %1666 = vmatpush.msrb.mxu2 %v1276_v34  ;;  %v6590_v35 = vsub.f32 %v46_v27, %v6577_v7  ;;  %v489_v43 = vadd.f32 %v6506_v30, %v280_v39  ;;  %v493_v42 = vadd.f32 %v6543_v36, %v288_v23  ;;  %v70_v39 = vld [vmem:[%s10513_s0 + $0x188] sm:$0xff] }
  0xcf   :  { %1068 = vmatmul.f32.gmra.mxu2 %v1067_v49  ;;  %1281 = vmatmul.f32.vlgmr.msra.gmra.mxu3 %v6440_v18  ;;  %v1083_v16 = vand.u32 4294901760, %v1082_v19 }
  0xd0   :  { %1757 = vmatpush.msrb.mxu3 %v6325_v1  ;;  %v272_v1 = vadd.f32 %v6407_v38, %v6430_v53  ;;  %v10551_v22 = vand.u32 4294901760, %v6590_v35 }
  0xd1   :  { %v6568_v48 = vpop.f32.mrf.mxu0 }
  0xd2   :  { %v595_v51 = vpop.f32.mrf.mxu2  ;;  %v704_v26 = vpop.f32.mrf.mxu3  ;;  %1759 = vmatpush.msrb.mxu3 %v6341_v63  ;;  %v304_v23 = vadd.f32 %v6407_v38, %v6568_v48 }
  0xd3   :  { %v6572_v34 = vadd.f32 %v704_v26, %v591_v57  ;;  %v6574_v5 = vpop.f32.mrf.mxu1  ;;  %v596_v63 = vadd.f32 %v595_v51, %v481_v4  ;;  %v6627_v57 = vand.u32 4294901760, %v58_v50  ;;  %v64_v51 = vld [vmem:[%s10513_s0 + $0x158] sm:$0xff] }
  0xd4   :  { %902 = vmatmul.f32.gmra.mxu0 %v6105_v40  ;;  %1761 = vmatpush.msrb.mxu3 %v6358_v33  ;;  %v52_v33 = vld [vmem:[%s10513_s0 + $0xf8] sm:$0xff] }
  0xd5   :  { %v6603_v11 = vand.u32 4294901760, %v52_v33  ;;  %v6638_v4 = vsub.f32 %v58_v50, %v6627_v57 }
  0xd6   :  { %995 = vmatmul.f32.gmra.mxu1 %v6086_v59  ;;  %1763 = vmatpush.msrb.mxu3 %v6373_v32  ;;  %v485_v59 = vadd.f32 %v6471_v14, %v272_v1  ;;  %v1090_v14 = vsub.f32 %v6590_v35, %v10551_v22 }
  0xd7   :  { %1076 = vmatmul.f32.gmra.mxu2 %v1075_v55  ;;  %1285 = vmatmul.f32.gmra.mxu3 %v6474_v54  ;;  %v6614_v44 = vsub.f32 %v52_v33, %v6603_v11  ;;  %v10549_v33 = vand.u32 4294901760, %v6638_v4 }
  0xd8   :  { %v1091_v49 = vand.u32 4294901760, %v1090_v14 }
  0xd9   :  { %v6595_v53 = vpop.f32.mrf.mxu0  ;;  %v10550_v12 = vand.u32 4294901760, %v6614_v44  ;;  %v1106_v36 = vsub.f32 %v6638_v4, %v10549_v33 }
  0xda   :  { %v600_v32 = vpop.f32.mrf.mxu2  ;;  %v710_v37 = vpop.f32.mrf.mxu3 }
  0xdb   :  { %v6598_v41 = vadd.f32 %v710_v37, %v596_v63  ;;  %v6600_v56 = vpop.f32.mrf.mxu1  ;;  %v601_v31 = vadd.f32 %v600_v32, %v485_v59  ;;  %v1098_v30 = vsub.f32 %v6614_v44, %v10550_v12  ;;  %v6651_v59 = vand.u32 4294901760, %v64_v51 }
  0xdc   :  { %906 = vmatmul.f32.gmra.mxu0 %v6124_v9  ;;  %v296_v32 = vadd.f32 %v6407_v38, %v6535_v3  ;;  %v501_v48 = vadd.f32 %v6600_v56, %v304_v23 }
  0xdd   :  { %v1099_v19 = vand.u32 4294901760, %v1098_v30 }
  0xde   :  { %999 = vmatmul.f32.gmra.mxu1 %v6105_v40  ;;  %v497_v3 = vadd.f32 %v6574_v5, %v296_v32 }
  0xdf   :  { %1084 = vmatmul.f32.gmra.mxu2 %v1083_v16  ;;  %1289 = vmatmul.f32.gmra.mxu3 %v6509_v28  ;;  %v6662_v16 = vsub.f32 %v64_v51, %v6651_v59  ;;  %v76_v51 = vld [vmem:[%s10513_s0 + $0x1b8] sm:$0xff] }
  0xe1   :  { %v6619_v21 = vpop.f32.mrf.mxu0 }
  0xe2   :  { %v605_v40 = vpop.f32.mrf.mxu2  ;;  %v716_v29 = vpop.f32.mrf.mxu3 }
  0xe3   :  { %v6622_v6 = vadd.f32 %v716_v29, %v601_v31  ;;  %v6624_v45 = vpop.f32.mrf.mxu1  ;;  %v606_v27 = vadd.f32 %v605_v40, %v489_v43  ;;  %v1107_v40 = vand.u32 4294901760, %v1106_v36  ;;  %v10547_v29 = vand.u32 4294901760, %v6662_v16 }
  0xe4   :  { %910 = vmatmul.f32.gmra.mxu0 %v5757_v58  ;;  %v6699_v36 = vand.u32 4294901760, %v76_v51 }
  0xe5   :  { %v1114_v5 = vsub.f32 %v6662_v16, %v10547_v29 }
  0xe6   :  { %1003 = vmatmul.f32.gmra.mxu1 %v6124_v9  ;;  %10773 = vst [vmem:[#allocation6_spill] sm:$0xff] %v6699_v36 }
  0xe7   :  { %1092 = vmatmul.f32.gmra.mxu2 %v1091_v49  ;;  %1293 = vmatmul.f32.gmra.mxu3 %v6546_v2  ;;  %v6675_v49 = vand.u32 4294901760, %v70_v39  ;;  %v1115_v32 = vand.u32 4294901760, %v1114_v5 }
  0xe9   :  { %v6643_v26 = vpop.f32.mrf.mxu0  ;;  %10772 = vst [vmem:[#allocation5_spill] sm:$0xff] %v6675_v49  ;;  %v6686_v30 = vsub.f32 %v70_v39, %v6675_v49  ;;  %v312_v39 = vadd.f32 %v6407_v38, %v6595_v53 }
  0xea   :  { %v610_v9 = vpop.f32.mrf.mxu2  ;;  %v722_v55 = vpop.f32.mrf.mxu3 }
  0xeb   :  { %v6646_v1 = vadd.f32 %v722_v55, %v606_v27  ;;  %v6648_v63 = vpop.f32.mrf.mxu1  ;;  %v611_v37 = vadd.f32 %v610_v9, %v493_v42  ;;  %v505_v53 = vadd.f32 %v6624_v45, %v312_v39 }
  0xec   :  { %914 = vmatmul.f32.gmra.mxu0 %v5831_v60 }
  0xee   :  { %1007 = vmatmul.f32.gmra.mxu1 %v5757_v58 }
  0xef   :  { %1100 = vmatmul.f32.gmra.mxu2 %v1099_v19  ;;  %1297 = vmatmul.f32.gmra.mxu3 %v6577_v7 }
  0xf1   :  { %v6667_v31 = vpop.f32.mrf.mxu0 }
  0xf2   :  { %v615_v58 = vpop.f32.mrf.mxu2  ;;  %v728_v14 = vpop.f32.mrf.mxu3 }
  0xf3   :  { %v6670_v50 = vadd.f32 %v728_v14, %v611_v37  ;;  %v6672_v43 = vpop.f32.mrf.mxu1  ;;  %v616_v27 = vadd.f32 %v615_v58, %v497_v3  ;;  %v10545_v37 = vand.u32 4294901760, %v6686_v30  ;;  %v6710_v58 = vsub.f32 %v76_v51, %v6699_v36  ;;  %v82_v14 = vld [vmem:[%s10513_s0 + $0x1e8] sm:$0xff] }
  0xf4   :  { %918 = vmatmul.f32.gmra.mxu0 %v5881_v46  ;;  %v320_v51 = vadd.f32 %v6407_v38, %v6619_v21 }
  0xf5   :  { %v1122_v56 = vsub.f32 %v6686_v30, %v10545_v37 }
  0xf6   :  { %1011 = vmatmul.f32.gmra.mxu1 %v5831_v60  ;;  %v509_v21 = vadd.f32 %v6648_v63, %v320_v51 }
  0xf7   :  { %1108 = vmatmul.f32.gmra.mxu2 %v1107_v40  ;;  %1301 = vmatmul.f32.gmra.mxu3 %v6603_v11 }
  0xf9   :  { %v6691_v42 = vpop.f32.mrf.mxu0 }
  0xfa   :  { %v620_v60 = vpop.f32.mrf.mxu2  ;;  %v734_v9 = vpop.f32.mrf.mxu3  ;;  %v344_v12 = vadd.f32 %v6407_v38, %v6691_v42 }
  0xfb   :  { %v6694_v55 = vadd.f32 %v734_v9, %v616_v27  ;;  %v6696_v19 = vpop.f32.mrf.mxu1  ;;  %v621_v3 = vadd.f32 %v620_v60, %v501_v48  ;;  %v1123_v48 = vand.u32 4294901760, %v1122_v56  ;;  %v10544_v60 = vand.u32 4294901760, %v6710_v58 }
  0xfc   :  { %922 = vmatmul.f32.gmra.mxu0 %v5917_v0  ;;  %v6723_v9 = vand.u32 4294901760, %v82_v14 }
  0xfd   :  { %v1130_v45 = vsub.f32 %v6710_v58, %v10544_v60 }
  0xfe   :  { %1015 = vmatmul.f32.gmra.mxu1 %v5881_v46  ;;  %10774 = vst [vmem:[#allocation7_spill] sm:$0xff] %v6723_v9  ;;  %v6734_v39 = vsub.f32 %v82_v14, %v6723_v9  ;;  %v328_v14 = vadd.f32 %v6407_v38, %v6643_v26 }
  0xff   :  { %1116 = vmatmul.f32.gmra.mxu2 %v1115_v32  ;;  %1305 = vmatmul.f32.gmra.mxu3 %v6627_v57 }
 0x100   :  { %v10546_v60 = vand.u32 4294901760, %v6734_v39 }
 0x101   :  { %v6715_v40 = vpop.f32.mrf.mxu0 }
 0x102   :  { %v625_v46 = vpop.f32.mrf.mxu2  ;;  %v740_v23 = vpop.f32.mrf.mxu3  ;;  %v1138_v51 = vsub.f32 %v6734_v39, %v10546_v60 }
 0x103   :  { %v6718_v27 = vadd.f32 %v740_v23, %v621_v3  ;;  %v6720_v5 = vpop.f32.mrf.mxu1  ;;  %v626_v32 = vadd.f32 %v625_v46, %v505_v53  ;;  %v88_v3 = vld [vmem:[%s10513_s0 + $0x218] sm:$0xff] }
 0x104   :  { %1395 = vmatmul.f32.vlgmr.msra.gmra.mxu0 %v6456_v17  ;;  %v6747_v37 = vand.u32 4294901760, %v88_v3  ;;  %v513_v17 = vadd.f32 %v6672_v43, %v328_v14 }
 0x106   :  { %1019 = vmatmul.f32.gmra.mxu1 %v5917_v0  ;;  %10775 = vst [vmem:[#allocation8_spill] sm:$0xff] %v6747_v37 }
 0x107   :  { %1124 = vmatmul.f32.gmra.mxu2 %v1123_v48  ;;  %1309 = vmatmul.f32.gmra.mxu3 %v6651_v59  ;;  %v1131_v48 = vand.u32 4294901760, %v1130_v45  ;;  %v94_v45 = vld [vmem:[%s10513_s0 + $0x248] sm:$0xff] }
 0x108   :  { %v6772_v29 = vand.u32 4294901760, %v94_v45 }
 0x109   :  { %v6739_v56 = vpop.f32.mrf.mxu0 }
 0x10a   :  { %v630_v0 = vpop.f32.mrf.mxu2  ;;  %v746_v53 = vpop.f32.mrf.mxu3  ;;  %10777 = vst [vmem:[#allocation10_spill] sm:$0xff] %v6772_v29 }
 0x10b   :  { %v6742_v46 = vadd.f32 %v746_v53, %v626_v32  ;;  %v6744_v23 = vpop.f32.mrf.mxu1  ;;  %v631_v63 = vadd.f32 %v630_v0, %v509_v21  ;;  %v6759_v32 = vsub.f32 %v88_v3, %v6747_v37  ;;  %v336_v3 = vadd.f32 %v6407_v38, %v6667_v31 }
 0x10c   :  { %1400 = vmatmul.f32.gmra.mxu0 %v6491_v20  ;;  %v521_v38 = vadd.f32 %v6720_v5, %v344_v12  ;;  %v112_v12 = vld [vmem:[%s10513_s0 + $0x2d8] sm:$0xff] }
 0x10d   :  { %v10548_v60 = vand.u32 4294901760, %v6759_v32 }
 0x10e   :  { %1509 = vmatmul.f32.vlgmr.msra.gmra.mxu1 %v1057_v15 }
 0x10f   :  { %1132 = vmatmul.f32.gmra.mxu2 %v1131_v48  ;;  %1313 = vmatmul.f32.gmra.mxu3 %v6675_v49  ;;  %v1139_v48 = vand.u32 4294901760, %v1138_v51  ;;  %v1146_v14 = vsub.f32 %v6759_v32, %v10548_v60  ;;  %v100_v51 = vld [vmem:[%s10513_s0 + $0x278] sm:$0xff] }
 0x111   :  { %v6764_v53 = vpop.f32.mrf.mxu0  ;;  %v1147_v60 = vand.u32 4294901760, %v1146_v14 }
 0x112   :  { %v635_v15 = vpop.f32.mrf.mxu2  ;;  %v752_v26 = vpop.f32.mrf.mxu3 }
 0x113   :  { %v6767_v21 = vadd.f32 %v752_v26, %v631_v63  ;;  %v6769_v0 = vpop.f32.mrf.mxu1  ;;  %v636_v43 = vadd.f32 %v635_v15, %v513_v17  ;;  %v6784_v63 = vsub.f32 %v94_v45, %v6772_v29  ;;  %v517_v17 = vadd.f32 %v6696_v19, %v336_v3  ;;  %v106_v3 = vld [vmem:[%s10513_s0 + $0x2a8] sm:$0xff] }
 0x114   :  { %1405 = vmatmul.f32.gmra.mxu0 %v6527_v24 }
 0x115   :  { %10776 = vst [vmem:[#allocation9_spill] sm:$0xff] %v6767_v21  ;;  %v10552_v45 = vand.u32 4294901760, %v6784_v63 }
 0x116   :  { %1515 = vmatmul.f32.gmra.mxu1 %v1065_v8  ;;  %v6791_v8 = vand.u32 4294901760, %v100_v51 }
 0x117   :  { %1140 = vmatmul.f32.gmra.mxu2 %v1139_v48  ;;  %1317 = vmatmul.f32.gmra.mxu3 %v6699_v36  ;;  %v1154_v19 = vsub.f32 %v6784_v63, %v10552_v45 }
 0x118   :  { %10778 = vst [vmem:[#allocation11_spill] sm:$0xff] %v6791_v8  ;;  %v6803_v33 = vsub.f32 %v100_v51, %v6791_v8 }
 0x119   :  { %v6789_v26 = vpop.f32.mrf.mxu0  ;;  %v1155_v51 = vand.u32 4294901760, %v1154_v19 }
 0x11a   :  { %v640_v31 = vpop.f32.mrf.mxu2  ;;  %v758_v20 = vpop.f32.mrf.mxu3  ;;  %v10553_v14 = vand.u32 4294901760, %v6803_v33 }
 0x11b   :  { %v6794_v15 = vadd.f32 %v758_v20, %v636_v43  ;;  %v6796_v48 = vpop.f32.mrf.mxu1  ;;  %v641_v22 = vadd.f32 %v640_v31, %v517_v17  ;;  %v6822_v31 = vand.u32 4294901760, %v106_v3 }
 0x11c   :  { %1410 = vmatmul.f32.gmra.mxu0 %v6562_v10  ;;  %v1162_v20 = vsub.f32 %v6803_v33, %v10553_v14 }
 0x11d   :  { %10779 = vst [vmem:[#allocation12_spill] sm:$0xff] %v6794_v15  ;;  %v157_v15 = vld [vmem:[%s10514_s1 + $0x140] sm:$0xff] }
 0x11e   :  { %1521 = vmatmul.f32.gmra.mxu1 %v1073_v52  ;;  %10781 = vst [vmem:[#allocation14_spill] sm:$0xff] %v6822_v31 }
 0x11f   :  { %1148 = vmatmul.f32.gmra.mxu2 %v1147_v60  ;;  %1321 = vmatmul.f32.gmra.mxu3 %v6723_v9  ;;  %v868_v9 = vadd.f32 %v6739_v56, %v6598_v41 }
 0x121   :  { %v6814_v24 = vpop.f32.mrf.mxu0  ;;  %v965_v56 = vadd.f32 %v6769_v0, %v868_v9 }
 0x122   :  { %v645_v52 = vpop.f32.mrf.mxu2  ;;  %v764_v43 = vpop.f32.mrf.mxu3 }
 0x123   :  { %v6818_v42 = vadd.f32 %v764_v43, %v641_v22  ;;  %v6820_v60 = vpop.f32.mrf.mxu1  ;;  %v646_v17 = vadd.f32 %v645_v52, %v521_v38  ;;  %v6832_v22 = vsub.f32 %v106_v3, %v6822_v31  ;;  %v10784_v3 = vand.u32 4294901760, %v6590_v35 }
 0x124   :  { %1415 = vmatmul.f32.gmra.mxu0 %v6590_v35 }
 0x125   :  { %10780 = vst [vmem:[#allocation13_spill] sm:$0xff] %v6818_v42  ;;  %v10556_v38 = vand.u32 4294901760, %v6832_v22 }
 0x126   :  { %1527 = vmatmul.f32.gmra.mxu1 %v1081_v13  ;;  %v1163_v13 = vand.u32 4294901760, %v1162_v20 }
 0x127   :  { %1156 = vmatmul.f32.gmra.mxu2 %v1155_v51  ;;  %1325 = vmatmul.f32.gmra.mxu3 %v6747_v37  ;;  %v6845_v51 = vand.u32 4294901760, %v112_v12 }
 0x129   :  { %v6837_v5 = vpop.f32.mrf.mxu0  ;;  %10783 = vst [vmem:[#allocation16_spill] sm:$0xff] %v6845_v51  ;;  %v6855_v20 = vsub.f32 %v112_v12, %v6845_v51 }
 0x12a   :  { %v650_v19 = vpop.f32.mrf.mxu2  ;;  %v770_v10 = vpop.f32.mrf.mxu3 }
 0x12b   :  { %v651_v43 = vadd.f32 %v650_v19, %v6434_v47  ;;  %v6840_v45 = vadd.f32 %v770_v10, %v646_v17  ;;  %v6842_v52 = vpop.f32.mrf.mxu1  ;;  %v1170_v47 = vsub.f32 %v6832_v22, %v10556_v38  ;;  %v10786_v38 = vand.u32 4294901760, %v6614_v44 }
 0x12c   :  { %1420 = vmatmul.f32.gmra.mxu0 %v6614_v44  ;;  %v10788_v44 = vand.u32 4294901760, %v6638_v4 }
 0x12d   :  { %10782 = vst [vmem:[#allocation15_spill] sm:$0xff] %v6840_v45 }
 0x12e   :  { %1533 = vmatmul.f32.gmra.mxu1 %v10784_v3  ;;  %v10559_v3 = vand.u32 4294901760, %v6855_v20 }
 0x12f   :  { %1164 = vmatmul.f32.gmra.mxu2 %v1163_v13  ;;  %1329 = vmatmul.f32.gmra.mxu3 %v6772_v29  ;;  %v1171_v13 = vand.u32 4294901760, %v1170_v47 }
 0x130   :  { %v1178_v12 = vsub.f32 %v6855_v20, %v10559_v3 }
 0x131   :  { %v6857_v17 = vpop.f32.mrf.mxu0 }
 0x132   :  { %v655_v19 = vpop.f32.mrf.mxu2  ;;  %v776_v10 = vpop.f32.mrf.mxu3 }
 0x133   :  { %v656_v14 = vadd.f32 %v655_v19, %v6466_v61  ;;  %v6860_v37 = vadd.f32 %v776_v10, %v651_v43  ;;  %v6862_v35 = vpop.f32.mrf.mxu1 }
 0x134   :  { %1425 = vmatmul.f32.gmra.mxu0 %v6638_v4  ;;  %v164_v4 = vld [vmem:[%s10514_s1 + $0x178] sm:$0xff] }
 0x135   :  { %10785 = vst [vmem:[#allocation17_spill] sm:$0xff] %v6860_v37  ;;  %v1179_v37 = vand.u32 4294901760, %v1178_v12  ;;  %v6896_v12 = vand.u32 4294901760, %v164_v4 }
 0x136   :  { %1539 = vmatmul.f32.gmra.mxu1 %v10786_v38 }
 0x137   :  { %1172 = vmatmul.f32.gmra.mxu2 %v1171_v13  ;;  %1333 = vmatmul.f32.gmra.mxu3 %v6791_v8 }
 0x138   :  { %1830 = vmatpush.msrb.mxu0 %v6896_v12  ;;  %2281 = vmatpush.msra.mxu3 %v6896_v12 }
 0x139   :  { %v6872_v61 = vpop.f32.mrf.mxu0 }
 0x13a   :  { %v660_v43 = vpop.f32.mrf.mxu2  ;;  %v782_v19 = vpop.f32.mrf.mxu3 }
 0x13b   :  { %v661_v47 = vadd.f32 %v660_v43, %v6504_v62  ;;  %v6875_v10 = vadd.f32 %v782_v19, %v656_v14  ;;  %v6877_v29 = vpop.f32.mrf.mxu1  ;;  %v864_v43 = vadd.f32 %v6715_v40, %v6572_v34  ;;  %v162_v40 = vld [vmem:[%s10514_s1 + $0x168] sm:$0xff] }
 0x13c   :  { %1430 = vmatmul.f32.gmra.mxu0 %v6662_v16 }
 0x13d   :  { %10787 = vst [vmem:[#allocation18_spill] sm:$0xff] %v6875_v10  ;;  %v961_v19 = vadd.f32 %v6744_v23, %v864_v43 }
 0x13e   :  { %1545 = vmatmul.f32.gmra.mxu1 %v10788_v44 }
 0x13f   :  { %1180 = vmatmul.f32.gmra.mxu2 %v1179_v37  ;;  %1337 = vmatmul.f32.gmra.mxu3 %v6822_v31  ;;  %v10791_v37 = vand.u32 4294901760, %v6662_v16  ;;  %v161_v31 = vld [vmem:[%s10514_s1 + $0x160] sm:$0xff] }
 0x141   :  { %v6883_v38 = vpop.f32.mrf.mxu0 }
 0x142   :  { %10789 = vst [vmem:[#allocation19_spill] sm:$0xff] %v6883_v38  ;;  %v665_v13 = vpop.f32.mrf.mxu2  ;;  %v788_v3 = vpop.f32.mrf.mxu3  ;;  %v153_v38 = vld [vmem:[%s10514_s1 + $0x120] sm:$0xff] }
 0x143   :  { %v666_v8 = vadd.f32 %v665_v13, %v6541_v25  ;;  %v6886_v62 = vadd.f32 %v788_v3, %v661_v47  ;;  %v6888_v14 = vpop.f32.mrf.mxu1  ;;  %v163_v25 = vld [vmem:[%s10514_s1 + $0x170] sm:$0xff]  ;;  %v6907_v3 = vsub.f32 %v164_v4, %v6896_v12  ;;  %v6919_v13 = vand.u32 4294901760, %v162_v40 }
 0x144   :  { %1435 = vmatmul.f32.gmra.mxu0 %v6686_v30  ;;  %v6909_v16 = vand.u32 4294901760, %v163_v25 }
 0x145   :  { %10790 = vst [vmem:[#allocation20_spill] sm:$0xff] %v6886_v62  ;;  %v10566_v4 = vand.u32 4294901760, %v6907_v3  ;;  %2153 = vmatpush.msra.mxu2 %v6907_v3  ;;  %v6935_v62 = vand.u32 4294901760, %v161_v31 }
 0x146   :  { %1551 = vmatmul.f32.gmra.mxu1 %v10791_v37  ;;  %1832 = vmatpush.msrb.mxu0 %v6909_v16  ;;  %v6923_v37 = vsub.f32 %v163_v25, %v6909_v16 }
 0x147   :  { %1341 = vmatmul.f32.gmra.mxu3 %v6845_v51  ;;  %1668 = vmatmul.f32.vlgmr.msrb.gmra.mxu2 %v6440_v18  ;;  %v1993_v25 = vsub.f32 %v6907_v3, %v10566_v4  ;;  %v6958_v45 = vsub.f32 %v161_v31, %v6935_v62 }
 0x148   :  { %2283 = vmatpush.msra.mxu3 %v6909_v16  ;;  %2156 = vmatpush.msra.mxu2 %v6923_v37 }
 0x149   :  { %v6913_v34 = vpop.f32.mrf.mxu0  ;;  %1834 = vmatpush.msrb.mxu0 %v6919_v13  ;;  %v1994_v4 = vand.u32 4294901760, %v1993_v25  ;;  %v10797_v0 = vand.u32 4294901760, %v6958_v45 }
 0x14a   :  { %10792 = vst [vmem:[#allocation21_spill] sm:$0xff] %v6913_v34  ;;  %v794_v47 = vpop.f32.mrf.mxu3  ;;  %v1061_v44 = vpop.f32.mrf.mxu2  ;;  %2285 = vmatpush.msra.mxu3 %v6919_v13 }
 0x14b   :  { %v6926_v23 = vadd.f32 %v794_v47, %v666_v8  ;;  %v1062_v43 = vadd.f32 %v1061_v44, %v961_v19  ;;  %v6928_v51 = vpop.f32.mrf.mxu1  ;;  %v10569_v8 = vand.u32 4294901760, %v6923_v37  ;;  %v160_v19 = vld [vmem:[%s10514_s1 + $0x158] sm:$0xff]  ;;  %v6947_v47 = vsub.f32 %v162_v40, %v6919_v13  ;;  %1836 = vmatpush.msrb.mxu0 %v6935_v62  ;;  %1995 = vmatpush.msrb.mxu1 %v1994_v4 }
 0x14c   :  { %10794 = vst [vmem:[#allocation23_spill] sm:$0xff] %v6928_v51  ;;  %1440 = vmatmul.f32.gmra.mxu0 %v6710_v58  ;;  %v10795_v44 = vand.u32 4294901760, %v6686_v30  ;;  %v159_v30 = vld [vmem:[%s10514_s1 + $0x150] sm:$0xff]  ;;  %2287 = vmatpush.msra.mxu3 %v6935_v62 }
 0x14d   :  { %10793 = vst [vmem:[#allocation22_spill] sm:$0xff] %v6926_v23  ;;  %v6952_v23 = vand.u32 4294901760, %v160_v19  ;;  %v1999_v10 = vsub.f32 %v6923_v37, %v10569_v8  ;;  %v10572_v40 = vand.u32 4294901760, %v6947_v47  ;;  %v6969_v25 = vand.u32 4294901760, %v159_v30  ;;  %v158_v8 = vld [vmem:[%s10514_s1 + $0x148] sm:$0xff]  ;;  %2159 = vmatpush.msra.mxu2 %v6947_v47 }
 0x14e   :  { %1557 = vmatmul.f32.gmra.mxu1 %v10795_v44  ;;  %v6987_v9 = vand.u32 4294901760, %v158_v8 }
 0x14f   :  { %1672 = vmatmul.f32.gmra.mxu2 %v6474_v54  ;;  %1765 = vmatmul.f32.vlgmr.msrb.gmra.mxu3 %v6440_v18  ;;  %v2000_v31 = vand.u32 4294901760, %v1999_v10  ;;  %v6973_v41 = vsub.f32 %v160_v19, %v6952_v23  ;;  %v2005_v4 = vsub.f32 %v6947_v47, %v10572_v40  ;;  %v2011_v19 = vsub.f32 %v6958_v45, %v10797_v0 }
 0x150   :  { %1838 = vmatpush.msrb.mxu0 %v6952_v23  ;;  %2162 = vmatpush.msra.mxu2 %v6958_v45  ;;  %v7006_v0 = vand.u32 4294901760, %v157_v15 }
 0x151   :  { %v6976_v18 = vpop.f32.mrf.mxu0  ;;  %2001 = vmatpush.msrb.mxu1 %v2000_v31  ;;  %v2006_v34 = vand.u32 4294901760, %v2005_v4  ;;  %v7001_v31 = vsub.f32 %v159_v30, %v6969_v25  ;;  %2289 = vmatpush.msra.mxu3 %v6952_v23  ;;  %v156_v30 = vld [vmem:[%s10514_s1 + $0x138] sm:$0xff]  ;;  %v7017_v4 = vsub.f32 %v158_v8, %v6987_v9 }
 0x152   :  { %10796 = vst [vmem:[#allocation24_spill] sm:$0xff] %v6976_v18  ;;  %v1069_v10 = vpop.f32.mrf.mxu2  ;;  %v1282_v44 = vpop.f32.mrf.mxu3  ;;  %v10573_v18 = vand.u32 4294901760, %v6973_v41  ;;  %1840 = vmatpush.msrb.mxu0 %v6969_v25  ;;  %2165 = vmatpush.msra.mxu2 %v6973_v41 }
 0x153   :  { %v1070_v42 = vadd.f32 %v1069_v10, %v965_v56  ;;  %v6993_v36 = vadd.f32 %v1282_v44, %v1062_v43  ;;  %v6995_v40 = vpop.f32.mrf.mxu1  ;;  %10800 = vst [vmem:[#allocation27_spill] sm:$0xff] %v7006_v0  ;;  %v2012_v43 = vand.u32 4294901760, %v2011_v19  ;;  %2007 = vmatpush.msrb.mxu1 %v2006_v34  ;;  %v10574_v56 = vand.u32 4294901760, %v7001_v31  ;;  %2291 = vmatpush.msra.mxu3 %v6969_v25 }
 0x154   :  { %10799 = vst [vmem:[#allocation26_spill] sm:$0xff] %v6995_v40  ;;  %1445 = vmatmul.f32.gmra.mxu0 %v6734_v39  ;;  %v2017_v44 = vsub.f32 %v6973_v41, %v10573_v18  ;;  %v10801_v10 = vand.u32 4294901760, %v6710_v58  ;;  %v7021_v19 = vand.u32 4294901760, %v156_v30  ;;  %v7024_v18 = vsub.f32 %v157_v15, %v7006_v0  ;;  %v155_v58 = vld [vmem:[%s10514_s1 + $0x130] sm:$0xff]  ;;  %2168 = vmatpush.msra.mxu2 %v7001_v31 }
 0x155   :  { %10798 = vst [vmem:[#allocation25_spill] sm:$0xff] %v6993_v36  ;;  %v872_v34 = vadd.f32 %v6764_v53, %v6622_v6  ;;  %v2023_v8 = vsub.f32 %v7001_v31, %v10574_v56  ;;  %v10577_v15 = vand.u32 4294901760, %v7017_v4  ;;  %1842 = vmatpush.msrb.mxu0 %v6987_v9  ;;  %2013 = vmatpush.msrb.mxu1 %v2012_v43  ;;  %v154_v56 = vld [vmem:[%s10514_s1 + $0x128] sm:$0xff] }
 0x156   :  { %1563 = vmatmul.f32.gmra.mxu1 %v10801_v10  ;;  %10802 = vst [vmem:[#allocation28_spill] sm:$0xff] %v7021_v19  ;;  %v2018_v36 = vand.u32 4294901760, %v2017_v44  ;;  %v7039_v44 = vand.u32 4294901760, %v155_v58  ;;  %v7043_v53 = vsub.f32 %v156_v30, %v7021_v19  ;;  %2171 = vmatpush.msra.mxu2 %v7017_v4 }
 0x157   :  { %1676 = vmatmul.f32.gmra.mxu2 %v6509_v28  ;;  %1769 = vmatmul.f32.gmra.mxu3 %v6474_v54  ;;  %v969_v54 = vadd.f32 %v6796_v48, %v872_v34  ;;  %v2024_v40 = vand.u32 4294901760, %v2023_v8  ;;  %v2029_v43 = vsub.f32 %v7017_v4, %v10577_v15  ;;  %v7057_v48 = vand.u32 4294901760, %v154_v56 }
 0x158   :  { %1844 = vmatpush.msrb.mxu0 %v7006_v0  ;;  %2019 = vmatpush.msrb.mxu1 %v2018_v36  ;;  %v10804_v34 = vand.u32 4294901760, %v7024_v18  ;;  %v7071_v21 = vsub.f32 %v155_v58, %v7039_v44  ;;  %v152_v58 = vld [vmem:[%s10514_s1 + $0x118] sm:$0xff] }
 0x159   :  { %v7046_v10 = vpop.f32.mrf.mxu0  ;;  %2293 = vmatpush.msra.mxu3 %v6987_v9  ;;  %v2030_v36 = vand.u32 4294901760, %v2029_v43  ;;  %2174 = vmatpush.msra.mxu2 %v7024_v18 }
 0x15a   :  { %10803 = vst [vmem:[#allocation29_spill] sm:$0xff] %v7046_v10  ;;  %v1077_v6 = vpop.f32.mrf.mxu2  ;;  %v1286_v30 = vpop.f32.mrf.mxu3  ;;  %v2035_v8 = vsub.f32 %v7024_v18, %v10804_v34  ;;  %v10578_v10 = vand.u32 4294901760, %v7043_v53  ;;  %2025 = vmatpush.msrb.mxu1 %v2024_v40  ;;  %1846 = vmatpush.msrb.mxu0 %v7021_v19  ;;  %v10807_v40 = vand.u32 4294901760, %v6734_v39  ;;  %v7092_v34 = vand.u32 4294901760, %v152_v58  ;;  %v151_v39 = vld [vmem:[%s10514_s1 + $0x110] sm:$0xff] }
 0x15b   :  { %v1078_v51 = vadd.f32 %v1077_v6, %v969_v54  ;;  %v7063_v49 = vadd.f32 %v1286_v30, %v1070_v42  ;;  %v7065_v15 = vpop.f32.mrf.mxu1  ;;  %v7076_v6 = vand.u32 4294901760, %v153_v38  ;;  %v10579_v54 = vand.u32 4294901760, %v7071_v21  ;;  %2295 = vmatpush.msra.mxu3 %v7006_v0  ;;  %2177 = vmatpush.msra.mxu2 %v7043_v53 }
 0x15c   :  { %10806 = vst [vmem:[#allocation31_spill] sm:$0xff] %v7065_v15  ;;  %1450 = vmatmul.f32.gmra.mxu0 %v6759_v32  ;;  %v2041_v42 = vsub.f32 %v7043_v53, %v10578_v10  ;;  %v7087_v30 = vsub.f32 %v154_v56, %v7057_v48  ;;  %v2036_v43 = vand.u32 4294901760, %v2035_v8  ;;  %2031 = vmatpush.msrb.mxu1 %v2030_v36  ;;  %v7117_v15 = vand.u32 4294901760, %v151_v39  ;;  %v150_v36 = vld [vmem:[%s10514_s1 + $0x108] sm:$0xff] }
 0x15d   :  { %10805 = vst [vmem:[#allocation30_spill] sm:$0xff] %v7063_v49  ;;  %v7095_v10 = vsub.f32 %v153_v38, %v7076_v6  ;;  %v876_v49 = vadd.f32 %v6789_v26, %v6646_v1  ;;  %1848 = vmatpush.msrb.mxu0 %v7039_v44  ;;  %v2047_v8 = vsub.f32 %v7071_v21, %v10579_v54 }
 0x15e   :  { %1569 = vmatmul.f32.gmra.mxu1 %v10807_v40  ;;  %v10582_v56 = vand.u32 4294901760, %v7087_v30  ;;  %v2042_v38 = vand.u32 4294901760, %v2041_v42  ;;  %v7112_v26 = vsub.f32 %v152_v58, %v7092_v34  ;;  %2297 = vmatpush.msra.mxu3 %v7021_v19  ;;  %v7125_v58 = vand.u32 4294901760, %v150_v36  ;;  %v149_v19 = vld [vmem:[%s10514_s1 + $0x100] sm:$0xff] }
 0x15f   :  { %1680 = vmatmul.f32.gmra.mxu2 %v6546_v2  ;;  %1773 = vmatmul.f32.gmra.mxu3 %v6509_v28  ;;  %v973_v28 = vadd.f32 %v6820_v60, %v876_v49  ;;  %v7140_v0 = vand.u32 4294901760, %v149_v19 }
 0x160   :  { %1850 = vmatpush.msrb.mxu0 %v7057_v48  ;;  %2037 = vmatpush.msrb.mxu1 %v2036_v43  ;;  %v2053_v49 = vsub.f32 %v7087_v30, %v10582_v56  ;;  %v2048_v43 = vand.u32 4294901760, %v2047_v8  ;;  %v7151_v56 = vsub.f32 %v150_v36, %v7125_v58 }
 0x161   :  { %v7115_v40 = vpop.f32.mrf.mxu0  ;;  %2180 = vmatpush.msra.mxu2 %v7071_v21  ;;  %2299 = vmatpush.msra.mxu3 %v7039_v44 }
 0x162   :  { %10808 = vst [vmem:[#allocation32_spill] sm:$0xff] %v7115_v40  ;;  %v1085_v42 = vpop.f32.mrf.mxu2  ;;  %v1290_v54 = vpop.f32.mrf.mxu3  ;;  %2043 = vmatpush.msrb.mxu1 %v2042_v38  ;;  %1852 = vmatpush.msrb.mxu0 %v7076_v6  ;;  %v10811_v38 = vand.u32 4294901760, %v6759_v32  ;;  %v2054_v8 = vand.u32 4294901760, %v2053_v49 }
 0x163   :  { %v1086_v60 = vadd.f32 %v1085_v42, %v973_v28  ;;  %v7130_v1 = vadd.f32 %v1290_v54, %v1078_v51  ;;  %v7132_v40 = vpop.f32.mrf.mxu1  ;;  %v10810_v28 = vand.u32 4294901760, %v7095_v10  ;;  %v10583_v54 = vand.u32 4294901760, %v7112_v26  ;;  %2183 = vmatpush.msra.mxu2 %v7087_v30  ;;  %2301 = vmatpush.msra.mxu3 %v7057_v48 }
 0x164   :  { %1455 = vmatmul.f32.gmra.mxu0 %v6784_v63  ;;  %v7148_v42 = vsub.f32 %v151_v39, %v7117_v15  ;;  %2049 = vmatpush.msrb.mxu1 %v2048_v43 }
 0x165   :  { %10809 = vst [vmem:[#allocation33_spill] sm:$0xff] %v7130_v1  ;;  %v2059_v51 = vsub.f32 %v7095_v10, %v10810_v28  ;;  %v880_v28 = vadd.f32 %v6814_v24, %v6670_v50  ;;  %1854 = vmatpush.msrb.mxu0 %v7092_v34  ;;  %v2065_v32 = vsub.f32 %v7112_v26, %v10583_v54 }
 0x166   :  { %1575 = vmatmul.f32.gmra.mxu1 %v10811_v38  ;;  %v2070_v39 = vand.u32 4294901760, %v7148_v42  ;;  %v7168_v38 = vsub.f32 %v149_v19, %v7140_v0  ;;  %2186 = vmatpush.msra.mxu2 %v7095_v10 }
 0x167   :  { %1684 = vmatmul.f32.gmra.mxu2 %v6577_v7  ;;  %1777 = vmatmul.f32.gmra.mxu3 %v6546_v2  ;;  %v2060_v36 = vand.u32 4294901760, %v2059_v51  ;;  %v977_v50 = vadd.f32 %v6842_v52, %v880_v28  ;;  %v2066_v52 = vand.u32 4294901760, %v2065_v32  ;;  %v10812_v28 = vand.u32 4294901760, %v7151_v56 }
 0x168   :  { %2303 = vmatpush.msra.mxu3 %v7076_v6  ;;  %1856 = vmatpush.msrb.mxu0 %v7117_v15  ;;  %v2071_v51 = vsub.f32 %v7148_v42, %v2070_v39  ;;  %v2082_v1 = vand.u32 4294901760, %v7168_v38 }
 0x169   :  { %v7171_v24 = vpop.f32.mrf.mxu0  ;;  %2055 = vmatpush.msrb.mxu1 %v2054_v8  ;;  %2189 = vmatpush.msra.mxu2 %v7112_v26  ;;  %v2077_v8 = vsub.f32 %v7151_v56, %v10812_v28 }
 0x16a   :  { %v1093_v2 = vpop.f32.mrf.mxu2  ;;  %v1294_v43 = vpop.f32.mrf.mxu3  ;;  %2305 = vmatpush.msra.mxu3 %v7092_v34  ;;  %1858 = vmatpush.msrb.mxu0 %v7125_v58 }
 0x16b   :  { %v1094_v54 = vadd.f32 %v1093_v2, %v977_v50  ;;  %v7179_v19 = vadd.f32 %v1294_v43, %v1086_v60  ;;  %v7181_v49 = vpop.f32.mrf.mxu1  ;;  %2061 = vmatpush.msrb.mxu1 %v2060_v36  ;;  %v23_v60 = vld [vmem:[%s10513_s0 + $0x10] sm:$0xff]  ;;  %2192 = vmatpush.msra.mxu2 %v7148_v42  ;;  %v10813_v50 = vand.u32 4294901760, %v6784_v63  ;;  %v2072_v2 = vand.u32 4294901760, %v2071_v51 }
 0x16c   :  { %1460 = vmatmul.f32.gmra.mxu0 %v6803_v33  ;;  %2307 = vmatpush.msra.mxu3 %v7117_v15  ;;  %v884_v36 = vadd.f32 %v6837_v5, %v6694_v55  ;;  %v7203_v32 = vand.u32 4294901760, %v23_v60  ;;  %v2078_v43 = vand.u32 4294901760, %v2077_v8  ;;  %v2083_v63 = vsub.f32 %v7168_v38, %v2082_v1  ;;  %v10844_v42 = vld [vmem:[#allocation31_spill] sm:$0xff] }
 0x16d   :  { %1860 = vmatpush.msrb.mxu0 %v7140_v0  ;;  %2067 = vmatpush.msrb.mxu1 %v2066_v52  ;;  %v10814_v5 = vand.u32 4294901760, %v6907_v3  ;;  %v29_v3 = vld [vmem:[%s10513_s0 + $0x40] sm:$0xff] }
 0x16e   :  { %1581 = vmatmul.f32.gmra.mxu1 %v10813_v50  ;;  %v981_v51 = vadd.f32 %v6862_v35, %v884_v36  ;;  %2195 = vmatpush.msra.mxu2 %v7151_v56  ;;  %v7223_v35 = vsub.f32 %v23_v60, %v7203_v32  ;;  %v2084_v36 = vand.u32 4294901760, %v2083_v63  ;;  %v10817_v63 = vand.u32 4294901760, %v6947_v47 }
 0x16f   :  { %1688 = vmatmul.f32.gmra.mxu2 %v6603_v11  ;;  %1781 = vmatmul.f32.gmra.mxu3 %v6577_v7  ;;  %v10819_v47 = vand.u32 4294901760, %v6973_v41  ;;  %v10821_v41 = vand.u32 4294901760, %v7001_v31  ;;  %v41_v31 = vld [vmem:[%s10513_s0 + $0xa0] sm:$0xff] }
 0x170   :  { %2309 = vmatpush.msra.mxu3 %v7125_v58  ;;  %2073 = vmatpush.msrb.mxu1 %v2072_v2  ;;  %v10816_v2 = vand.u32 4294901760, %v6803_v33  ;;  %v10592_v60 = vand.u32 4294901760, %v7223_v35 }
 0x171   :  { %v7209_v28 = vpop.f32.mrf.mxu0  ;;  %2412 = vmatpush.msra.mxu0 %v10814_v5  ;;  %2198 = vmatpush.msra.mxu2 %v7168_v38  ;;  %v10846_v38 = vld [vmem:[#allocation29_spill] sm:$0xff] }
 0x172   :  { %v1101_v55 = vpop.f32.mrf.mxu2  ;;  %v1298_v7 = vpop.f32.mrf.mxu3  ;;  %2311 = vmatpush.msra.mxu3 %v7140_v0  ;;  %2079 = vmatpush.msrb.mxu1 %v2078_v43  ;;  %v7237_v43 = vand.u32 4294901760, %v29_v3 }
 0x173   :  { %v1102_v52 = vadd.f32 %v1101_v55, %v981_v51  ;;  %v7215_v8 = vadd.f32 %v1298_v7, %v1094_v54  ;;  %v7217_v50 = vpop.f32.mrf.mxu1  ;;  %v10815_v54 = vand.u32 4294901760, %v6923_v37  ;;  %v888_v51 = vadd.f32 %v6857_v17, %v6718_v27 }
 0x174   :  { %1465 = vmatmul.f32.gmra.mxu0 %v6832_v22  ;;  %2085 = vmatpush.msrb.mxu1 %v2084_v36  ;;  %v10818_v17 = vand.u32 4294901760, %v6958_v45  ;;  %v35_v45 = vld [vmem:[%s10513_s0 + $0x70] sm:$0xff] }
 0x175   :  { %2416 = vmatpush.msra.mxu0 %v10815_v54  ;;  %v985_v37 = vadd.f32 %v6877_v29, %v888_v51  ;;  %v1864_v29 = vsub.f32 %v7223_v35, %v10592_v60  ;;  %v7272_v54 = vand.u32 4294901760, %v35_v45 }
 0x176   :  { %1587 = vmatmul.f32.gmra.mxu1 %v10816_v2 }
 0x177   :  { %1692 = vmatmul.f32.gmra.mxu2 %v6627_v57  ;;  %1785 = vmatmul.f32.gmra.mxu3 %v6603_v11  ;;  %v1865_v36 = vand.u32 4294901760, %v1864_v29  ;;  %v7306_v29 = vand.u32 4294901760, %v41_v31 }
 0x178   :  { %2420 = vmatpush.msra.mxu0 %v10817_v63  ;;  %2539 = vmatpush.msra.mxu1 %v6896_v12  ;;  %v7257_v12 = vsub.f32 %v29_v3, %v7237_v43 }
 0x179   :  { %v7242_v55 = vpop.f32.mrf.mxu0 }
 0x17a   :  { %v1109_v33 = vpop.f32.mrf.mxu2  ;;  %v1302_v27 = vpop.f32.mrf.mxu3  ;;  %2424 = vmatpush.msra.mxu0 %v10818_v17  ;;  %2541 = vmatpush.msra.mxu1 %v6909_v16  ;;  %v10820_v16 = vand.u32 4294901760, %v6832_v22  ;;  %v10591_v3 = vand.u32 4294901760, %v7257_v12  ;;  %v10827_v17 = vld [vmem:[#allocation5_spill] sm:$0xff] }
 0x17b   :  { %v1110_v11 = vadd.f32 %v1109_v33, %v985_v37  ;;  %v7247_v7 = vadd.f32 %v1302_v27, %v1102_v52  ;;  %v7249_v5 = vpop.f32.mrf.mxu1  ;;  %v892_v52 = vadd.f32 %v6872_v61, %v6742_v46  ;;  %v10822_v61 = vand.u32 4294901760, %v7017_v4  ;;  %v10825_v37 = vld [vmem:[#allocation9_spill] sm:$0xff]  ;;  %v10826_v33 = vld [vmem:[#allocation19_spill] sm:$0xff] }
 0x17c   :  { %1470 = vmatmul.f32.gmra.mxu0 %v6855_v20  ;;  %2543 = vmatpush.msra.mxu1 %v6919_v13  ;;  %v10824_v4 = vand.u32 4294901760, %v6855_v20  ;;  %v896_v27 = vadd.f32 %v10826_v33, %v10825_v37 }
 0x17d   :  { %2428 = vmatpush.msra.mxu0 %v10819_v47  ;;  %v989_v22 = vadd.f32 %v6888_v14, %v892_v52  ;;  %v7291_v14 = vsub.f32 %v35_v45, %v7272_v54  ;;  %v10828_v45 = vand.u32 4294901760, %v7043_v53  ;;  %v7325_v53 = vsub.f32 %v41_v31, %v7306_v29 }
 0x17e   :  { %1593 = vmatmul.f32.gmra.mxu1 %v10820_v16 }
 0x17f   :  { %1696 = vmatmul.f32.gmra.mxu2 %v6651_v59  ;;  %1789 = vmatmul.f32.gmra.mxu3 %v6627_v57  ;;  %v10588_v37 = vand.u32 4294901760, %v7325_v53 }
 0x180   :  { %2432 = vmatpush.msra.mxu0 %v10821_v41  ;;  %2545 = vmatpush.msra.mxu1 %v6935_v62  ;;  %v1872_v62 = vsub.f32 %v7257_v12, %v10591_v3 }
 0x181   :  { %v7278_v13 = vpop.f32.mrf.mxu0 }
 0x182   :  { %v1117_v2 = vpop.f32.mrf.mxu2  ;;  %v1306_v46 = vpop.f32.mrf.mxu3  ;;  %2436 = vmatpush.msra.mxu0 %v10822_v61  ;;  %2547 = vmatpush.msra.mxu1 %v6952_v23  ;;  %v10823_v23 = vand.u32 4294901760, %v7024_v18  ;;  %v10829_v18 = vld [vmem:[#allocation23_spill] sm:$0xff]  ;;  %v10833_v61 = vand.u32 4294901760, %v7087_v30  ;;  %v10838_v30 = vld [vmem:[#allocation26_spill] sm:$0xff] }
 0x183   :  { %v1118_v57 = vadd.f32 %v1117_v2, %v989_v22  ;;  %v7283_v51 = vadd.f32 %v1306_v46, %v1110_v11  ;;  %v7285_v63 = vpop.f32.mrf.mxu1  ;;  %v1873_v11 = vand.u32 4294901760, %v1872_v62  ;;  %v993_v20 = vadd.f32 %v10829_v18, %v896_v27  ;;  %v10832_v46 = vld [vmem:[#allocation28_spill] sm:$0xff]  ;;  %v10835_v62 = vld [vmem:[#allocation21_spill] sm:$0xff] }
 0x184   :  { %1866 = vmatmul.f32.vlgmr.msrb.gmra.mxu0 %v1865_v36  ;;  %2549 = vmatpush.msra.mxu1 %v6969_v25  ;;  %v10589_v25 = vand.u32 4294901760, %v7291_v14  ;;  %v10830_v36 = vand.u32 4294901760, %v7071_v21  ;;  %v47_v21 = vld [vmem:[%s10513_s0 + $0xd0] sm:$0xff]  ;;  %v10837_v27 = vand.u32 4294901760, %v7095_v10 }
 0x185   :  { %2440 = vmatpush.msra.mxu0 %v10823_v23  ;;  %v7339_v33 = vand.u32 4294901760, %v47_v21 }
 0x186   :  { %1599 = vmatmul.f32.gmra.mxu1 %v10824_v4  ;;  %v10836_v4 = vld [vmem:[#allocation6_spill] sm:$0xff] }
 0x187   :  { %1700 = vmatmul.f32.gmra.mxu2 %v10827_v17  ;;  %1793 = vmatmul.f32.gmra.mxu3 %v6651_v59  ;;  %v10831_v59 = vld [vmem:[#allocation27_spill] sm:$0xff]  ;;  %v7358_v10 = vsub.f32 %v47_v21, %v7339_v33 }
 0x188   :  { %2444 = vmatpush.msra.mxu0 %v10828_v45  ;;  %2551 = vmatpush.msra.mxu1 %v6987_v9  ;;  %v1880_v9 = vsub.f32 %v7291_v14, %v10589_v25 }
 0x189   :  { %v7312_v47 = vpop.f32.mrf.mxu0  ;;  %v10587_v21 = vand.u32 4294901760, %v7358_v10 }
 0x18a   :  { %v1125_v16 = vpop.f32.mrf.mxu2  ;;  %v1310_v52 = vpop.f32.mrf.mxu3  ;;  %2448 = vmatpush.msra.mxu0 %v10830_v36  ;;  %2553 = vmatpush.msra.mxu1 %v10831_v59  ;;  %v1881_v31 = vand.u32 4294901760, %v1880_v9  ;;  %v10841_v59 = vld [vmem:[#allocation24_spill] sm:$0xff]  ;;  %v10842_v9 = vld [vmem:[#allocation7_spill] sm:$0xff] }
 0x18b   :  { %v1126_v41 = vadd.f32 %v1125_v16, %v993_v20  ;;  %v7317_v22 = vadd.f32 %v1310_v52, %v1118_v57  ;;  %v7319_v2 = vpop.f32.mrf.mxu1  ;;  %v10834_v57 = vld [vmem:[#allocation12_spill] sm:$0xff]  ;;  %v10839_v16 = vand.u32 4294901760, %v7112_v26 }
 0x18c   :  { %1874 = vmatmul.f32.gmra.mxu0 %v1873_v11  ;;  %2555 = vmatpush.msra.mxu1 %v10832_v46  ;;  %v900_v23 = vadd.f32 %v10835_v62, %v10834_v57  ;;  %v53_v26 = vld [vmem:[%s10513_s0 + $0x100] sm:$0xff] }
 0x18d   :  { %2452 = vmatpush.msra.mxu0 %v10833_v61  ;;  %v10843_v61 = vand.u32 4294901760, %v7151_v56 }
 0x18e   :  { %2087 = vmatmul.f32.vlgmr.msrb.gmra.mxu1 %v7203_v32  ;;  %v997_v11 = vadd.f32 %v10838_v30, %v900_v23 }
 0x18f   :  { %1704 = vmatmul.f32.gmra.mxu2 %v10836_v4  ;;  %1797 = vmatmul.f32.gmra.mxu3 %v10827_v17 }
 0x190   :  { %2456 = vmatpush.msra.mxu0 %v10837_v27  ;;  %2557 = vmatpush.msra.mxu1 %v7039_v44  ;;  %v1888_v44 = vsub.f32 %v7325_v53, %v10588_v37 }
 0x191   :  { %v7345_v45 = vpop.f32.mrf.mxu0 }
 0x192   :  { %v1133_v18 = vpop.f32.mrf.mxu2  ;;  %v1314_v20 = vpop.f32.mrf.mxu3  ;;  %2460 = vmatpush.msra.mxu0 %v10839_v16  ;;  %2559 = vmatpush.msra.mxu1 %v7057_v48  ;;  %v10840_v48 = vld [vmem:[#allocation13_spill] sm:$0xff]  ;;  %v1889_v46 = vand.u32 4294901760, %v1888_v44 }
 0x193   :  { %v1134_v17 = vadd.f32 %v1133_v18, %v997_v11  ;;  %v7350_v52 = vadd.f32 %v1314_v20, %v1126_v41  ;;  %v7352_v36 = vpop.f32.mrf.mxu1  ;;  %v904_v41 = vadd.f32 %v10841_v59, %v10840_v48  ;;  %v10847_v11 = vld [vmem:[#allocation8_spill] sm:$0xff] }
 0x194   :  { %1882 = vmatmul.f32.gmra.mxu0 %v1881_v31  ;;  %2561 = vmatpush.msra.mxu1 %v7076_v6  ;;  %v7372_v6 = vand.u32 4294901760, %v53_v26 }
 0x195   :  { %2464 = vmatpush.msra.mxu0 %v2070_v39  ;;  %v1001_v39 = vadd.f32 %v10844_v42, %v904_v41 }
 0x196   :  { %2091 = vmatmul.f32.gmra.mxu1 %v7237_v43  ;;  %v7391_v56 = vsub.f32 %v53_v26, %v7372_v6 }
 0x197   :  { %1708 = vmatmul.f32.gmra.mxu2 %v10842_v9  ;;  %1801 = vmatmul.f32.gmra.mxu3 %v10836_v4 }
 0x198   :  { %2468 = vmatpush.msra.mxu0 %v10843_v61  ;;  %2563 = vmatpush.msra.mxu1 %v7092_v34  ;;  %v1896_v34 = vsub.f32 %v7358_v10, %v10587_v21  ;;  %v10585_v20 = vand.u32 4294901760, %v7391_v56  ;;  %v10850_v61 = vld [vmem:[#allocation32_spill] sm:$0xff] }
 0x199   :  { %v7378_v57 = vpop.f32.mrf.mxu0 }
 0x19a   :  { %v1141_v62 = vpop.f32.mrf.mxu2  ;;  %v1318_v23 = vpop.f32.mrf.mxu3  ;;  %2472 = vmatpush.msra.mxu0 %v2082_v1  ;;  %2565 = vmatpush.msra.mxu1 %v7117_v15  ;;  %v59_v1 = vld [vmem:[%s10513_s0 + $0x130] sm:$0xff]  ;;  %v1897_v18 = vand.u32 4294901760, %v1896_v34 }
 0x19b   :  { %v1142_v4 = vadd.f32 %v1141_v62, %v1001_v39  ;;  %v7383_v31 = vadd.f32 %v1318_v23, %v1134_v17  ;;  %v7385_v27 = vpop.f32.mrf.mxu1  ;;  %v10845_v15 = vld [vmem:[#allocation15_spill] sm:$0xff]  ;;  %v7403_v16 = vand.u32 4294901760, %v59_v1  ;;  %v10851_v39 = vld [vmem:[#allocation10_spill] sm:$0xff] }
 0x19c   :  { %1890 = vmatmul.f32.gmra.mxu0 %v1889_v46  ;;  %2567 = vmatpush.msra.mxu1 %v7125_v58  ;;  %v908_v30 = vadd.f32 %v10846_v38, %v10845_v15 }
 0x19d   :  { %10848 = vst [vmem:[#allocation9_spill] sm:$0xff] %v7403_v16  ;;  %v7417_v46 = vsub.f32 %v59_v1, %v7403_v16 }
 0x19e   :  { %2095 = vmatmul.f32.gmra.mxu1 %v7272_v54  ;;  %v1005_v58 = vadd.f32 %v7132_v40, %v908_v30  ;;  %v10849_v40 = vld [vmem:[#allocation17_spill] sm:$0xff] }
 0x19f   :  { %1712 = vmatmul.f32.gmra.mxu2 %v10847_v11  ;;  %1805 = vmatmul.f32.gmra.mxu3 %v10842_v9  ;;  %v1904_v9 = vsub.f32 %v7391_v56, %v10585_v20  ;;  %v912_v42 = vadd.f32 %v10850_v61, %v10849_v40  ;;  %v10584_v23 = vand.u32 4294901760, %v7417_v46 }
 0x1a0   :  { %2569 = vmatpush.msra.mxu1 %v7140_v0  ;;  %v65_v0 = vld [vmem:[%s10513_s0 + $0x160] sm:$0xff] }
 0x1a1   :  { %v7407_v17 = vpop.f32.mrf.mxu0  ;;  %v1905_v62 = vand.u32 4294901760, %v1904_v9  ;;  %v1009_v34 = vadd.f32 %v7181_v49, %v912_v42  ;;  %v71_v49 = vld [vmem:[%s10513_s0 + $0x190] sm:$0xff] }
 0x1a2   :  { %v1149_v44 = vpop.f32.mrf.mxu2  ;;  %v1322_v26 = vpop.f32.mrf.mxu3  ;;  %v10854_v9 = vld [vmem:[#allocation11_spill] sm:$0xff]  ;;  %v7452_v42 = vand.u32 4294901760, %v71_v49 }
 0x1a3   :  { %v1150_v48 = vadd.f32 %v1149_v44, %v1005_v58  ;;  %v7409_v59 = vadd.f32 %v1322_v26, %v1142_v4  ;;  %v7411_v41 = vpop.f32.mrf.mxu1  ;;  %v7428_v4 = vand.u32 4294901760, %v65_v0  ;;  %v10853_v26 = vld [vmem:[#allocation18_spill] sm:$0xff] }
 0x1a4   :  { %1898 = vmatmul.f32.gmra.mxu0 %v1897_v18  ;;  %10855 = vst [vmem:[#allocation5_spill] sm:$0xff] %v7452_v42 }
 0x1a5   :  { %10852 = vst [vmem:[#allocation19_spill] sm:$0xff] %v7428_v4  ;;  %v7441_v44 = vsub.f32 %v65_v0, %v7428_v4 }
 0x1a6   :  { %2099 = vmatmul.f32.gmra.mxu1 %v7306_v29 }
 0x1a7   :  { %1716 = vmatmul.f32.gmra.mxu2 %v10851_v39  ;;  %1809 = vmatmul.f32.gmra.mxu3 %v10847_v11  ;;  %v1912_v11 = vsub.f32 %v7417_v46, %v10584_v23  ;;  %v10586_v61 = vand.u32 4294901760, %v7441_v44 }
 0x1a9   :  { %v7431_v1 = vpop.f32.mrf.mxu0  ;;  %v1913_v40 = vand.u32 4294901760, %v1912_v11  ;;  %v10856_v11 = vld [vmem:[#allocation20_spill] sm:$0xff] }
 0x1aa   :  { %v1157_v15 = vpop.f32.mrf.mxu2  ;;  %v1326_v38 = vpop.f32.mrf.mxu3 }
 0x1ab   :  { %v1158_v30 = vadd.f32 %v1157_v15, %v1009_v34  ;;  %v7433_v18 = vadd.f32 %v1326_v38, %v1150_v48  ;;  %v7435_v58 = vpop.f32.mrf.mxu1  ;;  %v916_v48 = vadd.f32 %v7171_v24, %v10853_v26  ;;  %v1920_v24 = vsub.f32 %v7441_v44, %v10586_v61  ;;  %v10857_v26 = vld [vmem:[#allocation14_spill] sm:$0xff] }
 0x1ac   :  { %1906 = vmatmul.f32.gmra.mxu0 %v1905_v62 }
 0x1ad   :  { %v1013_v0 = vadd.f32 %v7217_v50, %v916_v48  ;;  %v77_v50 = vld [vmem:[%s10513_s0 + $0x1c0] sm:$0xff]  ;;  %v1921_v48 = vand.u32 4294901760, %v1920_v24  ;;  %v10859_v24 = vld [vmem:[#allocation22_spill] sm:$0xff] }
 0x1ae   :  { %2103 = vmatmul.f32.gmra.mxu1 %v7339_v33 }
 0x1af   :  { %1720 = vmatmul.f32.gmra.mxu2 %v10854_v9  ;;  %1813 = vmatmul.f32.gmra.mxu3 %v10851_v39  ;;  %v7465_v39 = vsub.f32 %v71_v49, %v7452_v42 }
 0x1b1   :  { %v7455_v62 = vpop.f32.mrf.mxu0 }
 0x1b2   :  { %v1165_v34 = vpop.f32.mrf.mxu2  ;;  %v1330_v15 = vpop.f32.mrf.mxu3 }
 0x1b3   :  { %v1166_v38 = vadd.f32 %v1165_v34, %v1013_v0  ;;  %v7457_v23 = vadd.f32 %v1330_v15, %v1158_v30  ;;  %v7459_v20 = vpop.f32.mrf.mxu1  ;;  %v920_v30 = vadd.f32 %v7209_v28, %v10856_v11  ;;  %v7476_v0 = vand.u32 4294901760, %v77_v50 }
 0x1b4   :  { %1914 = vmatmul.f32.gmra.mxu0 %v1913_v40  ;;  %v10590_v40 = vand.u32 4294901760, %v7465_v39 }
 0x1b5   :  { %10858 = vst [vmem:[#allocation23_spill] sm:$0xff] %v7476_v0  ;;  %v1017_v49 = vadd.f32 %v7249_v5, %v920_v30  ;;  %v83_v5 = vld [vmem:[%s10513_s0 + $0x1f0] sm:$0xff] }
 0x1b6   :  { %2107 = vmatmul.f32.gmra.mxu1 %v7372_v6  ;;  %v1928_v28 = vsub.f32 %v7465_v39, %v10590_v40 }
 0x1b7   :  { %1724 = vmatmul.f32.gmra.mxu2 %v10857_v26  ;;  %1817 = vmatmul.f32.gmra.mxu3 %v10854_v9  ;;  %v7489_v9 = vsub.f32 %v77_v50, %v7476_v0 }
 0x1b8   :  { %v1929_v11 = vand.u32 4294901760, %v1928_v28  ;;  %v10863_v28 = vld [vmem:[#allocation25_spill] sm:$0xff] }
 0x1b9   :  { %v7479_v34 = vpop.f32.mrf.mxu0  ;;  %v10595_v30 = vand.u32 4294901760, %v7489_v9 }
 0x1ba   :  { %v1173_v15 = vpop.f32.mrf.mxu2  ;;  %v1334_v61 = vpop.f32.mrf.mxu3 }
 0x1bb   :  { %v1174_v21 = vadd.f32 %v1173_v15, %v1017_v49  ;;  %v7481_v37 = vadd.f32 %v1334_v61, %v1166_v38  ;;  %v7483_v25 = vpop.f32.mrf.mxu1  ;;  %v924_v61 = vadd.f32 %v7242_v55, %v10859_v24  ;;  %v10860_v38 = vld [vmem:[#allocation16_spill] sm:$0xff]  ;;  %v1936_v55 = vsub.f32 %v7489_v9, %v10595_v30 }
 0x1bc   :  { %1922 = vmatmul.f32.gmra.mxu0 %v1921_v48  ;;  %v7500_v48 = vand.u32 4294901760, %v83_v5 }
 0x1bd   :  { %v1021_v50 = vadd.f32 %v7285_v63, %v924_v61  ;;  %v89_v63 = vld [vmem:[%s10513_s0 + $0x220] sm:$0xff] }
 0x1be   :  { %2111 = vmatmul.f32.gmra.mxu1 %v7403_v16  ;;  %10861 = vst [vmem:[#allocation27_spill] sm:$0xff] %v7500_v48  ;;  %v7524_v61 = vand.u32 4294901760, %v89_v63 }
 0x1bf   :  { %1728 = vmatmul.f32.gmra.mxu2 %v10860_v38  ;;  %1821 = vmatmul.f32.gmra.mxu3 %v10857_v26  ;;  %v7513_v26 = vsub.f32 %v83_v5, %v7500_v48 }
 0x1c0   :  { %10864 = vst [vmem:[#allocation12_spill] sm:$0xff] %v7524_v61 }
 0x1c1   :  { %v7503_v49 = vpop.f32.mrf.mxu0  ;;  %v10598_v24 = vand.u32 4294901760, %v7513_v26 }
 0x1c2   :  { %v1181_v15 = vpop.f32.mrf.mxu2  ;;  %v1338_v40 = vpop.f32.mrf.mxu3 }
 0x1c3   :  { %v1182_v3 = vadd.f32 %v1181_v15, %v1021_v50  ;;  %v7505_v60 = vadd.f32 %v1338_v40, %v1174_v21  ;;  %v7507_v16 = vpop.f32.mrf.mxu1  ;;  %v1397_v21 = vadd.f32 %v7278_v13, %v10863_v28  ;;  %v1937_v40 = vand.u32 4294901760, %v1936_v55  ;;  %v10866_v55 = vld [vmem:[#allocation30_spill] sm:$0xff] }
 0x1c4   :  { %1930 = vmatmul.f32.gmra.mxu0 %v1929_v11  ;;  %v1944_v13 = vsub.f32 %v7513_v26, %v10598_v24  ;;  %v10867_v28 = vand.u32 4294901760, %v7223_v35 }
 0x1c5   :  { %10862 = vst [vmem:[#allocation28_spill] sm:$0xff] %v7505_v60  ;;  %v1511_v5 = vadd.f32 %v7319_v2, %v1397_v21  ;;  %v95_v2 = vld [vmem:[%s10513_s0 + $0x250] sm:$0xff] }
 0x1c6   :  { %2115 = vmatmul.f32.gmra.mxu1 %v7428_v4  ;;  %v1945_v21 = vand.u32 4294901760, %v1944_v13 }
 0x1c7   :  { %1825 = vmatmul.f32.gmra.mxu3 %v10860_v38  ;;  %2201 = vmatmul.f32.vlgmr.msra.gmra.mxu2 %v7223_v35  ;;  %v7537_v38 = vsub.f32 %v89_v63, %v7524_v61 }
 0x1c9   :  { %v7527_v11 = vpop.f32.mrf.mxu0 }
 0x1ca   :  { %v1342_v50 = vpop.f32.mrf.mxu3  ;;  %v1669_v15 = vpop.f32.mrf.mxu2 }
 0x1cb   :  { %v7529_v30 = vadd.f32 %v1342_v50, %v1182_v3  ;;  %v1670_v4 = vadd.f32 %v1669_v15, %v1511_v5  ;;  %v7531_v60 = vpop.f32.mrf.mxu1  ;;  %v1402_v3 = vadd.f32 %v7312_v47, %v10866_v55  ;;  %v7549_v5 = vand.u32 4294901760, %v95_v2  ;;  %v10870_v55 = vld [vmem:[#allocation33_spill] sm:$0xff] }
 0x1cc   :  { %1938 = vmatmul.f32.gmra.mxu0 %v1937_v40  ;;  %v10601_v40 = vand.u32 4294901760, %v7537_v38 }
 0x1cd   :  { %10865 = vst [vmem:[#allocation21_spill] sm:$0xff] %v7529_v30  ;;  %v1517_v63 = vadd.f32 %v7352_v36, %v1402_v3  ;;  %v7562_v13 = vsub.f32 %v95_v2, %v7549_v5  ;;  %v101_v36 = vld [vmem:[%s10513_s0 + $0x280] sm:$0xff] }
 0x1ce   :  { %2119 = vmatmul.f32.gmra.mxu1 %v7452_v42  ;;  %10868 = vst [vmem:[#allocation6_spill] sm:$0xff] %v7549_v5  ;;  %v1952_v35 = vsub.f32 %v7537_v38, %v10601_v40 }
 0x1cf   :  { %2206 = vmatmul.f32.gmra.mxu2 %v7257_v12  ;;  %2315 = vmatmul.f32.vlgmr.msra.gmra.mxu3 %v10867_v28  ;;  %v10604_v28 = vand.u32 4294901760, %v7562_v13 }
 0x1d0   :  { %v1953_v3 = vand.u32 4294901760, %v1952_v35 }
 0x1d1   :  { %v7552_v50 = vpop.f32.mrf.mxu0 }
 0x1d2   :  { %v1673_v15 = vpop.f32.mrf.mxu2  ;;  %v1766_v24 = vpop.f32.mrf.mxu3 }
 0x1d3   :  { %v1674_v42 = vadd.f32 %v1673_v15, %v1517_v63  ;;  %v7554_v30 = vadd.f32 %v1766_v24, %v1670_v4  ;;  %v7556_v47 = vpop.f32.mrf.mxu1  ;;  %v1407_v4 = vadd.f32 %v7345_v45, %v10870_v55  ;;  %v10871_v24 = vand.u32 4294901760, %v7257_v12 }
 0x1d4   :  { %1946 = vmatmul.f32.gmra.mxu0 %v1945_v21  ;;  %v7574_v21 = vand.u32 4294901760, %v101_v36  ;;  %v1960_v12 = vsub.f32 %v7562_v13, %v10604_v28 }
 0x1d5   :  { %10869 = vst [vmem:[#allocation26_spill] sm:$0xff] %v7554_v30  ;;  %v1523_v2 = vadd.f32 %v7385_v27, %v1407_v4  ;;  %v107_v27 = vld [vmem:[%s10513_s0 + $0x2b0] sm:$0xff] }
 0x1d6   :  { %2123 = vmatmul.f32.gmra.mxu1 %v7476_v0  ;;  %10872 = vst [vmem:[#allocation13_spill] sm:$0xff] %v7574_v21  ;;  %v7587_v35 = vsub.f32 %v101_v36, %v7574_v21  ;;  %v1961_v55 = vand.u32 4294901760, %v1960_v12  ;;  %v10877_v12 = vand.u32 4294901760, %v7325_v53 }
 0x1d7   :  { %2211 = vmatmul.f32.gmra.mxu2 %v7291_v14  ;;  %2321 = vmatmul.f32.gmra.mxu3 %v10871_v24  ;;  %v7599_v24 = vand.u32 4294901760, %v107_v27 }
 0x1d8   :  { %v10607_v4 = vand.u32 4294901760, %v7587_v35 }
 0x1d9   :  { %v7577_v63 = vpop.f32.mrf.mxu0  ;;  %10875 = vst [vmem:[#allocation7_spill] sm:$0xff] %v7599_v24 }
 0x1da   :  { %v1677_v15 = vpop.f32.mrf.mxu2  ;;  %v1770_v40 = vpop.f32.mrf.mxu3 }
 0x1db   :  { %v1678_v0 = vadd.f32 %v1677_v15, %v1523_v2  ;;  %v7579_v30 = vadd.f32 %v1770_v40, %v1674_v42  ;;  %v7581_v45 = vpop.f32.mrf.mxu1  ;;  %v1412_v42 = vadd.f32 %v7378_v57, %v7179_v19  ;;  %v10874_v40 = vand.u32 4294901760, %v7291_v14 }
 0x1dc   :  { %1954 = vmatmul.f32.gmra.mxu0 %v1953_v3  ;;  %v1968_v14 = vsub.f32 %v7587_v35, %v10607_v4  ;;  %v7612_v57 = vsub.f32 %v107_v27, %v7599_v24 }
 0x1dd   :  { %10873 = vst [vmem:[#allocation24_spill] sm:$0xff] %v7579_v30  ;;  %v1529_v36 = vadd.f32 %v7411_v41, %v1412_v42  ;;  %v113_v41 = vld [vmem:[%s10513_s0 + $0x2e0] sm:$0xff] }
 0x1de   :  { %2127 = vmatmul.f32.gmra.mxu1 %v7500_v48  ;;  %v1969_v42 = vand.u32 4294901760, %v1968_v14  ;;  %v165_v30 = vld [vmem:[%s10514_s1 + $0x180] sm:$0xff] }
 0x1df   :  { %2216 = vmatmul.f32.gmra.mxu2 %v7325_v53  ;;  %2327 = vmatmul.f32.gmra.mxu3 %v10874_v40  ;;  %v10610_v40 = vand.u32 4294901760, %v7612_v57 }
 0x1e1   :  { %v7602_v3 = vpop.f32.mrf.mxu0  ;;  %v1976_v53 = vsub.f32 %v7612_v57, %v10610_v40 }
 0x1e2   :  { %v1681_v2 = vpop.f32.mrf.mxu2  ;;  %v1774_v15 = vpop.f32.mrf.mxu3 }
 0x1e3   :  { %v1682_v28 = vadd.f32 %v1681_v2, %v1529_v36  ;;  %v7604_v48 = vadd.f32 %v1774_v15, %v1678_v0  ;;  %v7606_v19 = vpop.f32.mrf.mxu1  ;;  %v1417_v0 = vadd.f32 %v7407_v17, %v7215_v8 }
 0x1e4   :  { %1962 = vmatmul.f32.gmra.mxu0 %v1961_v55  ;;  %v7624_v55 = vand.u32 4294901760, %v113_v41 }
 0x1e5   :  { %10876 = vst [vmem:[#allocation31_spill] sm:$0xff] %v7604_v48  ;;  %v1535_v27 = vadd.f32 %v7435_v58, %v1417_v0  ;;  %v180_v58 = vld [vmem:[%s10514_s1 + $0x1f8] sm:$0xff]  ;;  %v10880_v0 = vand.u32 4294901760, %v7358_v10 }
 0x1e6   :  { %2131 = vmatmul.f32.gmra.mxu1 %v7524_v61  ;;  %10878 = vst [vmem:[#allocation15_spill] sm:$0xff] %v7624_v55  ;;  %v7637_v17 = vsub.f32 %v113_v41, %v7624_v55  ;;  %v7642_v14 = vand.u32 4294901760, %v180_v58  ;;  %v1977_v41 = vand.u32 4294901760, %v1976_v53 }
 0x1e7   :  { %2221 = vmatmul.f32.gmra.mxu2 %v7358_v10  ;;  %2333 = vmatmul.f32.gmra.mxu3 %v10877_v12 }
 0x1e8   :  { %v7651_v12 = vsub.f32 %v180_v58, %v7642_v14  ;;  %2636 = vmatpush.msrb.mxu2 %v7642_v14  ;;  %3087 = vmatpush.msrb.mxu1 %v7642_v14 }
 0x1e9   :  { %v7627_v36 = vpop.f32.mrf.mxu0 }
 0x1ea   :  { %v1685_v2 = vpop.f32.mrf.mxu2  ;;  %v1778_v15 = vpop.f32.mrf.mxu3  ;;  %2959 = vmatpush.msrb.mxu0 %v7651_v12 }
 0x1eb   :  { %v1686_v4 = vadd.f32 %v1685_v2, %v1535_v27  ;;  %v7629_v61 = vadd.f32 %v1778_v15, %v1682_v28  ;;  %v7631_v8 = vpop.f32.mrf.mxu1  ;;  %v1422_v28 = vadd.f32 %v7431_v1, %v7247_v7  ;;  %v10616_v7 = vand.u32 4294901760, %v7651_v12 }
 0x1ec   :  { %1970 = vmatmul.f32.gmra.mxu0 %v1969_v42  ;;  %v10613_v42 = vand.u32 4294901760, %v7637_v17 }
 0x1ed   :  { %10879 = vst [vmem:[#allocation29_spill] sm:$0xff] %v7629_v61  ;;  %v1541_v27 = vadd.f32 %v7459_v20, %v1422_v28  ;;  %v179_v28 = vld [vmem:[%s10514_s1 + $0x1f0] sm:$0xff] }
 0x1ee   :  { %2135 = vmatmul.f32.gmra.mxu1 %v7549_v5  ;;  %v1984_v20 = vsub.f32 %v7637_v17, %v10613_v42  ;;  %v7674_v5 = vand.u32 4294901760, %v179_v28 }
 0x1ef   :  { %2226 = vmatmul.f32.gmra.mxu2 %v7391_v56  ;;  %2339 = vmatmul.f32.gmra.mxu3 %v10880_v0  ;;  %v2799_v0 = vsub.f32 %v7651_v12, %v10616_v7 }
 0x1f0   :  { %2638 = vmatpush.msrb.mxu2 %v7674_v5  ;;  %3089 = vmatpush.msrb.mxu1 %v7674_v5 }
 0x1f1   :  { %v7657_v2 = vpop.f32.mrf.mxu0  ;;  %v2800_v40 = vand.u32 4294901760, %v2799_v0 }
 0x1f2   :  { %v1689_v10 = vpop.f32.mrf.mxu2  ;;  %v1782_v1 = vpop.f32.mrf.mxu3 }
 0x1f3   :  { %v1690_v15 = vadd.f32 %v1689_v10, %v1541_v27  ;;  %v7661_v58 = vadd.f32 %v1782_v1, %v1686_v4  ;;  %v7663_v53 = vpop.f32.mrf.mxu1  ;;  %v1427_v4 = vadd.f32 %v7455_v62, %v7283_v51  ;;  %v7683_v27 = vsub.f32 %v179_v28, %v7674_v5  ;;  %2801 = vmatpush.msrb.mxu3 %v2800_v40 }
 0x1f4   :  { %1978 = vmatmul.f32.gmra.mxu0 %v1977_v41  ;;  %v10882_v41 = vand.u32 4294901760, %v7391_v56  ;;  %v1985_v10 = vand.u32 4294901760, %v1984_v20 }
 0x1f5   :  { %10881 = vst [vmem:[#allocation8_spill] sm:$0xff] %v7661_v58  ;;  %v1547_v1 = vadd.f32 %v7483_v25, %v1427_v4  ;;  %v10614_v42 = vand.u32 4294901760, %v7683_v27  ;;  %2962 = vmatpush.msrb.mxu0 %v7683_v27  ;;  %v178_v25 = vld [vmem:[%s10514_s1 + $0x1e8] sm:$0xff] }
 0x1f6   :  { %2139 = vmatmul.f32.gmra.mxu1 %v7574_v21  ;;  %v7702_v4 = vand.u32 4294901760, %v178_v25 }
 0x1f7   :  { %2231 = vmatmul.f32.gmra.mxu2 %v7417_v46  ;;  %2345 = vmatmul.f32.gmra.mxu3 %v10882_v41  ;;  %v2805_v40 = vsub.f32 %v7683_v27, %v10614_v42 }
 0x1f8   :  { %2640 = vmatpush.msrb.mxu2 %v7702_v4  ;;  %3091 = vmatpush.msrb.mxu1 %v7702_v4 }
 0x1f9   :  { %v7687_v0 = vpop.f32.mrf.mxu0  ;;  %v2806_v20 = vand.u32 4294901760, %v2805_v40 }
 0x1fa   :  { %v1693_v51 = vpop.f32.mrf.mxu2  ;;  %v1786_v56 = vpop.f32.mrf.mxu3 }
 0x1fb   :  { %v1694_v62 = vadd.f32 %v1693_v51, %v1547_v1  ;;  %v7692_v41 = vadd.f32 %v1786_v56, %v1690_v15  ;;  %v7694_v28 = vpop.f32.mrf.mxu1  ;;  %v1432_v15 = vadd.f32 %v7479_v34, %v7317_v22  ;;  %v10884_v1 = vand.u32 4294901760, %v7417_v46  ;;  %2807 = vmatpush.msrb.mxu3 %v2806_v20 }
 0x1fc   :  { %1986 = vmatmul.f32.gmra.mxu0 %v1985_v10  ;;  %v7711_v51 = vsub.f32 %v178_v25, %v7702_v4 }
 0x1fd   :  { %10883 = vst [vmem:[#allocation17_spill] sm:$0xff] %v7692_v41  ;;  %v1553_v10 = vadd.f32 %v7507_v16, %v1432_v15  ;;  %v177_v16 = vld [vmem:[%s10514_s1 + $0x1e0] sm:$0xff]  ;;  %v171_v41 = vld [vmem:[%s10514_s1 + $0x1b0] sm:$0xff] }
 0x1fe   :  { %2143 = vmatmul.f32.gmra.mxu1 %v7599_v24  ;;  %v10615_v40 = vand.u32 4294901760, %v7711_v51  ;;  %2965 = vmatpush.msrb.mxu0 %v7711_v51  ;;  %v7731_v42 = vand.u32 4294901760, %v177_v16  ;;  %v1447_v24 = vadd.f32 %v7552_v50, %v7409_v59 }
 0x1ff   :  { %2236 = vmatmul.f32.gmra.mxu2 %v7441_v44  ;;  %2351 = vmatmul.f32.gmra.mxu3 %v10884_v1 }
 0x200   :  { %v2811_v20 = vsub.f32 %v7711_v51, %v10615_v40  ;;  %2642 = vmatpush.msrb.mxu2 %v7731_v42  ;;  %3093 = vmatpush.msrb.mxu1 %v7731_v42  ;;  %v1571_v50 = vadd.f32 %v7581_v45, %v1447_v24 }
 0x201   :  { %v7715_v56 = vpop.f32.mrf.mxu0 }
 0x202   :  { %v1697_v22 = vpop.f32.mrf.mxu2  ;;  %v1790_v34 = vpop.f32.mrf.mxu3  ;;  %v2812_v15 = vand.u32 4294901760, %v2811_v20 }
 0x203   :  { %v1698_v46 = vadd.f32 %v1697_v22, %v1553_v10  ;;  %v7720_v1 = vadd.f32 %v1790_v34, %v1694_v62  ;;  %v7722_v25 = vpop.f32.mrf.mxu1  ;;  %v1437_v62 = vadd.f32 %v7503_v49, %v7350_v52  ;;  %v10886_v10 = vand.u32 4294901760, %v7441_v44 }
 0x204   :  { %2474 = vmatmul.f32.vlgmr.msra.gmra.mxu0 %v7203_v32  ;;  %v7740_v22 = vsub.f32 %v177_v16, %v7731_v42  ;;  %2813 = vmatpush.msrb.mxu3 %v2812_v15 }
 0x205   :  { %10885 = vst [vmem:[#allocation32_spill] sm:$0xff] %v7720_v1  ;;  %v1559_v34 = vadd.f32 %v7531_v60, %v1437_v62  ;;  %v176_v60 = vld [vmem:[%s10514_s1 + $0x1d8] sm:$0xff]  ;;  %v173_v1 = vld [vmem:[%s10514_s1 + $0x1c0] sm:$0xff] }
 0x206   :  { %2147 = vmatmul.f32.gmra.mxu1 %v7624_v55  ;;  %v10617_v40 = vand.u32 4294901760, %v7740_v22  ;;  %2968 = vmatpush.msrb.mxu0 %v7740_v22  ;;  %v7760_v7 = vand.u32 4294901760, %v176_v60 }
 0x207   :  { %2241 = vmatmul.f32.gmra.mxu2 %v7465_v39  ;;  %2357 = vmatmul.f32.gmra.mxu3 %v10886_v10 }
 0x208   :  { %v2817_v15 = vsub.f32 %v7740_v22, %v10617_v40  ;;  %2644 = vmatpush.msrb.mxu2 %v7760_v7  ;;  %3095 = vmatpush.msrb.mxu1 %v7760_v7 }
 0x209   :  { %v7744_v20 = vpop.f32.mrf.mxu0 }
 0x20a   :  { %10887 = vst [vmem:[#allocation10_spill] sm:$0xff] %v7744_v20  ;;  %v1701_v52 = vpop.f32.mrf.mxu2  ;;  %v1794_v49 = vpop.f32.mrf.mxu3  ;;  %v2818_v62 = vand.u32 4294901760, %v2817_v15 }
 0x20b   :  { %v1702_v44 = vadd.f32 %v1701_v52, %v1559_v34  ;;  %v7749_v10 = vadd.f32 %v1794_v49, %v1698_v46  ;;  %v7751_v16 = vpop.f32.mrf.mxu1  ;;  %v1442_v46 = vadd.f32 %v7527_v11, %v7383_v31  ;;  %v10889_v34 = vand.u32 4294901760, %v7465_v39  ;;  %v175_v49 = vld [vmem:[%s10514_s1 + $0x1d0] sm:$0xff]  ;;  %v174_v39 = vld [vmem:[%s10514_s1 + $0x1c8] sm:$0xff] }
 0x20c   :  { %2478 = vmatmul.f32.gmra.mxu0 %v7237_v43  ;;  %v7769_v52 = vsub.f32 %v176_v60, %v7760_v7  ;;  %2819 = vmatpush.msrb.mxu3 %v2818_v62  ;;  %v7775_v15 = vand.u32 4294901760, %v175_v49 }
 0x20d   :  { %10888 = vst [vmem:[#allocation18_spill] sm:$0xff] %v7749_v10 }
 0x20e   :  { %2571 = vmatmul.f32.vlgmr.msra.gmra.mxu1 %v7203_v32  ;;  %v1565_v32 = vadd.f32 %v7556_v47, %v1442_v46  ;;  %2971 = vmatpush.msrb.mxu0 %v7769_v52  ;;  %v7790_v47 = vsub.f32 %v175_v49, %v7775_v15  ;;  %v10893_v10 = vand.u32 4294901760, %v7769_v52  ;;  %v7805_v49 = vand.u32 4294901760, %v173_v1 }
 0x20f   :  { %2246 = vmatmul.f32.gmra.mxu2 %v7489_v9  ;;  %2363 = vmatmul.f32.gmra.mxu3 %v10889_v34  ;;  %v7787_v34 = vand.u32 4294901760, %v174_v39 }
 0x210   :  { %2646 = vmatpush.msrb.mxu2 %v7775_v15  ;;  %v2823_v55 = vsub.f32 %v7769_v52, %v10893_v10  ;;  %3097 = vmatpush.msrb.mxu1 %v7775_v15  ;;  %v172_v10 = vld [vmem:[%s10514_s1 + $0x1b8] sm:$0xff] }
 0x211   :  { %v7778_v31 = vpop.f32.mrf.mxu0  ;;  %2974 = vmatpush.msrb.mxu0 %v7790_v47 }
 0x212   :  { %10890 = vst [vmem:[#allocation11_spill] sm:$0xff] %v7778_v31  ;;  %v1705_v60 = vpop.f32.mrf.mxu2  ;;  %v1798_v62 = vpop.f32.mrf.mxu3  ;;  %2648 = vmatpush.msrb.mxu2 %v7787_v34  ;;  %3099 = vmatpush.msrb.mxu1 %v7787_v34  ;;  %v169_v31 = vld [vmem:[%s10514_s1 + $0x1a0] sm:$0xff] }
 0x213   :  { %v1706_v46 = vadd.f32 %v1705_v60, %v1565_v32  ;;  %v7792_v40 = vadd.f32 %v1798_v62, %v1702_v44  ;;  %v7794_v11 = vpop.f32.mrf.mxu1  ;;  %v10622_v44 = vand.u32 4294901760, %v7790_v47  ;;  %v7809_v32 = vsub.f32 %v174_v39, %v7787_v34 }
 0x214   :  { %10892 = vst [vmem:[#allocation14_spill] sm:$0xff] %v7794_v11  ;;  %2482 = vmatmul.f32.gmra.mxu0 %v7272_v54  ;;  %v2824_v60 = vand.u32 4294901760, %v2823_v55  ;;  %2650 = vmatpush.msrb.mxu2 %v7805_v49  ;;  %v7818_v62 = vand.u32 4294901760, %v172_v10  ;;  %v7836_v55 = vand.u32 4294901760, %v171_v41 }
 0x215   :  { %10891 = vst [vmem:[#allocation20_spill] sm:$0xff] %v7792_v40  ;;  %v2829_v39 = vsub.f32 %v7790_v47, %v10622_v44  ;;  %v7825_v40 = vsub.f32 %v173_v1, %v7805_v49  ;;  %v10895_v1 = vand.u32 4294901760, %v7809_v32  ;;  %2977 = vmatpush.msrb.mxu0 %v7809_v32  ;;  %3101 = vmatpush.msrb.mxu1 %v7805_v49 }
 0x216   :  { %2575 = vmatmul.f32.gmra.mxu1 %v7237_v43  ;;  %v10894_v43 = vand.u32 4294901760, %v7489_v9  ;;  %2825 = vmatpush.msrb.mxu3 %v2824_v60  ;;  %v7849_v60 = vsub.f32 %v172_v10, %v7818_v62  ;;  %v7868_v48 = vsub.f32 %v171_v41, %v7836_v55  ;;  %v168_v41 = vld [vmem:[%s10514_s1 + $0x198] sm:$0xff] }
 0x217   :  { %2251 = vmatmul.f32.gmra.mxu2 %v7513_v26  ;;  %v2830_v44 = vand.u32 4294901760, %v2829_v39  ;;  %v2835_v21 = vsub.f32 %v7809_v32, %v10895_v1  ;;  %v10625_v59 = vand.u32 4294901760, %v7825_v40  ;;  %2980 = vmatpush.msrb.mxu0 %v7825_v40 }
 0x218   :  { %2369 = vmatmul.f32.gmra.mxu3 %v10894_v43  ;;  %2652 = vmatpush.msrb.mxu2 %v7818_v62  ;;  %v170_v43 = vld [vmem:[%s10514_s1 + $0x1a8] sm:$0xff] }
 0x219   :  { %v7843_v9 = vpop.f32.mrf.mxu0  ;;  %2831 = vmatpush.msrb.mxu3 %v2830_v44  ;;  %v7854_v1 = vand.u32 4294901760, %v170_v43  ;;  %v2836_v45 = vand.u32 4294901760, %v2835_v21  ;;  %v2841_v24 = vsub.f32 %v7825_v40, %v10625_v59  ;;  %v10626_v44 = vand.u32 4294901760, %v7849_v60  ;;  %3103 = vmatpush.msrb.mxu1 %v7818_v62 }
 0x21a   :  { %10896 = vst [vmem:[#allocation22_spill] sm:$0xff] %v7843_v9  ;;  %v1709_v39 = vpop.f32.mrf.mxu2  ;;  %v1802_v58 = vpop.f32.mrf.mxu3  ;;  %2654 = vmatpush.msrb.mxu2 %v7836_v55  ;;  %v7874_v21 = vand.u32 4294901760, %v169_v31  ;;  %2983 = vmatpush.msrb.mxu0 %v7849_v60  ;;  %v1452_v59 = vadd.f32 %v7577_v63, %v7433_v18 }
 0x21b   :  { %v1710_v9 = vadd.f32 %v1709_v39, %v1571_v50  ;;  %v7859_v61 = vadd.f32 %v1802_v58, %v1706_v46  ;;  %v7861_v10 = vpop.f32.mrf.mxu1  ;;  %v2842_v58 = vand.u32 4294901760, %v2841_v24  ;;  %v7877_v46 = vsub.f32 %v170_v43, %v7854_v1  ;;  %2837 = vmatpush.msrb.mxu3 %v2836_v45  ;;  %3105 = vmatpush.msrb.mxu1 %v7836_v55 }
 0x21c   :  { %10898 = vst [vmem:[#allocation25_spill] sm:$0xff] %v7861_v10  ;;  %2486 = vmatmul.f32.gmra.mxu0 %v7306_v29  ;;  %2656 = vmatpush.msrb.mxu2 %v7854_v1  ;;  %v2847_v50 = vsub.f32 %v7849_v60, %v10626_v44  ;;  %v7889_v24 = vand.u32 4294901760, %v168_v41  ;;  %v7893_v45 = vsub.f32 %v169_v31, %v7874_v21  ;;  %v10899_v44 = vand.u32 4294901760, %v7513_v26 }
 0x21d   :  { %10897 = vst [vmem:[#allocation16_spill] sm:$0xff] %v7859_v61  ;;  %v10900_v61 = vand.u32 4294901760, %v7868_v48  ;;  %2843 = vmatpush.msrb.mxu3 %v2842_v58  ;;  %v10901_v18 = vand.u32 4294901760, %v7877_v46  ;;  %2986 = vmatpush.msrb.mxu0 %v7868_v48 }
 0x21e   :  { %2579 = vmatmul.f32.gmra.mxu1 %v7272_v54  ;;  %2658 = vmatpush.msrb.mxu2 %v7874_v21  ;;  %v2848_v39 = vand.u32 4294901760, %v2847_v50  ;;  %v167_v54 = vld [vmem:[%s10514_s1 + $0x190] sm:$0xff]  ;;  %v1577_v50 = vadd.f32 %v7606_v19, %v1452_v59  ;;  %v10903_v19 = vand.u32 4294901760, %v7893_v45 }
 0x21f   :  { %2256 = vmatmul.f32.gmra.mxu2 %v7537_v38  ;;  %v2853_v43 = vsub.f32 %v7868_v48, %v10900_v61  ;;  %v7907_v31 = vand.u32 4294901760, %v167_v54  ;;  %v2859_v63 = vsub.f32 %v7877_v46, %v10901_v18  ;;  %v166_v61 = vld [vmem:[%s10514_s1 + $0x188] sm:$0xff]  ;;  %2989 = vmatpush.msrb.mxu0 %v7877_v46 }
 0x220   :  { %2375 = vmatmul.f32.gmra.mxu3 %v10899_v44  ;;  %2660 = vmatpush.msrb.mxu2 %v7889_v24  ;;  %v7914_v44 = vsub.f32 %v168_v41, %v7889_v24  ;;  %v7925_v41 = vand.u32 4294901760, %v166_v61  ;;  %v2865_v59 = vsub.f32 %v7893_v45, %v10903_v19 }
 0x221   :  { %v7917_v10 = vpop.f32.mrf.mxu0  ;;  %v2854_v11 = vand.u32 4294901760, %v2853_v43  ;;  %2849 = vmatpush.msrb.mxu3 %v2848_v39  ;;  %v2860_v26 = vand.u32 4294901760, %v2859_v63  ;;  %3107 = vmatpush.msrb.mxu1 %v7854_v1  ;;  %v7941_v63 = vand.u32 4294901760, %v165_v30 }
 0x222   :  { %10902 = vst [vmem:[#allocation30_spill] sm:$0xff] %v7917_v10  ;;  %v1713_v58 = vpop.f32.mrf.mxu2  ;;  %v1806_v18 = vpop.f32.mrf.mxu3  ;;  %2662 = vmatpush.msrb.mxu2 %v7907_v31  ;;  %v10627_v39 = vand.u32 4294901760, %v7914_v44  ;;  %2992 = vmatpush.msrb.mxu0 %v7893_v45 }
 0x223   :  { %v1714_v43 = vadd.f32 %v1713_v58, %v1577_v50  ;;  %v7930_v10 = vadd.f32 %v1806_v18, %v1710_v9  ;;  %v7932_v20 = vpop.f32.mrf.mxu1  ;;  %2855 = vmatpush.msrb.mxu3 %v2854_v11  ;;  %v2866_v50 = vand.u32 4294901760, %v2865_v59  ;;  %v7944_v9 = vsub.f32 %v167_v54, %v7907_v31  ;;  %3109 = vmatpush.msrb.mxu1 %v7874_v21 }
 0x224   :  { %2490 = vmatmul.f32.gmra.mxu0 %v7339_v33  ;;  %2664 = vmatpush.msrb.mxu2 %v7925_v41  ;;  %v2871_v58 = vsub.f32 %v7914_v44, %v10627_v39  ;;  %v7951_v18 = vsub.f32 %v166_v61, %v7925_v41  ;;  %v7957_v19 = vsub.f32 %v165_v30, %v7941_v63  ;;  %v10905_v59 = vand.u32 4294901760, %v7537_v38 }
 0x225   :  { %10904 = vst [vmem:[#allocation33_spill] sm:$0xff] %v7930_v10  ;;  %2861 = vmatpush.msrb.mxu3 %v2860_v26  ;;  %v10628_v11 = vand.u32 4294901760, %v7944_v9  ;;  %v1457_v54 = vadd.f32 %v7602_v3, %v7457_v23  ;;  %2995 = vmatpush.msrb.mxu0 %v7914_v44 }
 0x226   :  { %2583 = vmatmul.f32.gmra.mxu1 %v7306_v29  ;;  %v2872_v61 = vand.u32 4294901760, %v2871_v58  ;;  %v10629_v39 = vand.u32 4294901760, %v7951_v18  ;;  %2666 = vmatpush.msrb.mxu2 %v7941_v63  ;;  %v2888_v30 = vand.u32 4294901760, %v7957_v19 }
 0x227   :  { %2261 = vmatmul.f32.gmra.mxu2 %v7562_v13  ;;  %2867 = vmatpush.msrb.mxu3 %v2866_v50  ;;  %v2877_v29 = vsub.f32 %v7944_v9, %v10628_v11  ;;  %v1583_v26 = vadd.f32 %v7631_v8, %v1457_v54  ;;  %v10906_v8 = vand.u32 4294901760, %v7651_v12  ;;  %v1462_v12 = vadd.f32 %v7627_v36, %v7481_v37 }
 0x228   :  { %2381 = vmatmul.f32.gmra.mxu3 %v10905_v59  ;;  %v2883_v38 = vsub.f32 %v7951_v18, %v10629_v39  ;;  %v2889_v59 = vsub.f32 %v7957_v19, %v2888_v30  ;;  %2998 = vmatpush.msrb.mxu0 %v7944_v9 }
 0x229   :  { %v7971_v23 = vpop.f32.mrf.mxu0  ;;  %2873 = vmatpush.msrb.mxu3 %v2872_v61  ;;  %v2878_v58 = vand.u32 4294901760, %v2877_v29  ;;  %3218 = vmatpush.msra.mxu2 %v10906_v8  ;;  %v24_v29 = vld [vmem:[%s10513_s0 + $0x18] sm:$0xff]  ;;  %v10913_v8 = vand.u32 4294901760, %v7587_v35 }
 0x22a   :  { %v1717_v3 = vpop.f32.mrf.mxu2  ;;  %v1810_v50 = vpop.f32.mrf.mxu3  ;;  %v2884_v39 = vand.u32 4294901760, %v2883_v38  ;;  %3111 = vmatpush.msrb.mxu1 %v7889_v24  ;;  %v2890_v61 = vand.u32 4294901760, %v2889_v59  ;;  %3001 = vmatpush.msrb.mxu0 %v7951_v18 }
 0x22b   :  { %v1718_v54 = vadd.f32 %v1717_v3, %v1583_v26  ;;  %v7983_v11 = vadd.f32 %v1810_v50, %v1714_v43  ;;  %v7985_v10 = vpop.f32.mrf.mxu1  ;;  %2879 = vmatpush.msrb.mxu3 %v2878_v58  ;;  %v10907_v43 = vand.u32 4294901760, %v7562_v13  ;;  %v1589_v26 = vadd.f32 %v7663_v53, %v1462_v12  ;;  %v10909_v53 = vld [vmem:[#allocation9_spill] sm:$0xff]  ;;  %v10912_v58 = vld [vmem:[#allocation28_spill] sm:$0xff] }
 0x22c   :  { %2494 = vmatmul.f32.gmra.mxu0 %v7372_v6  ;;  %3113 = vmatpush.msrb.mxu1 %v7907_v31  ;;  %v10908_v13 = vand.u32 4294901760, %v7683_v27  ;;  %v8013_v50 = vand.u32 4294901760, %v24_v29  ;;  %v10911_v27 = vand.u32 4294901760, %v7740_v22  ;;  %v1467_v59 = vadd.f32 %v7657_v2, %v10912_v58 }
 0x22d   :  { %2885 = vmatpush.msrb.mxu3 %v2884_v39  ;;  %3004 = vmatpush.msrb.mxu0 %v7957_v19  ;;  %v10934_v19 = vld [vmem:[#allocation14_spill] sm:$0xff] }
 0x22e   :  { %2587 = vmatmul.f32.gmra.mxu1 %v7339_v33  ;;  %3222 = vmatpush.msra.mxu2 %v10908_v13  ;;  %v10921_v13 = vand.u32 4294901760, %v7849_v60 }
 0x22f   :  { %2266 = vmatmul.f32.gmra.mxu2 %v7587_v35  ;;  %2891 = vmatpush.msrb.mxu3 %v2890_v61  ;;  %v10915_v61 = vand.u32 4294901760, %v7790_v47  ;;  %v10918_v47 = vand.u32 4294901760, %v7825_v40 }
 0x230   :  { %2387 = vmatmul.f32.gmra.mxu3 %v10907_v43  ;;  %3115 = vmatpush.msrb.mxu1 %v7925_v41 }
 0x231   :  { %v8003_v38 = vpop.f32.mrf.mxu0  ;;  %3345 = vmatpush.msra.mxu3 %v7642_v14  ;;  %v10910_v14 = vand.u32 4294901760, %v7711_v51  ;;  %v1595_v51 = vadd.f32 %v7694_v28, %v1467_v59  ;;  %v10917_v28 = vand.u32 4294901760, %v7809_v32  ;;  %v36_v32 = vld [vmem:[%s10513_s0 + $0x78] sm:$0xff] }
 0x232   :  { %v1721_v37 = vpop.f32.mrf.mxu2  ;;  %v1814_v33 = vpop.f32.mrf.mxu3  ;;  %3117 = vmatpush.msrb.mxu1 %v7941_v63 }
 0x233   :  { %v1722_v36 = vadd.f32 %v1721_v37, %v1589_v26  ;;  %v8009_v39 = vadd.f32 %v1814_v33, %v1718_v54  ;;  %v8011_v3 = vpop.f32.mrf.mxu1  ;;  %3347 = vmatpush.msra.mxu3 %v7674_v5  ;;  %3226 = vmatpush.msra.mxu2 %v10910_v14  ;;  %v8030_v5 = vsub.f32 %v24_v29, %v8013_v50  ;;  %v10916_v29 = vld [vmem:[#allocation19_spill] sm:$0xff]  ;;  %v10919_v26 = vld [vmem:[#allocation21_spill] sm:$0xff]  ;;  %v10920_v33 = vand.u32 4294901760, %v7612_v57 }
 0x234   :  { %2498 = vmatmul.f32.gmra.mxu0 %v10909_v53  ;;  %v1472_v37 = vadd.f32 %v7687_v0, %v10919_v26  ;;  %v10922_v14 = vand.u32 4294901760, %v7868_v48  ;;  %v10931_v26 = vand.u32 4294901760, %v7951_v18 }
 0x235   :  { %3349 = vmatpush.msra.mxu3 %v7702_v4  ;;  %3230 = vmatpush.msra.mxu2 %v10911_v27  ;;  %v30_v4 = vld [vmem:[%s10513_s0 + $0x48] sm:$0xff] }
 0x236   :  { %2591 = vmatmul.f32.gmra.mxu1 %v7372_v6  ;;  %v10914_v6 = vand.u32 4294901760, %v7769_v52  ;;  %v8041_v35 = vand.u32 4294901760, %v30_v4  ;;  %v10638_v52 = vand.u32 4294901760, %v8030_v5  ;;  %v1601_v0 = vadd.f32 %v7722_v25, %v1472_v37  ;;  %v10923_v25 = vld [vmem:[#allocation5_spill] sm:$0xff] }
 0x237   :  { %2271 = vmatmul.f32.gmra.mxu2 %v7612_v57  ;;  %3351 = vmatpush.msra.mxu3 %v7731_v42 }
 0x238   :  { %2393 = vmatmul.f32.gmra.mxu3 %v10913_v8  ;;  %3234 = vmatpush.msra.mxu2 %v10914_v6  ;;  %v10924_v8 = vand.u32 4294901760, %v7877_v46 }
 0x239   :  { %v8039_v2 = vpop.f32.mrf.mxu0  ;;  %3353 = vmatpush.msra.mxu3 %v7760_v7  ;;  %v8057_v7 = vsub.f32 %v30_v4, %v8041_v35  ;;  %v10926_v4 = vld [vmem:[#allocation26_spill] sm:$0xff] }
 0x23a   :  { %v1725_v22 = vpop.f32.mrf.mxu2  ;;  %v1818_v54 = vpop.f32.mrf.mxu3  ;;  %3238 = vmatpush.msra.mxu2 %v10915_v61  ;;  %v1868_v6 = vadd.f32 %v7715_v56, %v10926_v4  ;;  %v10938_v4 = vld [vmem:[#allocation25_spill] sm:$0xff] }
 0x23b   :  { %v1726_v12 = vadd.f32 %v1725_v22, %v1595_v51  ;;  %v8046_v43 = vadd.f32 %v1818_v54, %v1722_v36  ;;  %v8048_v42 = vpop.f32.mrf.mxu1  ;;  %3355 = vmatpush.msra.mxu3 %v7775_v15  ;;  %v2670_v15 = vsub.f32 %v8030_v5, %v10638_v52  ;;  %v10927_v51 = vand.u32 4294901760, %v7637_v17 }
 0x23c   :  { %2502 = vmatmul.f32.gmra.mxu0 %v10916_v29  ;;  %3242 = vmatpush.msra.mxu2 %v10917_v28  ;;  %v10928_v22 = vand.u32 4294901760, %v7914_v44 }
 0x23d   :  { %3357 = vmatpush.msra.mxu3 %v7787_v34  ;;  %v2671_v59 = vand.u32 4294901760, %v2670_v15  ;;  %v8086_v34 = vand.u32 4294901760, %v36_v32 }
 0x23e   :  { %2595 = vmatmul.f32.gmra.mxu1 %v10909_v53  ;;  %3246 = vmatpush.msra.mxu2 %v10918_v47  ;;  %v10637_v53 = vand.u32 4294901760, %v8057_v7 }
 0x23f   :  { %2276 = vmatmul.f32.gmra.mxu2 %v7637_v17  ;;  %3359 = vmatpush.msra.mxu3 %v7805_v49  ;;  %v10925_v49 = vand.u32 4294901760, %v7893_v45  ;;  %v8103_v46 = vsub.f32 %v36_v32, %v8086_v34  ;;  %v2089_v45 = vadd.f32 %v7751_v16, %v1868_v6  ;;  %v10930_v16 = vld [vmem:[#allocation23_spill] sm:$0xff] }
 0x240   :  { %2399 = vmatmul.f32.gmra.mxu3 %v10920_v33  ;;  %3250 = vmatpush.msra.mxu2 %v10921_v13  ;;  %v2678_v48 = vsub.f32 %v8057_v7, %v10637_v53 }
 0x241   :  { %v8076_v40 = vpop.f32.mrf.mxu0  ;;  %3361 = vmatpush.msra.mxu3 %v7818_v62  ;;  %v42_v62 = vld [vmem:[%s10513_s0 + $0xa8] sm:$0xff]  ;;  %v10635_v44 = vand.u32 4294901760, %v8103_v46 }
 0x242   :  { %v1729_v36 = vpop.f32.mrf.mxu2  ;;  %v1822_v57 = vpop.f32.mrf.mxu3  ;;  %3254 = vmatpush.msra.mxu2 %v10922_v14  ;;  %v2679_v61 = vand.u32 4294901760, %v2678_v48 }
 0x243   :  { %v1730_v27 = vadd.f32 %v1729_v36, %v1601_v0  ;;  %v8082_v58 = vadd.f32 %v1822_v57, %v1726_v12  ;;  %v8084_v60 = vpop.f32.mrf.mxu1  ;;  %3363 = vmatpush.msra.mxu3 %v7836_v55  ;;  %v10929_v12 = vand.u32 4294901760, %v7944_v9  ;;  %v8122_v55 = vand.u32 4294901760, %v42_v62  ;;  %v10933_v9 = vld [vmem:[#allocation10_spill] sm:$0xff] }
 0x244   :  { %2506 = vmatmul.f32.gmra.mxu0 %v10923_v25  ;;  %3258 = vmatpush.msra.mxu2 %v10924_v8  ;;  %v2686_v33 = vsub.f32 %v8103_v46, %v10635_v44  ;;  %v10937_v8 = vld [vmem:[#allocation11_spill] sm:$0xff] }
 0x245   :  { %3365 = vmatpush.msra.mxu3 %v7854_v1  ;;  %v10932_v1 = vld [vmem:[#allocation24_spill] sm:$0xff]  ;;  %v8138_v18 = vsub.f32 %v42_v62, %v8122_v55 }
 0x246   :  { %2599 = vmatmul.f32.gmra.mxu1 %v10916_v29  ;;  %3262 = vmatpush.msra.mxu2 %v10925_v49  ;;  %v1876_v37 = vadd.f32 %v10933_v9, %v10932_v1  ;;  %v10941_v1 = vld [vmem:[#allocation22_spill] sm:$0xff] }
 0x247   :  { %2672 = vmatmul.f32.vlgmr.msrb.gmra.mxu2 %v2671_v59  ;;  %3367 = vmatpush.msra.mxu3 %v7874_v21  ;;  %v48_v21 = vld [vmem:[%s10513_s0 + $0xd8] sm:$0xff]  ;;  %v10634_v59 = vand.u32 4294901760, %v8138_v18 }
 0x248   :  { %2405 = vmatmul.f32.gmra.mxu3 %v10927_v51  ;;  %3266 = vmatpush.msra.mxu2 %v10928_v22  ;;  %v8147_v0 = vand.u32 4294901760, %v48_v21 }
 0x249   :  { %v8112_v54 = vpop.f32.mrf.mxu0  ;;  %3369 = vmatpush.msra.mxu3 %v7889_v24  ;;  %v2694_v49 = vsub.f32 %v8138_v18, %v10634_v59  ;;  %v10954_v59 = vld [vmem:[#allocation18_spill] sm:$0xff] }
 0x24a   :  { %v1826_v56 = vpop.f32.mrf.mxu3  ;;  %v2202_v17 = vpop.f32.mrf.mxu2  ;;  %3270 = vmatpush.msra.mxu2 %v10929_v12  ;;  %v8159_v24 = vsub.f32 %v48_v21, %v8147_v0 }
 0x24b   :  { %v8117_v29 = vadd.f32 %v1826_v56, %v1730_v27  ;;  %v2203_v28 = vadd.f32 %v2202_v17, %v2089_v45  ;;  %v8119_v47 = vpop.f32.mrf.mxu1  ;;  %3371 = vmatpush.msra.mxu3 %v7907_v31  ;;  %v2687_v27 = vand.u32 4294901760, %v2686_v33  ;;  %v10936_v31 = vld [vmem:[#allocation31_spill] sm:$0xff] }
 0x24c   :  { %2510 = vmatmul.f32.gmra.mxu0 %v10930_v16  ;;  %3274 = vmatpush.msra.mxu2 %v10931_v26  ;;  %v1884_v48 = vadd.f32 %v10937_v8, %v10936_v31  ;;  %v10633_v22 = vand.u32 4294901760, %v8159_v24  ;;  %v10940_v26 = vld [vmem:[#allocation29_spill] sm:$0xff]  ;;  %v60_v33 = vld [vmem:[%s10513_s0 + $0x138] sm:$0xff] }
 0x24d   :  { %3373 = vmatpush.msra.mxu3 %v7925_v41  ;;  %v54_v41 = vld [vmem:[%s10513_s0 + $0x108] sm:$0xff]  ;;  %v1892_v9 = vadd.f32 %v10941_v1, %v10940_v26  ;;  %v8203_v8 = vand.u32 4294901760, %v60_v33 }
 0x24e   :  { %2603 = vmatmul.f32.gmra.mxu1 %v10923_v25  ;;  %3278 = vmatpush.msra.mxu2 %v2888_v30  ;;  %v2093_v30 = vadd.f32 %v10934_v19, %v1876_v37  ;;  %v10935_v25 = vld [vmem:[#allocation27_spill] sm:$0xff]  ;;  %v2097_v6 = vadd.f32 %v10938_v4, %v1884_v48  ;;  %v8179_v12 = vand.u32 4294901760, %v54_v41  ;;  %v10943_v48 = vld [vmem:[#allocation6_spill] sm:$0xff] }
 0x24f   :  { %2680 = vmatmul.f32.gmra.mxu2 %v2679_v61  ;;  %3375 = vmatpush.msra.mxu3 %v7941_v63  ;;  %v2695_v61 = vand.u32 4294901760, %v2694_v49  ;;  %v2101_v21 = vadd.f32 %v7932_v20, %v1892_v9  ;;  %10942 = vst [vmem:[#allocation9_spill] sm:$0xff] %v8203_v8  ;;  %v10944_v49 = vld [vmem:[#allocation8_spill] sm:$0xff]  ;;  %v10945_v20 = vld [vmem:[#allocation30_spill] sm:$0xff] }
 0x250   :  { %2893 = vmatmul.f32.vlgmr.msrb.gmra.mxu3 %v8013_v50  ;;  %v8190_v37 = vsub.f32 %v54_v41, %v8179_v12  ;;  %v1900_v41 = vadd.f32 %v10945_v20, %v10944_v49  ;;  %v72_v49 = vld [vmem:[%s10513_s0 + $0x198] sm:$0xff] }
 0x251   :  { %v8145_v15 = vpop.f32.mrf.mxu0 }
 0x252   :  { %v2207_v32 = vpop.f32.mrf.mxu2  ;;  %v2316_v13 = vpop.f32.mrf.mxu3  ;;  %v10632_v31 = vand.u32 4294901760, %v8190_v37 }
 0x253   :  { %v2208_v36 = vadd.f32 %v2207_v32, %v2093_v30  ;;  %v8150_v57 = vadd.f32 %v2316_v13, %v2203_v28  ;;  %v8152_v14 = vpop.f32.mrf.mxu1  ;;  %v10939_v28 = vld [vmem:[#allocation12_spill] sm:$0xff] }
 0x254   :  { %2514 = vmatmul.f32.gmra.mxu0 %v10935_v25  ;;  %v2710_v4 = vsub.f32 %v8190_v37, %v10632_v31 }
 0x256   :  { %2607 = vmatmul.f32.gmra.mxu1 %v10930_v16  ;;  %v2702_v16 = vsub.f32 %v8159_v24, %v10633_v22 }
 0x257   :  { %2688 = vmatmul.f32.gmra.mxu2 %v2687_v27 }
 0x258   :  { %2897 = vmatmul.f32.gmra.mxu3 %v8041_v35  ;;  %v2703_v13 = vand.u32 4294901760, %v2702_v16 }
 0x259   :  { %v8172_v51 = vpop.f32.mrf.mxu0 }
 0x25a   :  { %v2212_v62 = vpop.f32.mrf.mxu2  ;;  %v2322_v63 = vpop.f32.mrf.mxu3 }
 0x25b   :  { %v2213_v45 = vadd.f32 %v2212_v62, %v2097_v6  ;;  %v8175_v56 = vadd.f32 %v2322_v63, %v2208_v36  ;;  %v8177_v17 = vpop.f32.mrf.mxu1  ;;  %v8214_v6 = vsub.f32 %v60_v33, %v8203_v8  ;;  %v66_v62 = vld [vmem:[%s10513_s0 + $0x168] sm:$0xff]  ;;  %v2105_v63 = vadd.f32 %v7985_v10, %v1900_v41 }
 0x25c   :  { %2518 = vmatmul.f32.gmra.mxu0 %v10939_v28  ;;  %v8222_v16 = vand.u32 4294901760, %v66_v62 }
 0x25d   :  { %v10630_v33 = vand.u32 4294901760, %v8214_v6 }
 0x25e   :  { %2611 = vmatmul.f32.gmra.mxu1 %v10935_v25  ;;  %10946 = vst [vmem:[#allocation28_spill] sm:$0xff] %v8222_v16  ;;  %v8232_v10 = vsub.f32 %v66_v62, %v8222_v16 }
 0x25f   :  { %2696 = vmatmul.f32.gmra.mxu2 %v2695_v61 }
 0x260   :  { %2901 = vmatmul.f32.gmra.mxu3 %v8086_v34  ;;  %v10631_v62 = vand.u32 4294901760, %v8232_v10 }
 0x261   :  { %v8196_v19 = vpop.f32.mrf.mxu0 }
 0x262   :  { %v2217_v30 = vpop.f32.mrf.mxu2  ;;  %v2328_v32 = vpop.f32.mrf.mxu3 }
 0x263   :  { %v2218_v36 = vadd.f32 %v2217_v30, %v2101_v21  ;;  %v8198_v27 = vadd.f32 %v2328_v32, %v2213_v45  ;;  %v8200_v25 = vpop.f32.mrf.mxu1  ;;  %v2711_v21 = vand.u32 4294901760, %v2710_v4  ;;  %v10947_v30 = vld [vmem:[#allocation13_spill] sm:$0xff] }
 0x264   :  { %2522 = vmatmul.f32.gmra.mxu0 %v10943_v48  ;;  %v10948_v32 = vld [vmem:[#allocation17_spill] sm:$0xff] }
 0x266   :  { %2615 = vmatmul.f32.gmra.mxu1 %v10939_v28 }
 0x267   :  { %2704 = vmatmul.f32.gmra.mxu2 %v2703_v13  ;;  %v1908_v13 = vadd.f32 %v7971_v23, %v10948_v32  ;;  %v10950_v32 = vld [vmem:[#allocation7_spill] sm:$0xff] }
 0x268   :  { %2905 = vmatmul.f32.gmra.mxu3 %v8122_v55 }
 0x269   :  { %v8220_v45 = vpop.f32.mrf.mxu0  ;;  %v2109_v20 = vadd.f32 %v8011_v3, %v1908_v13  ;;  %v2726_v3 = vsub.f32 %v8232_v10, %v10631_v62  ;;  %v10951_v13 = vld [vmem:[#allocation32_spill] sm:$0xff] }
 0x26a   :  { %v2222_v61 = vpop.f32.mrf.mxu2  ;;  %v2334_v28 = vpop.f32.mrf.mxu3 }
 0x26b   :  { %v2223_v26 = vadd.f32 %v2222_v61, %v2105_v63  ;;  %v8224_v1 = vadd.f32 %v2334_v28, %v2218_v36  ;;  %v8226_v9 = vpop.f32.mrf.mxu1  ;;  %v2718_v36 = vsub.f32 %v8214_v6, %v10630_v33  ;;  %v1916_v33 = vadd.f32 %v8003_v38, %v10951_v13  ;;  %v10953_v13 = vld [vmem:[#allocation15_spill] sm:$0xff] }
 0x26c   :  { %2526 = vmatmul.f32.gmra.mxu0 %v10947_v30  ;;  %v2727_v62 = vand.u32 4294901760, %v2726_v3  ;;  %v84_v3 = vld [vmem:[%s10513_s0 + $0x1f8] sm:$0xff] }
 0x26d   :  { %v2719_v28 = vand.u32 4294901760, %v2718_v36  ;;  %v78_v36 = vld [vmem:[%s10513_s0 + $0x1c8] sm:$0xff] }
 0x26e   :  { %2619 = vmatmul.f32.gmra.mxu1 %v10943_v48 }
 0x26f   :  { %2712 = vmatmul.f32.gmra.mxu2 %v2711_v21  ;;  %v8251_v21 = vand.u32 4294901760, %v72_v49 }
 0x270   :  { %2909 = vmatmul.f32.gmra.mxu3 %v8147_v0 }
 0x271   :  { %v8244_v48 = vpop.f32.mrf.mxu0  ;;  %10949 = vst [vmem:[#allocation19_spill] sm:$0xff] %v8251_v21 }
 0x272   :  { %v2227_v41 = vpop.f32.mrf.mxu2  ;;  %v2340_v4 = vpop.f32.mrf.mxu3 }
 0x273   :  { %v2228_v23 = vadd.f32 %v2227_v41, %v2109_v20  ;;  %v8247_v63 = vadd.f32 %v2340_v4, %v2223_v26  ;;  %v8249_v61 = vpop.f32.mrf.mxu1  ;;  %v8262_v26 = vsub.f32 %v72_v49, %v8251_v21  ;;  %v2113_v20 = vadd.f32 %v8048_v42, %v1916_v33 }
 0x274   :  { %2530 = vmatmul.f32.gmra.mxu0 %v10950_v32  ;;  %v8275_v49 = vand.u32 4294901760, %v78_v36  ;;  %v1924_v42 = vadd.f32 %v8039_v2, %v10954_v59  ;;  %v8294_v59 = vand.u32 4294901760, %v84_v3 }
 0x276   :  { %2623 = vmatmul.f32.gmra.mxu1 %v10947_v30  ;;  %10952 = vst [vmem:[#allocation21_spill] sm:$0xff] %v8275_v49 }
 0x277   :  { %2720 = vmatmul.f32.gmra.mxu2 %v2719_v28  ;;  %v10636_v28 = vand.u32 4294901760, %v8262_v26  ;;  %10955 = vst [vmem:[#allocation5_spill] sm:$0xff] %v8294_v59 }
 0x278   :  { %2913 = vmatmul.f32.gmra.mxu3 %v8179_v12 }
 0x279   :  { %v8268_v30 = vpop.f32.mrf.mxu0  ;;  %v2734_v33 = vsub.f32 %v8262_v26, %v10636_v28 }
 0x27a   :  { %v2232_v41 = vpop.f32.mrf.mxu2  ;;  %v2346_v4 = vpop.f32.mrf.mxu3 }
 0x27b   :  { %v2233_v31 = vadd.f32 %v2232_v41, %v2113_v20  ;;  %v8270_v22 = vadd.f32 %v2346_v4, %v2228_v23  ;;  %v8272_v38 = vpop.f32.mrf.mxu1  ;;  %v8286_v23 = vsub.f32 %v78_v36, %v8275_v49  ;;  %v2117_v20 = vadd.f32 %v8084_v60, %v1924_v42  ;;  %v10956_v42 = vld [vmem:[#allocation20_spill] sm:$0xff] }
 0x27c   :  { %2534 = vmatmul.f32.gmra.mxu0 %v10953_v13  ;;  %v2735_v28 = vand.u32 4294901760, %v2734_v33  ;;  %v8304_v60 = vsub.f32 %v84_v3, %v8294_v59  ;;  %v1932_v53 = vadd.f32 %v8076_v40, %v10956_v42  ;;  %v90_v33 = vld [vmem:[%s10513_s0 + $0x228] sm:$0xff] }
 0x27d   :  { %v10641_v36 = vand.u32 4294901760, %v8286_v23 }
 0x27e   :  { %2627 = vmatmul.f32.gmra.mxu1 %v10950_v32 }
 0x27f   :  { %2728 = vmatmul.f32.gmra.mxu2 %v2727_v62 }
 0x280   :  { %2917 = vmatmul.f32.gmra.mxu3 %v8203_v8 }
 0x281   :  { %v8292_v32 = vpop.f32.mrf.mxu0 }
 0x282   :  { %v2237_v41 = vpop.f32.mrf.mxu2  ;;  %v2352_v2 = vpop.f32.mrf.mxu3 }
 0x283   :  { %v2238_v62 = vadd.f32 %v2237_v41, %v2117_v20  ;;  %v8296_v4 = vadd.f32 %v2352_v2, %v2233_v31  ;;  %v8298_v44 = vpop.f32.mrf.mxu1  ;;  %v2742_v31 = vsub.f32 %v8286_v23, %v10641_v36  ;;  %v2121_v20 = vadd.f32 %v8119_v47, %v1932_v53  ;;  %v10960_v47 = vld [vmem:[#allocation16_spill] sm:$0xff] }
 0x284   :  { %3007 = vmatmul.f32.vlgmr.msrb.gmra.mxu0 %v8030_v5  ;;  %v10644_v2 = vand.u32 4294901760, %v8304_v60  ;;  %v10959_v36 = vand.u32 4294901760, %v8030_v5  ;;  %v1940_v8 = vadd.f32 %v8112_v54, %v10960_v47  ;;  %v10962_v47 = vand.u32 4294901760, %v8057_v7 }
 0x285   :  { %v2743_v52 = vand.u32 4294901760, %v2742_v31  ;;  %v96_v31 = vld [vmem:[%s10513_s0 + $0x258] sm:$0xff] }
 0x286   :  { %2631 = vmatmul.f32.gmra.mxu1 %v10953_v13  ;;  %v2750_v53 = vsub.f32 %v8304_v60, %v10644_v2  ;;  %v2125_v5 = vadd.f32 %v8152_v14, %v1940_v8  ;;  %v10963_v14 = vld [vmem:[#allocation33_spill] sm:$0xff] }
 0x287   :  { %2736 = vmatmul.f32.gmra.mxu2 %v2735_v28  ;;  %v1948_v8 = vadd.f32 %v8145_v15, %v10963_v14 }
 0x288   :  { %2921 = vmatmul.f32.gmra.mxu3 %v8222_v16  ;;  %v8323_v16 = vand.u32 4294901760, %v90_v33 }
 0x289   :  { %v8316_v13 = vpop.f32.mrf.mxu0 }
 0x28a   :  { %v2242_v3 = vpop.f32.mrf.mxu2  ;;  %v2358_v41 = vpop.f32.mrf.mxu3  ;;  %10958 = vst [vmem:[#allocation23_spill] sm:$0xff] %v8323_v16 }
 0x28b   :  { %v2243_v40 = vadd.f32 %v2242_v3, %v2121_v20  ;;  %v8319_v28 = vadd.f32 %v2358_v41, %v2238_v62  ;;  %v8321_v42 = vpop.f32.mrf.mxu1  ;;  %v8335_v62 = vsub.f32 %v90_v33, %v8323_v16  ;;  %v2751_v41 = vand.u32 4294901760, %v2750_v53 }
 0x28c   :  { %3012 = vmatmul.f32.gmra.mxu0 %v8057_v7  ;;  %v8348_v33 = vand.u32 4294901760, %v96_v31  ;;  %v2129_v7 = vadd.f32 %v8177_v17, %v1948_v8  ;;  %v1956_v8 = vadd.f32 %v8172_v51, %v7983_v11 }
 0x28d   :  { %10957 = vst [vmem:[#allocation26_spill] sm:$0xff] %v8319_v28  ;;  %v10647_v54 = vand.u32 4294901760, %v8335_v62 }
 0x28e   :  { %3121 = vmatmul.f32.vlgmr.msrb.gmra.mxu1 %v10959_v36  ;;  %10961 = vst [vmem:[#allocation24_spill] sm:$0xff] %v8348_v33  ;;  %v8360_v53 = vsub.f32 %v96_v31, %v8348_v33 }
 0x28f   :  { %2744 = vmatmul.f32.gmra.mxu2 %v2743_v52 }
 0x290   :  { %2925 = vmatmul.f32.gmra.mxu3 %v8251_v21  ;;  %v10652_v31 = vand.u32 4294901760, %v8360_v53  ;;  %v10966_v21 = vand.u32 4294901760, %v8103_v46 }
 0x291   :  { %v8341_v36 = vpop.f32.mrf.mxu0 }
 0x292   :  { %v2247_v20 = vpop.f32.mrf.mxu2  ;;  %v2364_v3 = vpop.f32.mrf.mxu3 }
 0x293   :  { %v2248_v2 = vadd.f32 %v2247_v20, %v2125_v5  ;;  %v8343_v28 = vadd.f32 %v2364_v3, %v2243_v40  ;;  %v8345_v52 = vpop.f32.mrf.mxu1  ;;  %v2758_v40 = vsub.f32 %v8335_v62, %v10647_v54  ;;  %v102_v5 = vld [vmem:[%s10513_s0 + $0x288] sm:$0xff] }
 0x294   :  { %3017 = vmatmul.f32.gmra.mxu0 %v8103_v46  ;;  %v2133_v46 = vadd.f32 %v8200_v25, %v1956_v8  ;;  %v1964_v8 = vadd.f32 %v8196_v19, %v8009_v39 }
 0x295   :  { %v2759_v54 = vand.u32 4294901760, %v2758_v40  ;;  %v108_v40 = vld [vmem:[%s10513_s0 + $0x2b8] sm:$0xff] }
 0x296   :  { %3127 = vmatmul.f32.gmra.mxu1 %v10962_v47 }
 0x297   :  { %2752 = vmatmul.f32.gmra.mxu2 %v2751_v41  ;;  %v8368_v41 = vand.u32 4294901760, %v102_v5 }
 0x298   :  { %2929 = vmatmul.f32.gmra.mxu3 %v8275_v49 }
 0x299   :  { %v8366_v20 = vpop.f32.mrf.mxu0  ;;  %10964 = vst [vmem:[#allocation10_spill] sm:$0xff] %v8368_v41  ;;  %v8379_v17 = vsub.f32 %v102_v5, %v8368_v41 }
 0x29a   :  { %v2252_v3 = vpop.f32.mrf.mxu2 }
 0x29b   :  { %v2370_v15 = vpop.f32.mrf.mxu3  ;;  %v2253_v47 = vadd.f32 %v2252_v3, %v2129_v7  ;;  %v8372_v49 = vpop.f32.mrf.mxu1  ;;  %v10653_v3 = vand.u32 4294901760, %v8379_v17 }
 0x29c   :  { %v8370_v14 = vadd.f32 %v2370_v15, %v2248_v2  ;;  %3022 = vmatmul.f32.gmra.mxu0 %v8138_v18  ;;  %v2766_v2 = vsub.f32 %v8360_v53, %v10652_v31  ;;  %v10969_v31 = vand.u32 4294901760, %v8138_v18  ;;  %v2137_v18 = vadd.f32 %v8226_v9, %v1964_v8 }
 0x29d   :  { %v2774_v25 = vsub.f32 %v8379_v17, %v10653_v3  ;;  %v1972_v9 = vadd.f32 %v8220_v45, %v8046_v43 }
 0x29e   :  { %10965 = vst [vmem:[#allocation14_spill] sm:$0xff] %v8370_v14  ;;  %3133 = vmatmul.f32.gmra.mxu1 %v10966_v21  ;;  %v2767_v15 = vand.u32 4294901760, %v2766_v2  ;;  %v114_v2 = vld [vmem:[%s10513_s0 + $0x2e8] sm:$0xff] }
 0x29f   :  { %2760 = vmatmul.f32.gmra.mxu2 %v2759_v54  ;;  %v2141_v8 = vadd.f32 %v8249_v61, %v1972_v9  ;;  %v1980_v61 = vadd.f32 %v8244_v48, %v8082_v58  ;;  %v10976_v58 = vand.u32 4294901760, %v8214_v6  ;;  %v1988_v48 = vadd.f32 %v8268_v30, %v8117_v29  ;;  %v196_v29 = vld [vmem:[%s10514_s1 + $0x278] sm:$0xff] }
 0x2a0   :  { %2933 = vmatmul.f32.gmra.mxu3 %v8294_v59  ;;  %v8398_v59 = vand.u32 4294901760, %v108_v40  ;;  %v8480_v30 = vand.u32 4294901760, %v196_v29 }
 0x2a1   :  { %v8391_v21 = vpop.f32.mrf.mxu0 }
 0x2a2   :  { %v2257_v5 = vpop.f32.mrf.mxu2  ;;  %10968 = vst [vmem:[#allocation31_spill] sm:$0xff] %v8398_v59  ;;  %3442 = vmatpush.msra.mxu0 %v8480_v30  ;;  %3893 = vmatpush.msrb.mxu3 %v8480_v30 }
 0x2a3   :  { %v2376_v7 = vpop.f32.mrf.mxu3  ;;  %v2258_v11 = vadd.f32 %v2257_v5, %v2133_v46  ;;  %v8396_v54 = vpop.f32.mrf.mxu1 }
 0x2a4   :  { %v8394_v51 = vadd.f32 %v2376_v7, %v2253_v47  ;;  %3027 = vmatmul.f32.gmra.mxu0 %v8159_v24  ;;  %v8410_v47 = vsub.f32 %v108_v40, %v8398_v59  ;;  %v2775_v7 = vand.u32 4294901760, %v2774_v25  ;;  %v8423_v40 = vand.u32 4294901760, %v114_v2 }
 0x2a6   :  { %10967 = vst [vmem:[#allocation27_spill] sm:$0xff] %v8394_v51  ;;  %3139 = vmatmul.f32.gmra.mxu1 %v10969_v31  ;;  %v10654_v19 = vand.u32 4294901760, %v8410_v47  ;;  %v8435_v25 = vsub.f32 %v114_v2, %v8423_v40  ;;  %v2145_v2 = vadd.f32 %v8272_v38, %v1980_v61  ;;  %v2149_v38 = vadd.f32 %v8298_v44, %v1988_v48 }
 0x2a7   :  { %2768 = vmatmul.f32.gmra.mxu2 %v2767_v15  ;;  %10971 = vst [vmem:[#allocation25_spill] sm:$0xff] %v8423_v40  ;;  %v10972_v15 = vand.u32 4294901760, %v8159_v24  ;;  %v2476_v44 = vadd.f32 %v8292_v32, %v8150_v57  ;;  %v194_v32 = vld [vmem:[%s10514_s1 + $0x268] sm:$0xff] }
 0x2a8   :  { %2937 = vmatmul.f32.gmra.mxu3 %v8323_v16  ;;  %v189_v16 = vld [vmem:[%s10514_s1 + $0x240] sm:$0xff] }
 0x2a9   :  { %v8416_v31 = vpop.f32.mrf.mxu0 }
 0x2aa   :  { %v2262_v46 = vpop.f32.mrf.mxu2 }
 0x2ab   :  { %v2382_v5 = vpop.f32.mrf.mxu3  ;;  %v2263_v3 = vadd.f32 %v2262_v46, %v2137_v18  ;;  %v8420_v39 = vpop.f32.mrf.mxu1 }
 0x2ac   :  { %v8418_v51 = vadd.f32 %v2382_v5, %v2258_v11  ;;  %3032 = vmatmul.f32.gmra.mxu0 %v8190_v37  ;;  %v2782_v11 = vsub.f32 %v8410_v47, %v10654_v19  ;;  %v10974_v19 = vand.u32 4294901760, %v8190_v37 }
 0x2ae   :  { %10970 = vst [vmem:[#allocation11_spill] sm:$0xff] %v8418_v51  ;;  %3145 = vmatmul.f32.gmra.mxu1 %v10972_v15  ;;  %v2783_v45 = vand.u32 4294901760, %v2782_v11 }
 0x2af   :  { %2776 = vmatmul.f32.gmra.mxu2 %v2775_v7  ;;  %v10655_v7 = vand.u32 4294901760, %v8435_v25 }
 0x2b0   :  { %2941 = vmatmul.f32.gmra.mxu3 %v8348_v33 }
 0x2b1   :  { %v8438_v18 = vpop.f32.mrf.mxu0 }
 0x2b2   :  { %v2267_v46 = vpop.f32.mrf.mxu2 }
 0x2b3   :  { %v2388_v24 = vpop.f32.mrf.mxu3  ;;  %v2268_v5 = vadd.f32 %v2267_v46, %v2141_v8  ;;  %v8442_v43 = vpop.f32.mrf.mxu1 }
 0x2b4   :  { %v8440_v15 = vadd.f32 %v2388_v24, %v2263_v3  ;;  %3037 = vmatmul.f32.gmra.mxu0 %v8214_v6  ;;  %v2790_v3 = vsub.f32 %v8435_v25, %v10655_v7  ;;  %v10978_v6 = vand.u32 4294901760, %v8232_v10 }
 0x2b6   :  { %10973 = vst [vmem:[#allocation12_spill] sm:$0xff] %v8440_v15  ;;  %3151 = vmatmul.f32.gmra.mxu1 %v10974_v19  ;;  %v2791_v19 = vand.u32 4294901760, %v2790_v3 }
 0x2b7   :  { %2784 = vmatmul.f32.gmra.mxu2 %v2783_v45 }
 0x2b8   :  { %2945 = vmatmul.f32.gmra.mxu3 %v8368_v41 }
 0x2b9   :  { %v8455_v9 = vpop.f32.mrf.mxu0 }
 0x2ba   :  { %v2272_v11 = vpop.f32.mrf.mxu2 }
 0x2bb   :  { %v2394_v8 = vpop.f32.mrf.mxu3  ;;  %v2273_v46 = vadd.f32 %v2272_v11, %v2145_v2  ;;  %v8459_v37 = vpop.f32.mrf.mxu1 }
 0x2bc   :  { %v8457_v24 = vadd.f32 %v2394_v8, %v2268_v5  ;;  %3042 = vmatmul.f32.gmra.mxu0 %v8232_v10  ;;  %v195_v8 = vld [vmem:[%s10514_s1 + $0x270] sm:$0xff] }
 0x2bd   :  { %v8493_v10 = vand.u32 4294901760, %v195_v8 }
 0x2be   :  { %10975 = vst [vmem:[#allocation29_spill] sm:$0xff] %v8457_v24  ;;  %3157 = vmatmul.f32.gmra.mxu1 %v10976_v58 }
 0x2bf   :  { %2792 = vmatmul.f32.gmra.mxu2 %v2791_v19  ;;  %v2573_v19 = vadd.f32 %v8321_v42, %v2476_v44  ;;  %3444 = vmatpush.msra.mxu0 %v8493_v10  ;;  %v193_v44 = vld [vmem:[%s10514_s1 + $0x260] sm:$0xff] }
 0x2c0   :  { %2949 = vmatmul.f32.gmra.mxu3 %v8398_v59  ;;  %v8519_v7 = vand.u32 4294901760, %v193_v44 }
 0x2c1   :  { %v8468_v45 = vpop.f32.mrf.mxu0  ;;  %3895 = vmatpush.msrb.mxu3 %v8493_v10 }
 0x2c2   :  { %v2277_v5 = vpop.f32.mrf.mxu2  ;;  %v8542_v59 = vsub.f32 %v193_v44, %v8519_v7 }
 0x2c3   :  { %v2400_v61 = vpop.f32.mrf.mxu3  ;;  %v2278_v2 = vadd.f32 %v2277_v5, %v2149_v38  ;;  %v8472_v3 = vpop.f32.mrf.mxu1  ;;  %v8503_v38 = vand.u32 4294901760, %v194_v32 }
 0x2c4   :  { %v8470_v11 = vadd.f32 %v2400_v61, %v2273_v46  ;;  %3047 = vmatmul.f32.gmra.mxu0 %v8262_v26  ;;  %v8491_v46 = vsub.f32 %v196_v29, %v8480_v30  ;;  %v8507_v61 = vsub.f32 %v195_v8, %v8493_v10 }
 0x2c5   :  { %3446 = vmatpush.msra.mxu0 %v8503_v38  ;;  %3897 = vmatpush.msrb.mxu3 %v8503_v38 }
 0x2c6   :  { %10977 = vst [vmem:[#allocation22_spill] sm:$0xff] %v8470_v11  ;;  %3163 = vmatmul.f32.gmra.mxu1 %v10978_v6  ;;  %v10658_v5 = vand.u32 4294901760, %v8491_v46  ;;  %3765 = vmatpush.msrb.mxu2 %v8491_v46  ;;  %v2480_v11 = vadd.f32 %v8316_v13, %v8175_v56 }
 0x2c7   :  { %3280 = vmatmul.f32.vlgmr.msra.gmra.mxu2 %v8013_v50  ;;  %3448 = vmatpush.msra.mxu0 %v8519_v7 }
 0x2c8   :  { %2953 = vmatmul.f32.gmra.mxu3 %v8423_v40  ;;  %v3605_v8 = vsub.f32 %v8491_v46, %v10658_v5  ;;  %3768 = vmatpush.msrb.mxu2 %v8507_v61  ;;  %v2577_v13 = vadd.f32 %v8345_v52, %v2480_v11  ;;  %v10983_v11 = vand.u32 4294901760, %v8542_v59 }
 0x2c9   :  { %v8497_v57 = vpop.f32.mrf.mxu0  ;;  %3899 = vmatpush.msrb.mxu3 %v8519_v7 }
 0x2ca   :  { %10979 = vst [vmem:[#allocation6_spill] sm:$0xff] %v8497_v57  ;;  %v2673_v48 = vpop.f32.mrf.mxu2  ;;  %v3606_v5 = vand.u32 4294901760, %v3605_v8  ;;  %v185_v57 = vld [vmem:[%s10514_s1 + $0x220] sm:$0xff] }
 0x2cb   :  { %v2406_v58 = vpop.f32.mrf.mxu3  ;;  %v2674_v29 = vadd.f32 %v2673_v48, %v2573_v19  ;;  %v8512_v6 = vpop.f32.mrf.mxu1  ;;  %v192_v19 = vld [vmem:[%s10514_s1 + $0x258] sm:$0xff]  ;;  %v10981_v48 = vand.u32 4294901760, %v8262_v26  ;;  %v191_v26 = vld [vmem:[%s10514_s1 + $0x250] sm:$0xff] }
 0x2cc   :  { %v8510_v42 = vadd.f32 %v2406_v58, %v2278_v2  ;;  %3052 = vmatmul.f32.gmra.mxu0 %v8286_v23  ;;  %v10661_v2 = vand.u32 4294901760, %v8507_v61  ;;  %v8531_v58 = vsub.f32 %v194_v32, %v8503_v38  ;;  %v8536_v40 = vand.u32 4294901760, %v192_v19  ;;  %3607 = vmatpush.msra.mxu1 %v3606_v5 }
 0x2cd   :  { %v8553_v8 = vand.u32 4294901760, %v191_v26 }
 0x2ce   :  { %10980 = vst [vmem:[#allocation8_spill] sm:$0xff] %v8510_v42  ;;  %3169 = vmatmul.f32.gmra.mxu1 %v10981_v48  ;;  %v3611_v42 = vsub.f32 %v8507_v61, %v10661_v2  ;;  %v10666_v32 = vand.u32 4294901760, %v8531_v58  ;;  %v8557_v56 = vsub.f32 %v192_v19, %v8536_v40  ;;  %v190_v2 = vld [vmem:[%s10514_s1 + $0x248] sm:$0xff]  ;;  %3771 = vmatpush.msrb.mxu2 %v8531_v58 }
 0x2cf   :  { %3284 = vmatmul.f32.gmra.mxu2 %v8041_v35  ;;  %3450 = vmatpush.msra.mxu0 %v8536_v40  ;;  %v8571_v52 = vand.u32 4294901760, %v190_v2  ;;  %v3623_v19 = vsub.f32 %v8542_v59, %v10983_v11  ;;  %v8590_v11 = vand.u32 4294901760, %v189_v16 }
 0x2d0   :  { %3377 = vmatmul.f32.vlgmr.msra.gmra.mxu3 %v8013_v50  ;;  %v3612_v44 = vand.u32 4294901760, %v3611_v42  ;;  %v3617_v5 = vsub.f32 %v8531_v58, %v10666_v32  ;;  %v10669_v41 = vand.u32 4294901760, %v8557_v56  ;;  %3774 = vmatpush.msrb.mxu2 %v8542_v59 }
 0x2d1   :  { %v8560_v50 = vpop.f32.mrf.mxu0  ;;  %3901 = vmatpush.msrb.mxu3 %v8536_v40  ;;  %10986 = vst [vmem:[#allocation7_spill] sm:$0xff] %v8590_v11  ;;  %3452 = vmatpush.msra.mxu0 %v8553_v8 }
 0x2d2   :  { %10982 = vst [vmem:[#allocation30_spill] sm:$0xff] %v8560_v50  ;;  %v2681_v42 = vpop.f32.mrf.mxu2  ;;  %3613 = vmatpush.msra.mxu1 %v3612_v44  ;;  %v3618_v15 = vand.u32 4294901760, %v3617_v5  ;;  %v8585_v44 = vsub.f32 %v191_v26, %v8553_v8  ;;  %v188_v26 = vld [vmem:[%s10514_s1 + $0x238] sm:$0xff]  ;;  %v8601_v5 = vsub.f32 %v190_v2, %v8571_v52  ;;  %3777 = vmatpush.msrb.mxu2 %v8557_v56 }
 0x2d3   :  { %v2894_v48 = vpop.f32.mrf.mxu3  ;;  %v2682_v24 = vadd.f32 %v2681_v42, %v2577_v13  ;;  %v8579_v32 = vpop.f32.mrf.mxu1  ;;  %v10987_v42 = vand.u32 4294901760, %v8286_v23  ;;  %v187_v23 = vld [vmem:[%s10514_s1 + $0x230] sm:$0xff]  ;;  %3454 = vmatpush.msra.mxu0 %v8571_v52  ;;  %3903 = vmatpush.msrb.mxu3 %v8553_v8 }
 0x2d4   :  { %v8577_v33 = vadd.f32 %v2894_v48, %v2674_v29  ;;  %10985 = vst [vmem:[#allocation17_spill] sm:$0xff] %v8579_v32  ;;  %3057 = vmatmul.f32.gmra.mxu0 %v8304_v60  ;;  %v3624_v29 = vand.u32 4294901760, %v3623_v19  ;;  %v3629_v48 = vsub.f32 %v8557_v56, %v10669_v41  ;;  %3619 = vmatpush.msra.mxu1 %v3618_v15  ;;  %v10670_v13 = vand.u32 4294901760, %v8585_v44 }
 0x2d5   :  { %v8605_v19 = vand.u32 4294901760, %v188_v26  ;;  %v8608_v41 = vsub.f32 %v189_v16, %v8590_v11  ;;  %v2484_v15 = vadd.f32 %v8341_v36, %v8198_v27  ;;  %v10671_v16 = vand.u32 4294901760, %v8601_v5  ;;  %3780 = vmatpush.msrb.mxu2 %v8585_v44  ;;  %3456 = vmatpush.msra.mxu0 %v8590_v11 }
 0x2d6   :  { %10984 = vst [vmem:[#allocation13_spill] sm:$0xff] %v8577_v33  ;;  %3175 = vmatmul.f32.gmra.mxu1 %v10987_v42  ;;  %v3630_v33 = vand.u32 4294901760, %v3629_v48  ;;  %v3635_v2 = vsub.f32 %v8585_v44, %v10670_v13  ;;  %v8623_v48 = vand.u32 4294901760, %v187_v23  ;;  %v186_v13 = vld [vmem:[%s10514_s1 + $0x228] sm:$0xff]  ;;  %3905 = vmatpush.msrb.mxu3 %v8571_v52 }
 0x2d7   :  { %10988 = vst [vmem:[#allocation32_spill] sm:$0xff] %v8605_v19  ;;  %3288 = vmatmul.f32.gmra.mxu2 %v8086_v34  ;;  %3625 = vmatpush.msra.mxu1 %v3624_v29  ;;  %v8627_v36 = vsub.f32 %v188_v26, %v8605_v19  ;;  %v3641_v29 = vsub.f32 %v8601_v5, %v10671_v16 }
 0x2d8   :  { %3381 = vmatmul.f32.gmra.mxu3 %v8041_v35  ;;  %v2581_v35 = vadd.f32 %v8372_v49, %v2484_v15  ;;  %v3636_v51 = vand.u32 4294901760, %v3635_v2  ;;  %v8641_v49 = vand.u32 4294901760, %v186_v13  ;;  %v10990_v15 = vand.u32 4294901760, %v8608_v41  ;;  %3783 = vmatpush.msrb.mxu2 %v8601_v5 }
 0x2d9   :  { %v8630_v42 = vpop.f32.mrf.mxu0  ;;  %3631 = vmatpush.msra.mxu1 %v3630_v33  ;;  %v8655_v14 = vsub.f32 %v187_v23, %v8623_v48  ;;  %v3642_v33 = vand.u32 4294901760, %v3641_v29  ;;  %3458 = vmatpush.msra.mxu0 %v8605_v19  ;;  %v184_v23 = vld [vmem:[%s10514_s1 + $0x218] sm:$0xff] }
 0x2da   :  { %10989 = vst [vmem:[#allocation15_spill] sm:$0xff] %v8630_v42  ;;  %v2689_v27 = vpop.f32.mrf.mxu2  ;;  %v3647_v2 = vsub.f32 %v8608_v41, %v10990_v15  ;;  %v10672_v42 = vand.u32 4294901760, %v8627_v36  ;;  %3786 = vmatpush.msrb.mxu2 %v8608_v41  ;;  %v8676_v15 = vand.u32 4294901760, %v184_v23  ;;  %3907 = vmatpush.msrb.mxu3 %v8590_v11 }
 0x2db   :  { %v2898_v26 = vpop.f32.mrf.mxu3  ;;  %v2690_v50 = vadd.f32 %v2689_v27, %v2581_v35  ;;  %v8649_v16 = vpop.f32.mrf.mxu1  ;;  %3637 = vmatpush.msra.mxu1 %v3636_v51  ;;  %v8660_v27 = vand.u32 4294901760, %v185_v57  ;;  %v10673_v35 = vand.u32 4294901760, %v8655_v14  ;;  %v10993_v51 = vand.u32 4294901760, %v8304_v60  ;;  %v183_v60 = vld [vmem:[%s10514_s1 + $0x210] sm:$0xff]  ;;  %3460 = vmatpush.msra.mxu0 %v8623_v48 }
 0x2dc   :  { %v8647_v32 = vadd.f32 %v2898_v26, %v2682_v24  ;;  %10992 = vst [vmem:[#allocation20_spill] sm:$0xff] %v8649_v16  ;;  %3062 = vmatmul.f32.gmra.mxu0 %v8335_v62  ;;  %v3653_v24 = vsub.f32 %v8627_v36, %v10672_v42  ;;  %v8671_v26 = vsub.f32 %v186_v13, %v8641_v49  ;;  %v3648_v29 = vand.u32 4294901760, %v3647_v2 }
 0x2dd   :  { %v8679_v42 = vsub.f32 %v185_v57, %v8660_v27  ;;  %3643 = vmatpush.msra.mxu1 %v3642_v33  ;;  %v3659_v2 = vsub.f32 %v8655_v14, %v10673_v35  ;;  %v8701_v16 = vand.u32 4294901760, %v183_v60  ;;  %v182_v33 = vld [vmem:[%s10514_s1 + $0x208] sm:$0xff]  ;;  %3789 = vmatpush.msrb.mxu2 %v8627_v36 }
 0x2de   :  { %10991 = vst [vmem:[#allocation18_spill] sm:$0xff] %v8647_v32  ;;  %3181 = vmatmul.f32.gmra.mxu1 %v10993_v51  ;;  %v2488_v32 = vadd.f32 %v8366_v20, %v8224_v1  ;;  %v10676_v13 = vand.u32 4294901760, %v8671_v26  ;;  %v3654_v57 = vand.u32 4294901760, %v3653_v24  ;;  %v8696_v20 = vsub.f32 %v184_v23, %v8676_v15  ;;  %3909 = vmatpush.msrb.mxu3 %v8605_v19  ;;  %v181_v19 = vld [vmem:[%s10514_s1 + $0x200] sm:$0xff] }
 0x2df   :  { %3292 = vmatmul.f32.gmra.mxu2 %v8122_v55  ;;  %3462 = vmatpush.msra.mxu0 %v8641_v49  ;;  %v8709_v23 = vand.u32 4294901760, %v182_v33  ;;  %v8724_v11 = vand.u32 4294901760, %v181_v19 }
 0x2e0   :  { %3385 = vmatmul.f32.gmra.mxu3 %v8086_v34  ;;  %v2585_v34 = vadd.f32 %v8396_v54, %v2488_v32  ;;  %3649 = vmatpush.msra.mxu1 %v3648_v29  ;;  %v3665_v54 = vsub.f32 %v8671_v26, %v10676_v13  ;;  %v3660_v29 = vand.u32 4294901760, %v3659_v2 }
 0x2e1   :  { %v8699_v51 = vpop.f32.mrf.mxu0  ;;  %3792 = vmatpush.msrb.mxu2 %v8655_v14  ;;  %3911 = vmatpush.msrb.mxu3 %v8623_v48  ;;  %v8735_v13 = vsub.f32 %v182_v33, %v8709_v23 }
 0x2e2   :  { %10994 = vst [vmem:[#allocation16_spill] sm:$0xff] %v8699_v51  ;;  %v2697_v24 = vpop.f32.mrf.mxu2  ;;  %3655 = vmatpush.msra.mxu1 %v3654_v57  ;;  %3464 = vmatpush.msra.mxu0 %v8660_v27  ;;  %v10997_v57 = vand.u32 4294901760, %v8335_v62  ;;  %v3666_v2 = vand.u32 4294901760, %v3665_v54 }
 0x2e3   :  { %v2902_v35 = vpop.f32.mrf.mxu3  ;;  %v2698_v32 = vadd.f32 %v2697_v24, %v2585_v34  ;;  %v8716_v51 = vpop.f32.mrf.mxu1  ;;  %v10996_v34 = vand.u32 4294901760, %v8679_v42  ;;  %v8732_v24 = vsub.f32 %v183_v60, %v8701_v16  ;;  %3795 = vmatpush.msrb.mxu2 %v8671_v26  ;;  %3913 = vmatpush.msrb.mxu3 %v8641_v49 }
 0x2e4   :  { %v8714_v1 = vadd.f32 %v2902_v35, %v2690_v50  ;;  %3067 = vmatmul.f32.gmra.mxu0 %v8360_v53  ;;  %v10677_v35 = vand.u32 4294901760, %v8696_v20  ;;  %3661 = vmatpush.msra.mxu1 %v3660_v29 }
 0x2e5   :  { %v3671_v50 = vsub.f32 %v8679_v42, %v10996_v34  ;;  %v2492_v34 = vadd.f32 %v8391_v21, %v8247_v63  ;;  %v3682_v60 = vand.u32 4294901760, %v8732_v24  ;;  %3466 = vmatpush.msra.mxu0 %v8676_v15  ;;  %3798 = vmatpush.msrb.mxu2 %v8679_v42 }
 0x2e6   :  { %10995 = vst [vmem:[#allocation33_spill] sm:$0xff] %v8714_v1  ;;  %3187 = vmatmul.f32.gmra.mxu1 %v10997_v57  ;;  %v3677_v62 = vsub.f32 %v8696_v20, %v10677_v35  ;;  %v8752_v57 = vsub.f32 %v181_v19, %v8724_v11  ;;  %3915 = vmatpush.msrb.mxu3 %v8660_v27 }
 0x2e7   :  { %3296 = vmatmul.f32.gmra.mxu2 %v8147_v0  ;;  %v3672_v33 = vand.u32 4294901760, %v3671_v50  ;;  %v2589_v63 = vadd.f32 %v8420_v39, %v2492_v34  ;;  %3468 = vmatpush.msra.mxu0 %v8701_v16  ;;  %v3683_v50 = vsub.f32 %v8732_v24, %v3682_v60  ;;  %v10998_v34 = vand.u32 4294901760, %v8735_v13 }
 0x2e8   :  { %3389 = vmatmul.f32.gmra.mxu3 %v8122_v55  ;;  %3667 = vmatpush.msra.mxu1 %v3666_v2  ;;  %v3678_v39 = vand.u32 4294901760, %v3677_v62  ;;  %v3694_v1 = vand.u32 4294901760, %v8752_v57 }
 0x2e9   :  { %v8755_v21 = vpop.f32.mrf.mxu0  ;;  %3801 = vmatpush.msrb.mxu2 %v8696_v20  ;;  %3917 = vmatpush.msrb.mxu3 %v8676_v15  ;;  %v3689_v2 = vsub.f32 %v8735_v13, %v10998_v34 }
 0x2ea   :  { %v2705_v55 = vpop.f32.mrf.mxu2  ;;  %3673 = vmatpush.msra.mxu1 %v3672_v33  ;;  %3470 = vmatpush.msra.mxu0 %v8709_v23  ;;  %v2496_v33 = vadd.f32 %v8416_v31, %v8270_v22  ;;  %v11000_v31 = vand.u32 4294901760, %v8491_v46  ;;  %v31_v46 = vld [vmem:[%s10513_s0 + $0x50] sm:$0xff] }
 0x2eb   :  { %v2906_v29 = vpop.f32.mrf.mxu3  ;;  %v2706_v35 = vadd.f32 %v2705_v55, %v2589_v63  ;;  %v8765_v54 = vpop.f32.mrf.mxu1  ;;  %3804 = vmatpush.msrb.mxu2 %v8732_v24  ;;  %v10999_v63 = vand.u32 4294901760, %v8360_v53  ;;  %v3684_v55 = vand.u32 4294901760, %v3683_v50  ;;  %3919 = vmatpush.msrb.mxu3 %v8701_v16  ;;  %v3695_v53 = vsub.f32 %v8752_v57, %v3694_v1  ;;  %v11030_v24 = vld [vmem:[#allocation20_spill] sm:$0xff] }
 0x2ec   :  { %v8763_v19 = vadd.f32 %v2906_v29, %v2698_v32  ;;  %3072 = vmatmul.f32.gmra.mxu0 %v8379_v17  ;;  %v25_v32 = vld [vmem:[%s10513_s0 + $0x20] sm:$0xff]  ;;  %3679 = vmatpush.msra.mxu1 %v3678_v39  ;;  %v3690_v29 = vand.u32 4294901760, %v3689_v2  ;;  %v2593_v50 = vadd.f32 %v8442_v43, %v2496_v33 }
 0x2ed   :  { %3472 = vmatpush.msra.mxu0 %v8724_v11  ;;  %v8787_v62 = vand.u32 4294901760, %v25_v32  ;;  %3807 = vmatpush.msrb.mxu2 %v8735_v13  ;;  %v3696_v33 = vand.u32 4294901760, %v3695_v53  ;;  %v11004_v53 = vand.u32 4294901760, %v8531_v58  ;;  %v11006_v58 = vand.u32 4294901760, %v8557_v56 }
 0x2ee   :  { %3193 = vmatmul.f32.gmra.mxu1 %v10999_v63  ;;  %3921 = vmatpush.msrb.mxu3 %v8709_v23  ;;  %v11010_v56 = vand.u32 4294901760, %v8585_v44  ;;  %v43_v44 = vld [vmem:[%s10513_s0 + $0xb0] sm:$0xff] }
 0x2ef   :  { %3300 = vmatmul.f32.gmra.mxu2 %v8179_v12  ;;  %3685 = vmatpush.msra.mxu1 %v3684_v55  ;;  %v8807_v43 = vsub.f32 %v25_v32, %v8787_v62  ;;  %v11002_v55 = vand.u32 4294901760, %v8379_v17 }
 0x2f0   :  { %3393 = vmatmul.f32.gmra.mxu3 %v8147_v0  ;;  %4024 = vmatpush.msrb.mxu0 %v11000_v31 }
 0x2f1   :  { %v8793_v34 = vpop.f32.mrf.mxu0  ;;  %3810 = vmatpush.msrb.mxu2 %v8752_v57  ;;  %3923 = vmatpush.msrb.mxu3 %v8724_v11  ;;  %v10686_v32 = vand.u32 4294901760, %v8807_v43  ;;  %v11032_v57 = vld [vmem:[#allocation15_spill] sm:$0xff] }
 0x2f2   :  { %v2713_v22 = vpop.f32.mrf.mxu2  ;;  %3691 = vmatpush.msra.mxu1 %v3690_v29  ;;  %v8821_v29 = vand.u32 4294901760, %v31_v46 }
 0x2f3   :  { %v2910_v0 = vpop.f32.mrf.mxu3  ;;  %v2714_v39 = vadd.f32 %v2713_v22, %v2593_v50  ;;  %v8801_v63 = vpop.f32.mrf.mxu1  ;;  %v2500_v50 = vadd.f32 %v8438_v18, %v8296_v4  ;;  %v11003_v22 = vld [vmem:[#allocation9_spill] sm:$0xff]  ;;  %v11005_v18 = vand.u32 4294901760, %v8542_v59 }
 0x2f4   :  { %v8799_v2 = vadd.f32 %v2910_v0, %v2706_v35  ;;  %3077 = vmatmul.f32.gmra.mxu0 %v8410_v47  ;;  %v11001_v35 = vand.u32 4294901760, %v8507_v61  ;;  %3697 = vmatpush.msra.mxu1 %v3696_v33  ;;  %v37_v59 = vld [vmem:[%s10513_s0 + $0x80] sm:$0xff] }
 0x2f5   :  { %v2597_v61 = vadd.f32 %v8459_v37, %v2500_v50  ;;  %v3476_v37 = vsub.f32 %v8807_v43, %v10686_v32 }
 0x2f6   :  { %4028 = vmatpush.msrb.mxu0 %v11001_v35  ;;  %3199 = vmatmul.f32.gmra.mxu1 %v11002_v55  ;;  %v11009_v55 = vld [vmem:[#allocation28_spill] sm:$0xff] }
 0x2f7   :  { %3304 = vmatmul.f32.gmra.mxu2 %v11003_v22  ;;  %4151 = vmatpush.msrb.mxu1 %v8480_v30  ;;  %v8841_v30 = vsub.f32 %v31_v46, %v8821_v29  ;;  %v3477_v46 = vand.u32 4294901760, %v3476_v37  ;;  %v11014_v37 = vld [vmem:[#allocation19_spill] sm:$0xff] }
 0x2f8   :  { %3397 = vmatmul.f32.gmra.mxu3 %v8179_v12  ;;  %4032 = vmatpush.msrb.mxu0 %v11004_v53  ;;  %v8856_v53 = vand.u32 4294901760, %v37_v59 }
 0x2f9   :  { %v8826_v0 = vpop.f32.mrf.mxu0  ;;  %4153 = vmatpush.msrb.mxu1 %v8493_v10  ;;  %v11007_v10 = vand.u32 4294901760, %v8410_v47  ;;  %v10685_v50 = vand.u32 4294901760, %v8841_v30 }
 0x2fa   :  { %v2721_v17 = vpop.f32.mrf.mxu2  ;;  %4036 = vmatpush.msrb.mxu0 %v11005_v18 }
 0x2fb   :  { %v2914_v4 = vpop.f32.mrf.mxu3  ;;  %v2722_v12 = vadd.f32 %v2721_v17, %v2597_v61  ;;  %v8833_v33 = vpop.f32.mrf.mxu1  ;;  %4155 = vmatpush.msrb.mxu1 %v8503_v38  ;;  %v11011_v17 = vand.u32 4294901760, %v8601_v5  ;;  %v11013_v5 = vand.u32 4294901760, %v8435_v25 }
 0x2fc   :  { %v8831_v31 = vadd.f32 %v2914_v4, %v2714_v39  ;;  %3082 = vmatmul.f32.gmra.mxu0 %v8435_v25  ;;  %v11008_v39 = vld [vmem:[#allocation26_spill] sm:$0xff] }
 0x2fd   :  { %4040 = vmatpush.msrb.mxu0 %v11006_v58  ;;  %v2504_v35 = vadd.f32 %v8455_v9, %v11008_v39  ;;  %4157 = vmatpush.msrb.mxu1 %v8519_v7  ;;  %v3484_v7 = vsub.f32 %v8841_v30, %v10685_v50  ;;  %v8890_v58 = vand.u32 4294901760, %v43_v44 }
 0x2fe   :  { %3205 = vmatmul.f32.gmra.mxu1 %v11007_v10  ;;  %v11015_v10 = vand.u32 4294901760, %v8627_v36  ;;  %v11018_v36 = vld [vmem:[#allocation32_spill] sm:$0xff] }
 0x2ff   :  { %3308 = vmatmul.f32.gmra.mxu2 %v11009_v55  ;;  %4044 = vmatpush.msrb.mxu0 %v11010_v56  ;;  %v2601_v47 = vadd.f32 %v8472_v3, %v2504_v35  ;;  %v8875_v3 = vsub.f32 %v37_v59, %v8856_v53  ;;  %v3485_v59 = vand.u32 4294901760, %v3484_v7  ;;  %v11017_v35 = vld [vmem:[#allocation7_spill] sm:$0xff] }
 0x300   :  { %3401 = vmatmul.f32.gmra.mxu3 %v11003_v22  ;;  %4159 = vmatpush.msrb.mxu1 %v8536_v40  ;;  %v11012_v40 = vand.u32 4294901760, %v8608_v41 }
 0x301   :  { %v8862_v38 = vpop.f32.mrf.mxu0  ;;  %4048 = vmatpush.msrb.mxu0 %v11011_v17 }
 0x302   :  { %v2729_v61 = vpop.f32.mrf.mxu2  ;;  %4161 = vmatpush.msrb.mxu1 %v8553_v8  ;;  %v10683_v8 = vand.u32 4294901760, %v8875_v3 }
 0x303   :  { %v2918_v9 = vpop.f32.mrf.mxu3  ;;  %v2730_v22 = vadd.f32 %v2729_v61, %v2601_v47  ;;  %v8869_v18 = vpop.f32.mrf.mxu1  ;;  %4052 = vmatpush.msrb.mxu0 %v11012_v40  ;;  %v11019_v47 = vand.u32 4294901760, %v8671_v26  ;;  %v11020_v61 = vld [vmem:[#allocation14_spill] sm:$0xff]  ;;  %v11024_v26 = vld [vmem:[#allocation17_spill] sm:$0xff] }
 0x304   :  { %v8867_v4 = vadd.f32 %v2918_v9, %v2722_v12  ;;  %3478 = vmatmul.f32.vlgmr.msra.gmra.mxu0 %v3477_v46  ;;  %v2508_v12 = vadd.f32 %v8468_v45, %v8343_v28  ;;  %4163 = vmatpush.msrb.mxu1 %v8571_v52  ;;  %v11016_v45 = vand.u32 4294901760, %v8655_v14  ;;  %v3492_v52 = vsub.f32 %v8875_v3, %v10683_v8  ;;  %v49_v14 = vld [vmem:[%s10513_s0 + $0xe0] sm:$0xff]  ;;  %v11021_v9 = vld [vmem:[#allocation6_spill] sm:$0xff] }
 0x305   :  { %4056 = vmatpush.msrb.mxu0 %v11015_v10  ;;  %v2512_v17 = vadd.f32 %v11021_v9, %v11020_v61  ;;  %v8923_v40 = vand.u32 4294901760, %v49_v14 }
 0x306   :  { %3211 = vmatmul.f32.gmra.mxu1 %v11013_v5  ;;  %v2605_v41 = vadd.f32 %v8512_v6, %v2508_v12  ;;  %v8909_v6 = vsub.f32 %v43_v44, %v8890_v58  ;;  %v3493_v7 = vand.u32 4294901760, %v3492_v52  ;;  %v11023_v5 = vand.u32 4294901760, %v8679_v42  ;;  %v11028_v52 = vld [vmem:[#allocation5_spill] sm:$0xff] }
 0x307   :  { %3312 = vmatmul.f32.gmra.mxu2 %v11014_v37  ;;  %4060 = vmatpush.msrb.mxu0 %v11016_v45  ;;  %v2609_v12 = vadd.f32 %v11024_v26, %v2512_v17  ;;  %v8942_v42 = vsub.f32 %v49_v14, %v8923_v40 }
 0x308   :  { %3405 = vmatmul.f32.gmra.mxu3 %v11009_v55  ;;  %4165 = vmatpush.msrb.mxu1 %v11017_v35  ;;  %v10682_v44 = vand.u32 4294901760, %v8909_v6  ;;  %v11027_v35 = vld [vmem:[#allocation30_spill] sm:$0xff] }
 0x309   :  { %v8896_v25 = vpop.f32.mrf.mxu0  ;;  %4064 = vmatpush.msrb.mxu0 %v11019_v47  ;;  %v10681_v14 = vand.u32 4294901760, %v8942_v42  ;;  %v11029_v47 = vand.u32 4294901760, %v8735_v13 }
 0x30a   :  { %v2737_v39 = vpop.f32.mrf.mxu2  ;;  %4167 = vmatpush.msrb.mxu1 %v11018_v36 }
 0x30b   :  { %v2922_v28 = vpop.f32.mrf.mxu3  ;;  %v2738_v55 = vadd.f32 %v2737_v39, %v2605_v41  ;;  %v8903_v56 = vpop.f32.mrf.mxu1  ;;  %4068 = vmatpush.msrb.mxu0 %v11023_v5  ;;  %v11025_v39 = vand.u32 4294901760, %v8696_v20  ;;  %v55_v20 = vld [vmem:[%s10513_s0 + $0x110] sm:$0xff] }
 0x30c   :  { %v8901_v46 = vadd.f32 %v2922_v28, %v2730_v22  ;;  %3486 = vmatmul.f32.gmra.mxu0 %v3485_v59  ;;  %v11022_v22 = vld [vmem:[#allocation21_spill] sm:$0xff]  ;;  %4169 = vmatpush.msrb.mxu1 %v8623_v48  ;;  %v3500_v48 = vsub.f32 %v8909_v6, %v10682_v44 }
 0x30d   :  { %4072 = vmatpush.msrb.mxu0 %v11025_v39 }
 0x30e   :  { %3699 = vmatmul.f32.vlgmr.msra.gmra.mxu1 %v8787_v62  ;;  %v3501_v36 = vand.u32 4294901760, %v3500_v48 }
 0x30f   :  { %3316 = vmatmul.f32.gmra.mxu2 %v11022_v22  ;;  %4171 = vmatpush.msrb.mxu1 %v8641_v49  ;;  %v11026_v49 = vld [vmem:[#allocation27_spill] sm:$0xff] }
 0x310   :  { %3409 = vmatmul.f32.gmra.mxu3 %v11014_v37  ;;  %4076 = vmatpush.msrb.mxu0 %v3682_v60 }
 0x311   :  { %v8929_v59 = vpop.f32.mrf.mxu0  ;;  %4173 = vmatpush.msrb.mxu1 %v8660_v27  ;;  %v8956_v27 = vand.u32 4294901760, %v55_v20 }
 0x312   :  { %v2745_v10 = vpop.f32.mrf.mxu2  ;;  %4080 = vmatpush.msrb.mxu0 %v11029_v47  ;;  %v11036_v47 = vld [vmem:[#allocation16_spill] sm:$0xff] }
 0x313   :  { %v2926_v41 = vpop.f32.mrf.mxu3  ;;  %v2746_v37 = vadd.f32 %v2745_v10, %v2609_v12  ;;  %v8936_v45 = vpop.f32.mrf.mxu1  ;;  %4175 = vmatpush.msrb.mxu1 %v8676_v15  ;;  %v3508_v15 = vsub.f32 %v8942_v42, %v10681_v14  ;;  %v8975_v13 = vsub.f32 %v55_v20, %v8956_v27  ;;  %v11033_v12 = vld [vmem:[#allocation23_spill] sm:$0xff] }
 0x314   :  { %v8934_v28 = vadd.f32 %v2926_v41, %v2738_v55  ;;  %3494 = vmatmul.f32.gmra.mxu0 %v3493_v7  ;;  %v2516_v55 = vadd.f32 %v11027_v35, %v11026_v49 }
 0x315   :  { %4084 = vmatpush.msrb.mxu0 %v3694_v1  ;;  %4177 = vmatpush.msrb.mxu1 %v8701_v16  ;;  %v61_v1 = vld [vmem:[%s10513_s0 + $0x140] sm:$0xff]  ;;  %v11031_v16 = vld [vmem:[#allocation11_spill] sm:$0xff]  ;;  %v3509_v10 = vand.u32 4294901760, %v3508_v15  ;;  %v10679_v41 = vand.u32 4294901760, %v8975_v13 }
 0x316   :  { %3703 = vmatmul.f32.gmra.mxu1 %v8821_v29  ;;  %v2613_v60 = vadd.f32 %v11030_v24, %v2516_v55  ;;  %v2520_v26 = vadd.f32 %v11032_v57, %v11031_v16  ;;  %v8987_v39 = vand.u32 4294901760, %v61_v1 }
 0x317   :  { %3320 = vmatmul.f32.gmra.mxu2 %v11028_v52  ;;  %4179 = vmatpush.msrb.mxu1 %v8709_v23 }
 0x318   :  { %3413 = vmatmul.f32.gmra.mxu3 %v11022_v22  ;;  %11034 = vst [vmem:[#allocation9_spill] sm:$0xff] %v8987_v39  ;;  %v2617_v23 = vadd.f32 %v8716_v51, %v2520_v26  ;;  %v11035_v51 = vld [vmem:[#allocation12_spill] sm:$0xff] }
 0x319   :  { %v8962_v61 = vpop.f32.mrf.mxu0  ;;  %4181 = vmatpush.msrb.mxu1 %v8724_v11  ;;  %v67_v11 = vld [vmem:[%s10513_s0 + $0x170] sm:$0xff]  ;;  %v2524_v24 = vadd.f32 %v11036_v47, %v11035_v51 }
 0x31a   :  { %v2753_v9 = vpop.f32.mrf.mxu2 }
 0x31b   :  { %v2930_v17 = vpop.f32.mrf.mxu3  ;;  %v2754_v22 = vadd.f32 %v2753_v9, %v2613_v60  ;;  %v8969_v5 = vpop.f32.mrf.mxu1  ;;  %v11037_v60 = vld [vmem:[#allocation24_spill] sm:$0xff]  ;;  %v2621_v15 = vadd.f32 %v8765_v54, %v2524_v24 }
 0x31c   :  { %v8967_v7 = vadd.f32 %v2930_v17, %v2746_v37  ;;  %3502 = vmatmul.f32.gmra.mxu0 %v3501_v36  ;;  %v9001_v36 = vsub.f32 %v61_v1, %v8987_v39  ;;  %v73_v54 = vld [vmem:[%s10513_s0 + $0x1a0] sm:$0xff] }
 0x31d   :  { %v9036_v24 = vand.u32 4294901760, %v73_v54 }
 0x31e   :  { %3707 = vmatmul.f32.gmra.mxu1 %v8856_v53  ;;  %v10678_v17 = vand.u32 4294901760, %v9001_v36 }
 0x31f   :  { %3324 = vmatmul.f32.gmra.mxu2 %v11033_v12  ;;  %11041 = vst [vmem:[#allocation28_spill] sm:$0xff] %v9036_v24 }
 0x320   :  { %3417 = vmatmul.f32.gmra.mxu3 %v11028_v52  ;;  %v3516_v52 = vsub.f32 %v8975_v13, %v10679_v41 }
 0x321   :  { %v8991_v37 = vpop.f32.mrf.mxu0 }
 0x322   :  { %v2761_v48 = vpop.f32.mrf.mxu2  ;;  %v3517_v9 = vand.u32 4294901760, %v3516_v52  ;;  %v11040_v52 = vld [vmem:[#allocation10_spill] sm:$0xff] }
 0x323   :  { %v2934_v20 = vpop.f32.mrf.mxu3  ;;  %v2762_v49 = vadd.f32 %v2761_v48, %v2617_v23  ;;  %v8995_v55 = vpop.f32.mrf.mxu1 }
 0x324   :  { %v8993_v35 = vadd.f32 %v2934_v20, %v2754_v22  ;;  %3510 = vmatmul.f32.gmra.mxu0 %v3509_v10  ;;  %v9012_v22 = vand.u32 4294901760, %v67_v11  ;;  %v11039_v20 = vld [vmem:[#allocation29_spill] sm:$0xff] }
 0x326   :  { %3711 = vmatmul.f32.gmra.mxu1 %v8890_v58  ;;  %11038 = vst [vmem:[#allocation26_spill] sm:$0xff] %v9012_v22  ;;  %v9025_v48 = vsub.f32 %v67_v11, %v9012_v22 }
 0x327   :  { %3328 = vmatmul.f32.gmra.mxu2 %v11037_v60 }
 0x328   :  { %3421 = vmatmul.f32.gmra.mxu3 %v11033_v12  ;;  %v3524_v12 = vsub.f32 %v9001_v36, %v10678_v17  ;;  %v10680_v47 = vand.u32 4294901760, %v9025_v48 }
 0x329   :  { %v9015_v1 = vpop.f32.mrf.mxu0 }
 0x32a   :  { %v2769_v16 = vpop.f32.mrf.mxu2  ;;  %v3525_v51 = vand.u32 4294901760, %v3524_v12  ;;  %v11042_v12 = vld [vmem:[#allocation22_spill] sm:$0xff] }
 0x32b   :  { %v2938_v57 = vpop.f32.mrf.mxu3  ;;  %v2770_v26 = vadd.f32 %v2769_v16, %v2621_v15  ;;  %v9019_v23 = vpop.f32.mrf.mxu1 }
 0x32c   :  { %v9017_v10 = vadd.f32 %v2938_v57, %v2762_v49  ;;  %3518 = vmatmul.f32.gmra.mxu0 %v3517_v9  ;;  %v2528_v49 = vadd.f32 %v8755_v21, %v11039_v20  ;;  %v3532_v21 = vsub.f32 %v9025_v48, %v10680_v47  ;;  %v11043_v20 = vld [vmem:[#allocation31_spill] sm:$0xff] }
 0x32e   :  { %3715 = vmatmul.f32.gmra.mxu1 %v8923_v40  ;;  %v2625_v11 = vadd.f32 %v8801_v63, %v2528_v49  ;;  %v79_v63 = vld [vmem:[%s10513_s0 + $0x1d0] sm:$0xff]  ;;  %v3533_v49 = vand.u32 4294901760, %v3532_v21  ;;  %v11045_v21 = vld [vmem:[#allocation8_spill] sm:$0xff] }
 0x32f   :  { %3332 = vmatmul.f32.gmra.mxu2 %v11040_v52 }
 0x330   :  { %3425 = vmatmul.f32.gmra.mxu3 %v11037_v60  ;;  %v9049_v60 = vsub.f32 %v73_v54, %v9036_v24 }
 0x331   :  { %v9039_v9 = vpop.f32.mrf.mxu0 }
 0x332   :  { %v2777_v15 = vpop.f32.mrf.mxu2 }
 0x333   :  { %v2942_v16 = vpop.f32.mrf.mxu3  ;;  %v2778_v57 = vadd.f32 %v2777_v15, %v2625_v11  ;;  %v9043_v41 = vpop.f32.mrf.mxu1  ;;  %v9060_v11 = vand.u32 4294901760, %v79_v63 }
 0x334   :  { %v9041_v17 = vadd.f32 %v2942_v16, %v2770_v26  ;;  %3526 = vmatmul.f32.gmra.mxu0 %v3525_v51  ;;  %v2532_v26 = vadd.f32 %v8793_v34, %v11042_v12  ;;  %v10684_v51 = vand.u32 4294901760, %v9049_v60 }
 0x335   :  { %11044 = vst [vmem:[#allocation19_spill] sm:$0xff] %v9060_v11 }
 0x336   :  { %3719 = vmatmul.f32.gmra.mxu1 %v8956_v27  ;;  %v2629_v54 = vadd.f32 %v8833_v33, %v2532_v26  ;;  %v3540_v34 = vsub.f32 %v9049_v60, %v10684_v51  ;;  %v85_v33 = vld [vmem:[%s10513_s0 + $0x200] sm:$0xff] }
 0x337   :  { %3336 = vmatmul.f32.gmra.mxu2 %v11043_v20 }
 0x338   :  { %3429 = vmatmul.f32.gmra.mxu3 %v11040_v52  ;;  %v9073_v52 = vsub.f32 %v79_v63, %v9060_v11  ;;  %v3541_v12 = vand.u32 4294901760, %v3540_v34  ;;  %v11049_v34 = vld [vmem:[#allocation13_spill] sm:$0xff] }
 0x339   :  { %v9063_v15 = vpop.f32.mrf.mxu0 }
 0x33a   :  { %v2785_v16 = vpop.f32.mrf.mxu2  ;;  %v10689_v26 = vand.u32 4294901760, %v9073_v52 }
 0x33b   :  { %v2946_v47 = vpop.f32.mrf.mxu3  ;;  %v2786_v14 = vadd.f32 %v2785_v16, %v2629_v54  ;;  %v9067_v8 = vpop.f32.mrf.mxu1 }
 0x33c   :  { %v9065_v44 = vadd.f32 %v2946_v47, %v2778_v57  ;;  %3534 = vmatmul.f32.gmra.mxu0 %v3533_v49  ;;  %v2536_v47 = vadd.f32 %v8826_v0, %v11045_v21  ;;  %v11046_v57 = vld [vmem:[#allocation25_spill] sm:$0xff]  ;;  %v9084_v49 = vand.u32 4294901760, %v85_v33  ;;  %v3548_v0 = vsub.f32 %v9073_v52, %v10689_v26 }
 0x33e   :  { %3723 = vmatmul.f32.gmra.mxu1 %v8987_v39  ;;  %11047 = vst [vmem:[#allocation7_spill] sm:$0xff] %v9084_v49  ;;  %v2633_v63 = vadd.f32 %v8869_v18, %v2536_v47  ;;  %v91_v18 = vld [vmem:[%s10513_s0 + $0x230] sm:$0xff] }
 0x33f   :  { %3340 = vmatmul.f32.gmra.mxu2 %v11046_v57  ;;  %v9108_v47 = vand.u32 4294901760, %v91_v18 }
 0x340   :  { %3433 = vmatmul.f32.gmra.mxu3 %v11043_v20  ;;  %v9097_v20 = vsub.f32 %v85_v33, %v9084_v49 }
 0x341   :  { %v9087_v54 = vpop.f32.mrf.mxu0  ;;  %11050 = vst [vmem:[#allocation14_spill] sm:$0xff] %v9108_v47 }
 0x342   :  { %v2793_v16 = vpop.f32.mrf.mxu2  ;;  %v10692_v21 = vand.u32 4294901760, %v9097_v20 }
 0x343   :  { %v2950_v51 = vpop.f32.mrf.mxu3  ;;  %v2794_v50 = vadd.f32 %v2793_v16, %v2633_v63  ;;  %v9091_v39 = vpop.f32.mrf.mxu1 }
 0x344   :  { %v9089_v32 = vadd.f32 %v2950_v51, %v2786_v14  ;;  %3542 = vmatmul.f32.gmra.mxu0 %v3541_v12  ;;  %v3009_v14 = vadd.f32 %v8862_v38, %v11049_v34  ;;  %v3549_v51 = vand.u32 4294901760, %v3548_v0  ;;  %v3556_v38 = vsub.f32 %v9097_v20, %v10692_v21  ;;  %v11052_v0 = vld [vmem:[#allocation18_spill] sm:$0xff] }
 0x345   :  { %v11053_v34 = vand.u32 4294901760, %v8807_v43 }
 0x346   :  { %11048 = vst [vmem:[#allocation32_spill] sm:$0xff] %v9089_v32  ;;  %3727 = vmatmul.f32.gmra.mxu1 %v9012_v22  ;;  %v3123_v33 = vadd.f32 %v8903_v56, %v3009_v14  ;;  %v97_v56 = vld [vmem:[%s10513_s0 + $0x260] sm:$0xff]  ;;  %v3557_v14 = vand.u32 4294901760, %v3556_v38 }
 0x347   :  { %3813 = vmatmul.f32.vlgmr.msrb.gmra.mxu2 %v8807_v43 }
 0x348   :  { %3437 = vmatmul.f32.gmra.mxu3 %v11046_v57  ;;  %v9121_v57 = vsub.f32 %v91_v18, %v9108_v47 }
 0x349   :  { %v9111_v12 = vpop.f32.mrf.mxu0 }
 0x34a   :  { %v3281_v16 = vpop.f32.mrf.mxu2 }
 0x34b   :  { %v2954_v63 = vpop.f32.mrf.mxu3  ;;  %v3282_v22 = vadd.f32 %v3281_v16, %v3123_v33  ;;  %v9115_v32 = vpop.f32.mrf.mxu1  ;;  %v9133_v33 = vand.u32 4294901760, %v97_v56 }
 0x34c   :  { %v9113_v26 = vadd.f32 %v2954_v63, %v2794_v50  ;;  %3550 = vmatmul.f32.gmra.mxu0 %v3549_v51  ;;  %v3014_v50 = vadd.f32 %v8896_v25, %v11052_v0  ;;  %v10695_v51 = vand.u32 4294901760, %v9121_v57  ;;  %v11056_v0 = vld [vmem:[#allocation33_spill] sm:$0xff] }
 0x34d   :  { %11054 = vst [vmem:[#allocation21_spill] sm:$0xff] %v9133_v33  ;;  %v9146_v38 = vsub.f32 %v97_v56, %v9133_v33 }
 0x34e   :  { %11051 = vst [vmem:[#allocation6_spill] sm:$0xff] %v9113_v26  ;;  %3731 = vmatmul.f32.gmra.mxu1 %v9036_v24  ;;  %v3129_v18 = vadd.f32 %v8936_v45, %v3014_v50  ;;  %v3564_v43 = vsub.f32 %v9121_v57, %v10695_v51  ;;  %v103_v45 = vld [vmem:[%s10513_s0 + $0x290] sm:$0xff] }
 0x34f   :  { %3818 = vmatmul.f32.gmra.mxu2 %v8841_v30 }
 0x350   :  { %3927 = vmatmul.f32.vlgmr.msrb.gmra.mxu3 %v11053_v34  ;;  %v3565_v50 = vand.u32 4294901760, %v3564_v43  ;;  %v10698_v34 = vand.u32 4294901760, %v9146_v38 }
 0x351   :  { %v9136_v63 = vpop.f32.mrf.mxu0 }
 0x352   :  { %v3285_v16 = vpop.f32.mrf.mxu2 }
 0x353   :  { %v3378_v21 = vpop.f32.mrf.mxu3  ;;  %v3286_v24 = vadd.f32 %v3285_v16, %v3129_v18  ;;  %v9140_v25 = vpop.f32.mrf.mxu1 }
 0x354   :  { %v9138_v26 = vadd.f32 %v3378_v21, %v3282_v22  ;;  %3558 = vmatmul.f32.gmra.mxu0 %v3557_v14  ;;  %v3019_v22 = vadd.f32 %v8929_v59, %v11056_v0  ;;  %v11057_v21 = vand.u32 4294901760, %v8841_v30  ;;  %v9158_v14 = vand.u32 4294901760, %v103_v45 }
 0x355   :  { %v3572_v30 = vsub.f32 %v9146_v38, %v10698_v34 }
 0x356   :  { %11055 = vst [vmem:[#allocation17_spill] sm:$0xff] %v9138_v26  ;;  %3735 = vmatmul.f32.gmra.mxu1 %v9060_v11  ;;  %v3135_v56 = vadd.f32 %v8969_v5, %v3019_v22  ;;  %v9171_v43 = vsub.f32 %v103_v45, %v9158_v14  ;;  %v109_v5 = vld [vmem:[%s10513_s0 + $0x2c0] sm:$0xff] }
 0x357   :  { %3823 = vmatmul.f32.gmra.mxu2 %v8875_v3  ;;  %11058 = vst [vmem:[#allocation27_spill] sm:$0xff] %v9158_v14  ;;  %v3573_v0 = vand.u32 4294901760, %v3572_v30  ;;  %v11063_v30 = vand.u32 4294901760, %v8909_v6 }
 0x358   :  { %3933 = vmatmul.f32.gmra.mxu3 %v11057_v21  ;;  %v10701_v22 = vand.u32 4294901760, %v9171_v43  ;;  %v9183_v21 = vand.u32 4294901760, %v109_v5 }
 0x359   :  { %v9161_v18 = vpop.f32.mrf.mxu0 }
 0x35a   :  { %v3289_v16 = vpop.f32.mrf.mxu2  ;;  %11061 = vst [vmem:[#allocation5_spill] sm:$0xff] %v9183_v21 }
 0x35b   :  { %v3382_v51 = vpop.f32.mrf.mxu3  ;;  %v3290_v11 = vadd.f32 %v3289_v16, %v3135_v56  ;;  %v9165_v59 = vpop.f32.mrf.mxu1 }
 0x35c   :  { %v9163_v26 = vadd.f32 %v3382_v51, %v3286_v24  ;;  %3566 = vmatmul.f32.gmra.mxu0 %v3565_v50  ;;  %v3024_v24 = vadd.f32 %v8962_v61, %v8763_v19  ;;  %v11060_v51 = vand.u32 4294901760, %v8875_v3  ;;  %v3580_v3 = vsub.f32 %v9171_v43, %v10701_v22 }
 0x35d   :  { %v9196_v61 = vsub.f32 %v109_v5, %v9183_v21 }
 0x35e   :  { %11059 = vst [vmem:[#allocation30_spill] sm:$0xff] %v9163_v26  ;;  %3739 = vmatmul.f32.gmra.mxu1 %v9084_v49  ;;  %v3141_v45 = vadd.f32 %v8995_v55, %v3024_v24  ;;  %v115_v55 = vld [vmem:[%s10513_s0 + $0x2f0] sm:$0xff]  ;;  %v3581_v24 = vand.u32 4294901760, %v3580_v3  ;;  %v197_v26 = vld [vmem:[%s10514_s1 + $0x280] sm:$0xff] }
 0x35f   :  { %3828 = vmatmul.f32.gmra.mxu2 %v8909_v6 }
 0x360   :  { %3939 = vmatmul.f32.gmra.mxu3 %v11060_v51  ;;  %v10704_v51 = vand.u32 4294901760, %v9196_v61 }
 0x361   :  { %v9186_v50 = vpop.f32.mrf.mxu0 }
 0x362   :  { %v3293_v56 = vpop.f32.mrf.mxu2  ;;  %v3588_v6 = vsub.f32 %v9196_v61, %v10704_v51 }
 0x363   :  { %v3386_v16 = vpop.f32.mrf.mxu3  ;;  %v3294_v34 = vadd.f32 %v3293_v56, %v3141_v45  ;;  %v9190_v19 = vpop.f32.mrf.mxu1 }
 0x364   :  { %v9188_v49 = vadd.f32 %v3386_v16, %v3290_v11  ;;  %3574 = vmatmul.f32.gmra.mxu0 %v3573_v0  ;;  %v3029_v11 = vadd.f32 %v8991_v37, %v8799_v2  ;;  %v9208_v0 = vand.u32 4294901760, %v115_v55 }
 0x366   :  { %11062 = vst [vmem:[#allocation20_spill] sm:$0xff] %v9188_v49  ;;  %3743 = vmatmul.f32.gmra.mxu1 %v9108_v47  ;;  %v3147_v5 = vadd.f32 %v9019_v23, %v3029_v11  ;;  %v9221_v37 = vsub.f32 %v115_v55, %v9208_v0  ;;  %v212_v23 = vld [vmem:[%s10514_s1 + $0x2f8] sm:$0xff]  ;;  %v11066_v11 = vand.u32 4294901760, %v8942_v42  ;;  %v3589_v55 = vand.u32 4294901760, %v3588_v6 }
 0x367   :  { %3833 = vmatmul.f32.gmra.mxu2 %v8942_v42  ;;  %11064 = vst [vmem:[#allocation11_spill] sm:$0xff] %v9208_v0  ;;  %v9226_v3 = vand.u32 4294901760, %v212_v23 }
 0x368   :  { %3945 = vmatmul.f32.gmra.mxu3 %v11063_v30 }
 0x369   :  { %v9211_v45 = vpop.f32.mrf.mxu0  ;;  %v9235_v30 = vsub.f32 %v212_v23, %v9226_v3  ;;  %4248 = vmatpush.msra.mxu2 %v9226_v3  ;;  %4699 = vmatpush.msra.mxu1 %v9226_v3 }
 0x36a   :  { %v3297_v56 = vpop.f32.mrf.mxu2 }
 0x36b   :  { %v3390_v16 = vpop.f32.mrf.mxu3  ;;  %v3298_v22 = vadd.f32 %v3297_v56, %v3147_v5  ;;  %v9215_v2 = vpop.f32.mrf.mxu1  ;;  %4571 = vmatpush.msra.mxu0 %v9235_v30 }
 0x36c   :  { %v9213_v47 = vadd.f32 %v3390_v16, %v3294_v34  ;;  %3582 = vmatmul.f32.gmra.mxu0 %v3581_v24  ;;  %v3034_v34 = vadd.f32 %v9015_v1, %v8831_v31  ;;  %v10707_v24 = vand.u32 4294901760, %v9221_v37  ;;  %v10710_v31 = vand.u32 4294901760, %v9235_v30 }
 0x36e   :  { %11065 = vst [vmem:[#allocation15_spill] sm:$0xff] %v9213_v47  ;;  %3747 = vmatmul.f32.gmra.mxu1 %v9133_v33  ;;  %v3153_v5 = vadd.f32 %v9043_v41, %v3034_v34  ;;  %v3596_v41 = vsub.f32 %v9221_v37, %v10707_v24  ;;  %v211_v34 = vld [vmem:[%s10514_s1 + $0x2f0] sm:$0xff] }
 0x36f   :  { %3838 = vmatmul.f32.gmra.mxu2 %v8975_v13  ;;  %v9258_v33 = vand.u32 4294901760, %v211_v34 }
 0x370   :  { %3951 = vmatmul.f32.gmra.mxu3 %v11066_v11  ;;  %v4411_v11 = vsub.f32 %v9235_v30, %v10710_v31 }
 0x371   :  { %v9241_v56 = vpop.f32.mrf.mxu0  ;;  %4250 = vmatpush.msra.mxu2 %v9258_v33  ;;  %4701 = vmatpush.msra.mxu1 %v9258_v33 }
 0x372   :  { %v3301_v42 = vpop.f32.mrf.mxu2  ;;  %v4412_v51 = vand.u32 4294901760, %v4411_v11 }
 0x373   :  { %v3394_v1 = vpop.f32.mrf.mxu3  ;;  %v3302_v16 = vadd.f32 %v3301_v42, %v3153_v5  ;;  %v9247_v6 = vpop.f32.mrf.mxu1  ;;  %v9267_v5 = vsub.f32 %v211_v34, %v9258_v33  ;;  %v3597_v42 = vand.u32 4294901760, %v3596_v41 }
 0x374   :  { %v9245_v23 = vadd.f32 %v3394_v1, %v3298_v22  ;;  %3590 = vmatmul.f32.gmra.mxu0 %v3589_v55  ;;  %v3039_v22 = vadd.f32 %v9039_v9, %v8867_v4  ;;  %v11068_v55 = vand.u32 4294901760, %v8975_v13  ;;  %4413 = vmatpush.msra.mxu3 %v4412_v51 }
 0x375   :  { %v10708_v24 = vand.u32 4294901760, %v9267_v5  ;;  %4574 = vmatpush.msra.mxu0 %v9267_v5 }
 0x376   :  { %11067 = vst [vmem:[#allocation23_spill] sm:$0xff] %v9245_v23  ;;  %3751 = vmatmul.f32.gmra.mxu1 %v9158_v14  ;;  %v3159_v1 = vadd.f32 %v9067_v8, %v3039_v22  ;;  %v210_v8 = vld [vmem:[%s10514_s1 + $0x2e8] sm:$0xff] }
 0x377   :  { %3843 = vmatmul.f32.gmra.mxu2 %v9001_v36  ;;  %v4417_v51 = vsub.f32 %v9267_v5, %v10708_v24  ;;  %v9286_v22 = vand.u32 4294901760, %v210_v8 }
 0x378   :  { %3957 = vmatmul.f32.gmra.mxu3 %v11068_v55 }
 0x379   :  { %v9271_v11 = vpop.f32.mrf.mxu0  ;;  %v4418_v41 = vand.u32 4294901760, %v4417_v51  ;;  %4252 = vmatpush.msra.mxu2 %v9286_v22  ;;  %4703 = vmatpush.msra.mxu1 %v9286_v22 }
 0x37a   :  { %v3305_v4 = vpop.f32.mrf.mxu2 }
 0x37b   :  { %v3398_v13 = vpop.f32.mrf.mxu3  ;;  %v3306_v9 = vadd.f32 %v3305_v4, %v3159_v1  ;;  %v9278_v34 = vpop.f32.mrf.mxu1  ;;  %v11070_v1 = vand.u32 4294901760, %v9001_v36  ;;  %v9295_v4 = vsub.f32 %v210_v8, %v9286_v22  ;;  %4419 = vmatpush.msra.mxu3 %v4418_v41 }
 0x37c   :  { %v9276_v55 = vadd.f32 %v3398_v13, %v3302_v16  ;;  %3598 = vmatmul.f32.gmra.mxu0 %v3597_v42  ;;  %v3044_v16 = vadd.f32 %v9063_v15, %v8901_v46 }
 0x37d   :  { %v10709_v51 = vand.u32 4294901760, %v9295_v4  ;;  %4577 = vmatpush.msra.mxu0 %v9295_v4 }
 0x37e   :  { %11069 = vst [vmem:[#allocation12_spill] sm:$0xff] %v9276_v55  ;;  %3755 = vmatmul.f32.gmra.mxu1 %v9183_v21  ;;  %v3165_v42 = vadd.f32 %v9091_v39, %v3044_v16  ;;  %v209_v39 = vld [vmem:[%s10514_s1 + $0x2e0] sm:$0xff]  ;;  %v3059_v21 = vadd.f32 %v9136_v63, %v8993_v35  ;;  %v203_v55 = vld [vmem:[%s10514_s1 + $0x2b0] sm:$0xff] }
 0x37f   :  { %3848 = vmatmul.f32.gmra.mxu2 %v9025_v48  ;;  %v4423_v41 = vsub.f32 %v9295_v4, %v10709_v51  ;;  %v9315_v24 = vand.u32 4294901760, %v209_v39 }
 0x380   :  { %3963 = vmatmul.f32.gmra.mxu3 %v11070_v1  ;;  %v3183_v63 = vadd.f32 %v9165_v59, %v3059_v21 }
 0x381   :  { %v9299_v13 = vpop.f32.mrf.mxu0  ;;  %v4424_v16 = vand.u32 4294901760, %v4423_v41  ;;  %4254 = vmatpush.msra.mxu2 %v9315_v24  ;;  %4705 = vmatpush.msra.mxu1 %v9315_v24 }
 0x382   :  { %v3309_v46 = vpop.f32.mrf.mxu2 }
 0x383   :  { %v3402_v15 = vpop.f32.mrf.mxu3  ;;  %v3310_v36 = vadd.f32 %v3309_v46, %v3165_v42  ;;  %v9306_v8 = vpop.f32.mrf.mxu1  ;;  %v11072_v42 = vand.u32 4294901760, %v9025_v48  ;;  %v9324_v46 = vsub.f32 %v209_v39, %v9315_v24  ;;  %4425 = vmatpush.msra.mxu3 %v4424_v16 }
 0x384   :  { %v9304_v1 = vadd.f32 %v3402_v15, %v3306_v9  ;;  %4086 = vmatmul.f32.vlgmr.msrb.gmra.mxu0 %v8787_v62  ;;  %v3049_v9 = vadd.f32 %v9087_v54, %v8934_v28 }
 0x385   :  { %v10711_v51 = vand.u32 4294901760, %v9324_v46  ;;  %4580 = vmatpush.msra.mxu0 %v9324_v46 }
 0x386   :  { %11071 = vst [vmem:[#allocation16_spill] sm:$0xff] %v9304_v1  ;;  %3759 = vmatmul.f32.gmra.mxu1 %v9208_v0  ;;  %v3171_v15 = vadd.f32 %v9115_v32, %v3049_v9  ;;  %v208_v32 = vld [vmem:[%s10514_s1 + $0x2d8] sm:$0xff]  ;;  %v205_v1 = vld [vmem:[%s10514_s1 + $0x2c0] sm:$0xff] }
 0x387   :  { %3853 = vmatmul.f32.gmra.mxu2 %v9049_v60  ;;  %v4429_v16 = vsub.f32 %v9324_v46, %v10711_v51  ;;  %v9344_v31 = vand.u32 4294901760, %v208_v32 }
 0x388   :  { %3969 = vmatmul.f32.gmra.mxu3 %v11072_v42 }
 0x389   :  { %v9328_v41 = vpop.f32.mrf.mxu0  ;;  %v4430_v9 = vand.u32 4294901760, %v4429_v16  ;;  %4256 = vmatpush.msra.mxu2 %v9344_v31  ;;  %4707 = vmatpush.msra.mxu1 %v9344_v31 }
 0x38a   :  { %11073 = vst [vmem:[#allocation24_spill] sm:$0xff] %v9328_v41  ;;  %v3313_v28 = vpop.f32.mrf.mxu2 }
 0x38b   :  { %v3406_v54 = vpop.f32.mrf.mxu3  ;;  %v3314_v48 = vadd.f32 %v3313_v28, %v3171_v15  ;;  %v9335_v39 = vpop.f32.mrf.mxu1  ;;  %v11075_v15 = vand.u32 4294901760, %v9049_v60  ;;  %v9353_v28 = vsub.f32 %v208_v32, %v9344_v31  ;;  %4431 = vmatpush.msra.mxu3 %v4430_v9  ;;  %v206_v60 = vld [vmem:[%s10514_s1 + $0x2c8] sm:$0xff] }
 0x38c   :  { %v9333_v42 = vadd.f32 %v3406_v54, %v3310_v36  ;;  %4090 = vmatmul.f32.gmra.mxu0 %v8821_v29  ;;  %v3054_v36 = vadd.f32 %v9111_v12, %v8967_v7  ;;  %v207_v54 = vld [vmem:[%s10514_s1 + $0x2d0] sm:$0xff] }
 0x38d   :  { %v9359_v16 = vand.u32 4294901760, %v207_v54  ;;  %4583 = vmatpush.msra.mxu0 %v9353_v28 }
 0x38e   :  { %11074 = vst [vmem:[#allocation29_spill] sm:$0xff] %v9333_v42  ;;  %4183 = vmatmul.f32.vlgmr.msrb.gmra.mxu1 %v8787_v62  ;;  %v3177_v62 = vadd.f32 %v9140_v25, %v3054_v36  ;;  %v11079_v42 = vand.u32 4294901760, %v9353_v28 }
 0x38f   :  { %3858 = vmatmul.f32.gmra.mxu2 %v9073_v52  ;;  %v9374_v25 = vsub.f32 %v207_v54, %v9359_v16  ;;  %4709 = vmatpush.msra.mxu1 %v9359_v16  ;;  %v9389_v54 = vand.u32 4294901760, %v205_v1 }
 0x390   :  { %3975 = vmatmul.f32.gmra.mxu3 %v11075_v15  ;;  %4258 = vmatpush.msra.mxu2 %v9359_v16  ;;  %v9371_v15 = vand.u32 4294901760, %v206_v60  ;;  %v4435_v0 = vsub.f32 %v9353_v28, %v11079_v42  ;;  %v204_v42 = vld [vmem:[%s10514_s1 + $0x2b8] sm:$0xff] }
 0x391   :  { %v9362_v7 = vpop.f32.mrf.mxu0  ;;  %4586 = vmatpush.msra.mxu0 %v9374_v25 }
 0x392   :  { %11076 = vst [vmem:[#allocation10_spill] sm:$0xff] %v9362_v7  ;;  %v3317_v32 = vpop.f32.mrf.mxu2  ;;  %4260 = vmatpush.msra.mxu2 %v9371_v15  ;;  %4711 = vmatpush.msra.mxu1 %v9371_v15  ;;  %v201_v7 = vld [vmem:[%s10514_s1 + $0x2a0] sm:$0xff] }
 0x393   :  { %v3410_v9 = vpop.f32.mrf.mxu3  ;;  %v3318_v36 = vadd.f32 %v3317_v32, %v3177_v62  ;;  %v9378_v12 = vpop.f32.mrf.mxu1  ;;  %v9393_v62 = vsub.f32 %v206_v60, %v9371_v15  ;;  %v4436_v32 = vand.u32 4294901760, %v4435_v0  ;;  %v9420_v0 = vand.u32 4294901760, %v203_v55 }
 0x394   :  { %v9376_v51 = vadd.f32 %v3410_v9, %v3314_v48  ;;  %11078 = vst [vmem:[#allocation31_spill] sm:$0xff] %v9378_v12  ;;  %4094 = vmatmul.f32.gmra.mxu0 %v8856_v53  ;;  %v10716_v48 = vand.u32 4294901760, %v9374_v25  ;;  %4262 = vmatpush.msra.mxu2 %v9389_v54  ;;  %v9402_v9 = vand.u32 4294901760, %v204_v42 }
 0x395   :  { %4437 = vmatpush.msra.mxu3 %v4436_v32  ;;  %4589 = vmatpush.msra.mxu0 %v9393_v62  ;;  %v9452_v49 = vsub.f32 %v203_v55, %v9420_v0  ;;  %v200_v55 = vld [vmem:[%s10514_s1 + $0x298] sm:$0xff] }
 0x396   :  { %11077 = vst [vmem:[#allocation22_spill] sm:$0xff] %v9376_v51  ;;  %4187 = vmatmul.f32.gmra.mxu1 %v8821_v29  ;;  %v4441_v60 = vsub.f32 %v9374_v25, %v10716_v48  ;;  %v9409_v51 = vsub.f32 %v205_v1, %v9389_v54  ;;  %v11080_v29 = vand.u32 4294901760, %v9073_v52  ;;  %4264 = vmatpush.msra.mxu2 %v9402_v9  ;;  %v11081_v1 = vand.u32 4294901760, %v9393_v62 }
 0x397   :  { %3863 = vmatmul.f32.gmra.mxu2 %v9097_v20  ;;  %v9433_v32 = vsub.f32 %v204_v42, %v9402_v9  ;;  %4713 = vmatpush.msra.mxu1 %v9389_v54 }
 0x398   :  { %3981 = vmatmul.f32.gmra.mxu3 %v11080_v29  ;;  %v4442_v48 = vand.u32 4294901760, %v4441_v60  ;;  %v4447_v14 = vsub.f32 %v9393_v62, %v11081_v1  ;;  %v10719_v35 = vand.u32 4294901760, %v9409_v51  ;;  %v202_v29 = vld [vmem:[%s10514_s1 + $0x2a8] sm:$0xff]  ;;  %4266 = vmatpush.msra.mxu2 %v9420_v0 }
 0x399   :  { %v9427_v52 = vpop.f32.mrf.mxu0  ;;  %v9438_v1 = vand.u32 4294901760, %v202_v29  ;;  %4592 = vmatpush.msra.mxu0 %v9409_v51  ;;  %4715 = vmatpush.msra.mxu1 %v9402_v9 }
 0x39a   :  { %11082 = vst [vmem:[#allocation8_spill] sm:$0xff] %v9427_v52  ;;  %v3321_v60 = vpop.f32.mrf.mxu2  ;;  %4443 = vmatpush.msra.mxu3 %v4442_v48  ;;  %v4448_v59 = vand.u32 4294901760, %v4447_v14  ;;  %v4453_v21 = vsub.f32 %v9409_v51, %v10719_v35  ;;  %v10720_v48 = vand.u32 4294901760, %v9433_v32  ;;  %v9458_v14 = vand.u32 4294901760, %v201_v7 }
 0x39b   :  { %v3414_v23 = vpop.f32.mrf.mxu3  ;;  %v3322_v52 = vadd.f32 %v3321_v60, %v3183_v63  ;;  %v9445_v42 = vpop.f32.mrf.mxu1  ;;  %4268 = vmatpush.msra.mxu2 %v9438_v1  ;;  %4595 = vmatpush.msra.mxu0 %v9433_v32  ;;  %v3064_v35 = vadd.f32 %v9161_v18, %v9017_v10 }
 0x39c   :  { %v9443_v47 = vadd.f32 %v3414_v23, %v3318_v36  ;;  %11084 = vst [vmem:[#allocation13_spill] sm:$0xff] %v9445_v42  ;;  %4098 = vmatmul.f32.gmra.mxu0 %v8890_v58  ;;  %v4454_v23 = vand.u32 4294901760, %v4453_v21  ;;  %v9461_v36 = vsub.f32 %v202_v29, %v9438_v1  ;;  %4449 = vmatpush.msra.mxu3 %v4448_v59  ;;  %v9473_v21 = vand.u32 4294901760, %v200_v55 }
 0x39d   :  { %v4459_v63 = vsub.f32 %v9433_v32, %v10720_v48  ;;  %4270 = vmatpush.msra.mxu2 %v9458_v14  ;;  %v9477_v59 = vsub.f32 %v201_v7, %v9458_v14  ;;  %v11085_v48 = vand.u32 4294901760, %v9097_v20  ;;  %4598 = vmatpush.msra.mxu0 %v9452_v49 }
 0x39e   :  { %11083 = vst [vmem:[#allocation25_spill] sm:$0xff] %v9443_v47  ;;  %4191 = vmatmul.f32.gmra.mxu1 %v8856_v53  ;;  %v199_v53 = vld [vmem:[%s10514_s1 + $0x290] sm:$0xff]  ;;  %v11086_v47 = vand.u32 4294901760, %v9452_v49  ;;  %4455 = vmatpush.msra.mxu3 %v4454_v23  ;;  %v11087_v10 = vand.u32 4294901760, %v9461_v36 }
 0x39f   :  { %3868 = vmatmul.f32.gmra.mxu2 %v9121_v57  ;;  %v4460_v60 = vand.u32 4294901760, %v4459_v63  ;;  %v9491_v7 = vand.u32 4294901760, %v199_v53  ;;  %v3189_v63 = vadd.f32 %v9190_v19, %v3064_v35  ;;  %4717 = vmatpush.msra.mxu1 %v9420_v0  ;;  %v11089_v19 = vand.u32 4294901760, %v9477_v59 }
 0x3a0   :  { %3987 = vmatmul.f32.gmra.mxu3 %v11085_v48  ;;  %v4465_v29 = vsub.f32 %v9452_v49, %v11086_v47  ;;  %4272 = vmatpush.msra.mxu2 %v9473_v21  ;;  %v4471_v18 = vsub.f32 %v9461_v36, %v11087_v10  ;;  %v9498_v48 = vsub.f32 %v200_v55, %v9473_v21  ;;  %v198_v47 = vld [vmem:[%s10514_s1 + $0x288] sm:$0xff] }
 0x3a1   :  { %v9501_v42 = vpop.f32.mrf.mxu0  ;;  %4461 = vmatpush.msra.mxu3 %v4460_v60  ;;  %v9509_v55 = vand.u32 4294901760, %v198_v47  ;;  %v4477_v35 = vsub.f32 %v9477_v59, %v11089_v19  ;;  %4601 = vmatpush.msra.mxu0 %v9461_v36 }
 0x3a2   :  { %11088 = vst [vmem:[#allocation18_spill] sm:$0xff] %v9501_v42  ;;  %v4466_v12 = vand.u32 4294901760, %v4465_v29  ;;  %v3325_v23 = vpop.f32.mrf.mxu2  ;;  %4274 = vmatpush.msra.mxu2 %v9491_v7  ;;  %v4472_v20 = vand.u32 4294901760, %v4471_v18  ;;  %v10721_v60 = vand.u32 4294901760, %v9498_v48  ;;  %4719 = vmatpush.msra.mxu1 %v9438_v1  ;;  %v9525_v18 = vand.u32 4294901760, %v197_v26 }
 0x3a3   :  { %v3418_v10 = vpop.f32.mrf.mxu3  ;;  %v3326_v29 = vadd.f32 %v3325_v23, %v3189_v63  ;;  %v9516_v41 = vpop.f32.mrf.mxu1  ;;  %v4478_v63 = vand.u32 4294901760, %v4477_v35  ;;  %4604 = vmatpush.msra.mxu0 %v9477_v59  ;;  %v11091_v35 = vand.u32 4294901760, %v9121_v57 }
 0x3a4   :  { %v9514_v42 = vadd.f32 %v3418_v10, %v3322_v52  ;;  %4102 = vmatmul.f32.gmra.mxu0 %v8923_v40  ;;  %4467 = vmatpush.msra.mxu3 %v4466_v12  ;;  %v9528_v52 = vsub.f32 %v199_v53, %v9491_v7  ;;  %v4483_v23 = vsub.f32 %v9498_v48, %v10721_v60 }
 0x3a5   :  { %4276 = vmatpush.msra.mxu2 %v9509_v55  ;;  %v9535_v10 = vsub.f32 %v198_v47, %v9509_v55  ;;  %v9541_v19 = vsub.f32 %v197_v26, %v9525_v18  ;;  %v3069_v53 = vadd.f32 %v9186_v50, %v9041_v17  ;;  %4607 = vmatpush.msra.mxu0 %v9498_v48 }
 0x3a6   :  { %11090 = vst [vmem:[#allocation33_spill] sm:$0xff] %v9514_v42  ;;  %4195 = vmatmul.f32.gmra.mxu1 %v8890_v58  ;;  %4473 = vmatpush.msra.mxu3 %v4472_v20  ;;  %v10722_v12 = vand.u32 4294901760, %v9528_v52  ;;  %v4484_v47 = vand.u32 4294901760, %v4483_v23 }
 0x3a7   :  { %3873 = vmatmul.f32.gmra.mxu2 %v9146_v38  ;;  %v10723_v60 = vand.u32 4294901760, %v9535_v10  ;;  %v4500_v26 = vand.u32 4294901760, %v9541_v19  ;;  %v3195_v20 = vadd.f32 %v9215_v2, %v3069_v53  ;;  %4721 = vmatpush.msra.mxu1 %v9458_v14  ;;  %v11092_v2 = vand.u32 4294901760, %v9235_v30 }
 0x3a8   :  { %3993 = vmatmul.f32.gmra.mxu3 %v11091_v35  ;;  %4278 = vmatpush.msra.mxu2 %v9525_v18  ;;  %v4489_v58 = vsub.f32 %v9528_v52, %v10722_v12  ;;  %v3074_v30 = vadd.f32 %v9211_v45, %v9065_v44 }
 0x3a9   :  { %4479 = vmatpush.msra.mxu3 %v4478_v63  ;;  %v9555_v17 = vpop.f32.mrf.mxu0  ;;  %v4495_v57 = vsub.f32 %v9535_v10, %v10723_v60  ;;  %v4501_v35 = vsub.f32 %v9541_v19, %v4500_v26  ;;  %4610 = vmatpush.msra.mxu0 %v9528_v52 }
 0x3aa   :  { %v3329_v50 = vpop.f32.mrf.mxu2  ;;  %v4490_v23 = vand.u32 4294901760, %v4489_v58  ;;  %4830 = vmatpush.msrb.mxu2 %v11092_v2  ;;  %4723 = vmatpush.msra.mxu1 %v9473_v21  ;;  %v26_v58 = vld [vmem:[%s10513_s0 + $0x28] sm:$0xff]  ;;  %v11099_v2 = vand.u32 4294901760, %v9171_v43 }
 0x3ab   :  { %v3422_v63 = vpop.f32.mrf.mxu3  ;;  %4485 = vmatpush.msra.mxu3 %v4484_v47  ;;  %v3330_v53 = vadd.f32 %v3329_v50, %v3195_v20  ;;  %v9569_v42 = vpop.f32.mrf.mxu1  ;;  %v4496_v60 = vand.u32 4294901760, %v4495_v57  ;;  %v4502_v47 = vand.u32 4294901760, %v4501_v35  ;;  %4613 = vmatpush.msra.mxu0 %v9535_v10  ;;  %v3201_v20 = vadd.f32 %v9247_v6, %v3074_v30  ;;  %v11095_v6 = vld [vmem:[#allocation9_spill] sm:$0xff] }
 0x3ac   :  { %v9567_v12 = vadd.f32 %v3422_v63, %v3326_v29  ;;  %4106 = vmatmul.f32.gmra.mxu0 %v8956_v27  ;;  %4725 = vmatpush.msra.mxu1 %v9491_v7  ;;  %v11093_v29 = vand.u32 4294901760, %v9146_v38  ;;  %v11094_v38 = vand.u32 4294901760, %v9267_v5  ;;  %v9597_v63 = vand.u32 4294901760, %v26_v58 }
 0x3ad   :  { %4491 = vmatpush.msra.mxu3 %v4490_v23  ;;  %4616 = vmatpush.msra.mxu0 %v9541_v19  ;;  %v11097_v5 = vand.u32 4294901760, %v9324_v46  ;;  %v11098_v23 = vld [vmem:[#allocation32_spill] sm:$0xff]  ;;  %v11120_v19 = vld [vmem:[#allocation31_spill] sm:$0xff] }
 0x3ae   :  { %4199 = vmatmul.f32.gmra.mxu1 %v8923_v40  ;;  %4834 = vmatpush.msrb.mxu2 %v11094_v38  ;;  %v3079_v35 = vadd.f32 %v9241_v56, %v11098_v23  ;;  %v11107_v38 = vand.u32 4294901760, %v9433_v32 }
 0x3af   :  { %4497 = vmatpush.msra.mxu3 %v4496_v60  ;;  %3878 = vmatmul.f32.gmra.mxu2 %v9171_v43 }
 0x3b0   :  { %3999 = vmatmul.f32.gmra.mxu3 %v11093_v29  ;;  %4727 = vmatpush.msra.mxu1 %v9509_v55 }
 0x3b1   :  { %4503 = vmatpush.msra.mxu3 %v4502_v47  ;;  %v9587_v57 = vpop.f32.mrf.mxu0  ;;  %v11101_v47 = vand.u32 4294901760, %v9374_v25  ;;  %v11104_v25 = vand.u32 4294901760, %v9409_v51 }
 0x3b2   :  { %v3333_v44 = vpop.f32.mrf.mxu2  ;;  %4729 = vmatpush.msra.mxu1 %v9525_v18 }
 0x3b3   :  { %4957 = vmatpush.msrb.mxu3 %v9226_v3  ;;  %v3426_v40 = vpop.f32.mrf.mxu3  ;;  %v3334_v45 = vadd.f32 %v3333_v44, %v3201_v20  ;;  %v9595_v50 = vpop.f32.mrf.mxu1  ;;  %v11096_v3 = vand.u32 4294901760, %v9295_v4  ;;  %v3207_v4 = vadd.f32 %v9278_v34, %v3079_v35  ;;  %v11103_v34 = vand.u32 4294901760, %v9393_v62  ;;  %v11105_v20 = vld [vmem:[#allocation6_spill] sm:$0xff] }
 0x3b4   :  { %v9593_v60 = vadd.f32 %v3426_v40, %v3330_v53  ;;  %4110 = vmatmul.f32.gmra.mxu0 %v11095_v6  ;;  %v3084_v44 = vadd.f32 %v9271_v11, %v11105_v20  ;;  %v11106_v40 = vand.u32 4294901760, %v9196_v61  ;;  %v38_v62 = vld [vmem:[%s10513_s0 + $0x88] sm:$0xff]  ;;  %v11117_v20 = vand.u32 4294901760, %v9535_v10 }
 0x3b5   :  { %4959 = vmatpush.msrb.mxu3 %v9258_v33  ;;  %4838 = vmatpush.msrb.mxu2 %v11096_v3  ;;  %v9614_v33 = vsub.f32 %v26_v58, %v9597_v63  ;;  %v11102_v58 = vld [vmem:[#allocation26_spill] sm:$0xff]  ;;  %v11108_v3 = vand.u32 4294901760, %v9452_v49 }
 0x3b6   :  { %4203 = vmatmul.f32.gmra.mxu1 %v8956_v27  ;;  %v11100_v27 = vand.u32 4294901760, %v9353_v28  ;;  %v3213_v11 = vadd.f32 %v9306_v8, %v3084_v44  ;;  %v11109_v8 = vld [vmem:[#allocation28_spill] sm:$0xff] }
 0x3b7   :  { %4961 = vmatpush.msrb.mxu3 %v9286_v22  ;;  %4842 = vmatpush.msrb.mxu2 %v11097_v5  ;;  %v32_v22 = vld [vmem:[%s10513_s0 + $0x58] sm:$0xff]  ;;  %v10732_v28 = vand.u32 4294901760, %v9614_v33 }
 0x3b8   :  { %3883 = vmatmul.f32.gmra.mxu2 %v9196_v61  ;;  %4005 = vmatmul.f32.gmra.mxu3 %v11099_v2  ;;  %v9625_v43 = vand.u32 4294901760, %v32_v22  ;;  %v11110_v2 = vand.u32 4294901760, %v9461_v36 }
 0x3b9   :  { %4963 = vmatpush.msrb.mxu3 %v9315_v24  ;;  %4846 = vmatpush.msrb.mxu2 %v11100_v27  ;;  %v9623_v56 = vpop.f32.mrf.mxu0 }
 0x3ba   :  { %v3337_v46 = vpop.f32.mrf.mxu2 }
 0x3bb   :  { %v3430_v53 = vpop.f32.mrf.mxu3  ;;  %4965 = vmatpush.msrb.mxu3 %v9344_v31  ;;  %4850 = vmatpush.msrb.mxu2 %v11101_v47  ;;  %v3338_v30 = vadd.f32 %v3337_v46, %v3207_v4  ;;  %v9632_v24 = vpop.f32.mrf.mxu1  ;;  %v9641_v31 = vsub.f32 %v32_v22, %v9625_v43  ;;  %v11112_v22 = vld [vmem:[#allocation17_spill] sm:$0xff]  ;;  %v11113_v4 = vand.u32 4294901760, %v9221_v37  ;;  %v11114_v46 = vand.u32 4294901760, %v9498_v48 }
 0x3bc   :  { %v9630_v29 = vadd.f32 %v3430_v53, %v3334_v45  ;;  %4114 = vmatmul.f32.gmra.mxu0 %v11102_v58  ;;  %v3480_v27 = vadd.f32 %v9299_v13, %v11112_v22  ;;  %v11124_v22 = vld [vmem:[#allocation13_spill] sm:$0xff] }
 0x3bd   :  { %4854 = vmatpush.msrb.mxu2 %v11103_v34  ;;  %4967 = vmatpush.msrb.mxu3 %v9359_v16  ;;  %v4282_v16 = vsub.f32 %v9614_v33, %v10732_v28 }
 0x3be   :  { %4207 = vmatmul.f32.gmra.mxu1 %v11095_v6  ;;  %v10731_v6 = vand.u32 4294901760, %v9641_v31 }
 0x3bf   :  { %4858 = vmatpush.msrb.mxu2 %v11104_v25  ;;  %4969 = vmatpush.msrb.mxu3 %v9371_v15  ;;  %v4283_v35 = vand.u32 4294901760, %v4282_v16  ;;  %v9670_v15 = vand.u32 4294901760, %v38_v62 }
 0x3c0   :  { %3888 = vmatmul.f32.gmra.mxu2 %v9221_v37  ;;  %4011 = vmatmul.f32.gmra.mxu3 %v11106_v40  ;;  %v4290_v49 = vsub.f32 %v9641_v31, %v10731_v6 }
 0x3c1   :  { %4862 = vmatpush.msrb.mxu2 %v11107_v38  ;;  %v9660_v51 = vpop.f32.mrf.mxu0  ;;  %4971 = vmatpush.msrb.mxu3 %v9389_v54  ;;  %v11111_v54 = vand.u32 4294901760, %v9477_v59  ;;  %v9687_v36 = vsub.f32 %v38_v62, %v9670_v15  ;;  %v3701_v59 = vadd.f32 %v9335_v39, %v3480_v27  ;;  %v11116_v39 = vld [vmem:[#allocation19_spill] sm:$0xff] }
 0x3c2   :  { %v3341_v45 = vpop.f32.mrf.mxu2  ;;  %v4291_v47 = vand.u32 4294901760, %v4290_v49 }
 0x3c3   :  { %v3434_v61 = vpop.f32.mrf.mxu3  ;;  %4866 = vmatpush.msrb.mxu2 %v11108_v3  ;;  %v3342_v5 = vadd.f32 %v3341_v45, %v3213_v11  ;;  %v9668_v32 = vpop.f32.mrf.mxu1  ;;  %4973 = vmatpush.msrb.mxu3 %v9402_v9  ;;  %v44_v9 = vld [vmem:[%s10513_s0 + $0xb8] sm:$0xff]  ;;  %v10729_v48 = vand.u32 4294901760, %v9687_v36 }
 0x3c4   :  { %v9666_v23 = vadd.f32 %v3434_v61, %v3338_v30  ;;  %4118 = vmatmul.f32.gmra.mxu0 %v11109_v8  ;;  %v11115_v30 = vand.u32 4294901760, %v9528_v52  ;;  %v11119_v52 = vld [vmem:[#allocation24_spill] sm:$0xff] }
 0x3c5   :  { %4870 = vmatpush.msrb.mxu2 %v11110_v2  ;;  %4975 = vmatpush.msrb.mxu3 %v9420_v0  ;;  %v9706_v0 = vand.u32 4294901760, %v44_v9  ;;  %v4298_v40 = vsub.f32 %v9687_v36, %v10729_v48  ;;  %v11123_v2 = vld [vmem:[#allocation10_spill] sm:$0xff] }
 0x3c6   :  { %4211 = vmatmul.f32.gmra.mxu1 %v11102_v58 }
 0x3c7   :  { %4874 = vmatpush.msrb.mxu2 %v11111_v54  ;;  %4977 = vmatpush.msrb.mxu3 %v9438_v1  ;;  %v11118_v1 = vld [vmem:[#allocation30_spill] sm:$0xff]  ;;  %v9722_v10 = vsub.f32 %v44_v9, %v9706_v0 }
 0x3c8   :  { %4017 = vmatmul.f32.gmra.mxu3 %v11113_v4  ;;  %4284 = vmatmul.f32.vlgmr.msra.gmra.mxu2 %v4283_v35  ;;  %v3488_v44 = vadd.f32 %v11119_v52, %v11118_v1  ;;  %v11127_v1 = vld [vmem:[#allocation8_spill] sm:$0xff] }
 0x3c9   :  { %4878 = vmatpush.msrb.mxu2 %v11114_v46  ;;  %v9696_v53 = vpop.f32.mrf.mxu0  ;;  %4979 = vmatpush.msrb.mxu3 %v9458_v14  ;;  %v50_v14 = vld [vmem:[%s10513_s0 + $0xe8] sm:$0xff]  ;;  %v10728_v35 = vand.u32 4294901760, %v9722_v10 }
 0x3ca   :  { %v3814_v37 = vpop.f32.mrf.mxu2  ;;  %v9731_v11 = vand.u32 4294901760, %v50_v14 }
 0x3cb   :  { %v3438_v13 = vpop.f32.mrf.mxu3  ;;  %4882 = vmatpush.msrb.mxu2 %v11115_v30  ;;  %v3815_v34 = vadd.f32 %v3814_v37, %v3701_v59  ;;  %v9703_v25 = vpop.f32.mrf.mxu1  ;;  %4981 = vmatpush.msrb.mxu3 %v9473_v21  ;;  %v4306_v54 = vsub.f32 %v9722_v10, %v10728_v35  ;;  %v11139_v35 = vld [vmem:[#allocation29_spill] sm:$0xff] }
 0x3cc   :  { %v9701_v58 = vadd.f32 %v3438_v13, %v3342_v5  ;;  %4122 = vmatmul.f32.gmra.mxu0 %v11116_v39  ;;  %v4299_v5 = vand.u32 4294901760, %v4298_v40  ;;  %v9743_v21 = vsub.f32 %v50_v14, %v9731_v11  ;;  %v62_v40 = vld [vmem:[%s10513_s0 + $0x148] sm:$0xff] }
 0x3cd   :  { %4886 = vmatpush.msrb.mxu2 %v11117_v20  ;;  %4983 = vmatpush.msrb.mxu3 %v9491_v7  ;;  %v11122_v7 = vld [vmem:[#allocation20_spill] sm:$0xff]  ;;  %v11126_v20 = vld [vmem:[#allocation15_spill] sm:$0xff] }
 0x3ce   :  { %4215 = vmatmul.f32.gmra.mxu1 %v11109_v8  ;;  %v11121_v8 = vld [vmem:[#allocation7_spill] sm:$0xff]  ;;  %v3496_v49 = vadd.f32 %v11123_v2, %v11122_v7  ;;  %v10727_v46 = vand.u32 4294901760, %v9743_v21  ;;  %v3504_v52 = vadd.f32 %v11127_v1, %v11126_v20  ;;  %v9787_v2 = vand.u32 4294901760, %v62_v40 }
 0x3cf   :  { %4890 = vmatpush.msrb.mxu2 %v4500_v26  ;;  %v3705_v26 = vadd.f32 %v11120_v19, %v3488_v44  ;;  %4985 = vmatpush.msrb.mxu3 %v9509_v55  ;;  %v56_v55 = vld [vmem:[%s10513_s0 + $0x118] sm:$0xff] }
 0x3d0   :  { %4292 = vmatmul.f32.gmra.mxu2 %v4291_v47  ;;  %4505 = vmatmul.f32.vlgmr.msra.gmra.mxu3 %v9597_v63  ;;  %v3709_v27 = vadd.f32 %v11124_v22, %v3496_v49  ;;  %v4307_v47 = vand.u32 4294901760, %v4306_v54  ;;  %v9763_v30 = vand.u32 4294901760, %v56_v55  ;;  %v3713_v14 = vadd.f32 %v9516_v41, %v3504_v52  ;;  %11128 = vst [vmem:[#allocation9_spill] sm:$0xff] %v9787_v2  ;;  %v11129_v49 = vld [vmem:[#allocation21_spill] sm:$0xff]  ;;  %v11130_v54 = vld [vmem:[#allocation23_spill] sm:$0xff]  ;;  %v11131_v41 = vld [vmem:[#allocation18_spill] sm:$0xff] }
 0x3d1   :  { %v9729_v16 = vpop.f32.mrf.mxu0  ;;  %4987 = vmatpush.msrb.mxu3 %v9525_v18 }
 0x3d2   :  { %v3819_v62 = vpop.f32.mrf.mxu2  ;;  %v9774_v44 = vsub.f32 %v56_v55, %v9763_v30  ;;  %v3512_v55 = vadd.f32 %v11131_v41, %v11130_v54  ;;  %v74_v54 = vld [vmem:[%s10513_s0 + $0x1a8] sm:$0xff] }
 0x3d3   :  { %v3928_v38 = vpop.f32.mrf.mxu3  ;;  %v3820_v45 = vadd.f32 %v3819_v62, %v3705_v26  ;;  %v9736_v3 = vpop.f32.mrf.mxu1 }
 0x3d4   :  { %v9734_v61 = vadd.f32 %v3928_v38, %v3815_v34  ;;  %4126 = vmatmul.f32.gmra.mxu0 %v11121_v8  ;;  %v11125_v34 = vld [vmem:[#allocation14_spill] sm:$0xff]  ;;  %v10726_v7 = vand.u32 4294901760, %v9774_v44 }
 0x3d6   :  { %4219 = vmatmul.f32.gmra.mxu1 %v11116_v39  ;;  %v4314_v39 = vsub.f32 %v9743_v21, %v10727_v46  ;;  %v4322_v22 = vsub.f32 %v9774_v44, %v10726_v7 }
 0x3d8   :  { %4300 = vmatmul.f32.gmra.mxu2 %v4299_v5  ;;  %4509 = vmatmul.f32.gmra.mxu3 %v9625_v43  ;;  %v4315_v38 = vand.u32 4294901760, %v4314_v39 }
 0x3d9   :  { %v9756_v4 = vpop.f32.mrf.mxu0 }
 0x3da   :  { %v3824_v9 = vpop.f32.mrf.mxu2 }
 0x3db   :  { %v3934_v18 = vpop.f32.mrf.mxu3  ;;  %v3825_v59 = vadd.f32 %v3824_v9, %v3709_v27  ;;  %v9761_v37 = vpop.f32.mrf.mxu1  ;;  %v9798_v27 = vsub.f32 %v62_v40, %v9787_v2  ;;  %v68_v9 = vld [vmem:[%s10513_s0 + $0x178] sm:$0xff] }
 0x3dc   :  { %v9759_v13 = vadd.f32 %v3934_v18, %v3820_v45  ;;  %4130 = vmatmul.f32.gmra.mxu0 %v11125_v34  ;;  %v3717_v18 = vadd.f32 %v9569_v42, %v3512_v55  ;;  %v9806_v39 = vand.u32 4294901760, %v68_v9 }
 0x3dd   :  { %v10724_v40 = vand.u32 4294901760, %v9798_v27 }
 0x3de   :  { %4223 = vmatmul.f32.gmra.mxu1 %v11121_v8  ;;  %11132 = vst [vmem:[#allocation32_spill] sm:$0xff] %v9806_v39  ;;  %v9816_v42 = vsub.f32 %v68_v9, %v9806_v39 }
 0x3e0   :  { %4308 = vmatmul.f32.gmra.mxu2 %v4307_v47  ;;  %4513 = vmatmul.f32.gmra.mxu3 %v9670_v15  ;;  %v10725_v9 = vand.u32 4294901760, %v9816_v42 }
 0x3e1   :  { %v9780_v19 = vpop.f32.mrf.mxu0 }
 0x3e2   :  { %v3829_v26 = vpop.f32.mrf.mxu2 }
 0x3e3   :  { %v3940_v62 = vpop.f32.mrf.mxu3  ;;  %v3830_v45 = vadd.f32 %v3829_v26, %v3713_v14  ;;  %v9784_v8 = vpop.f32.mrf.mxu1  ;;  %v4323_v14 = vand.u32 4294901760, %v4322_v22  ;;  %v11133_v26 = vld [vmem:[#allocation27_spill] sm:$0xff] }
 0x3e4   :  { %v9782_v5 = vadd.f32 %v3940_v62, %v3825_v59  ;;  %4134 = vmatmul.f32.gmra.mxu0 %v11129_v49  ;;  %v11134_v62 = vld [vmem:[#allocation12_spill] sm:$0xff] }
 0x3e6   :  { %4227 = vmatmul.f32.gmra.mxu1 %v11125_v34 }
 0x3e8   :  { %4316 = vmatmul.f32.gmra.mxu2 %v4315_v38  ;;  %4517 = vmatmul.f32.gmra.mxu3 %v9706_v0  ;;  %v3520_v38 = vadd.f32 %v9555_v17, %v11134_v62  ;;  %v11135_v62 = vld [vmem:[#allocation5_spill] sm:$0xff] }
 0x3e9   :  { %v9804_v59 = vpop.f32.mrf.mxu0 }
 0x3ea   :  { %v3834_v47 = vpop.f32.mrf.mxu2  ;;  %v3721_v41 = vadd.f32 %v9595_v50, %v3520_v38  ;;  %v4338_v50 = vsub.f32 %v9816_v42, %v10725_v9  ;;  %v11136_v38 = vld [vmem:[#allocation16_spill] sm:$0xff] }
 0x3eb   :  { %v3946_v34 = vpop.f32.mrf.mxu3  ;;  %v3835_v20 = vadd.f32 %v3834_v47, %v3717_v18  ;;  %v9810_v52 = vpop.f32.mrf.mxu1 }
 0x3ec   :  { %v9808_v1 = vadd.f32 %v3946_v34, %v3830_v45  ;;  %4138 = vmatmul.f32.gmra.mxu0 %v11133_v26  ;;  %v4330_v45 = vsub.f32 %v9798_v27, %v10724_v40  ;;  %v3528_v40 = vadd.f32 %v9587_v57, %v11136_v38  ;;  %v4339_v9 = vand.u32 4294901760, %v4338_v50  ;;  %v11138_v38 = vld [vmem:[#allocation11_spill] sm:$0xff]  ;;  %v86_v50 = vld [vmem:[%s10513_s0 + $0x208] sm:$0xff] }
 0x3ee   :  { %4231 = vmatmul.f32.gmra.mxu1 %v11129_v49  ;;  %v4331_v34 = vand.u32 4294901760, %v4330_v45  ;;  %v80_v45 = vld [vmem:[%s10513_s0 + $0x1d8] sm:$0xff] }
 0x3f0   :  { %4324 = vmatmul.f32.gmra.mxu2 %v4323_v14  ;;  %4521 = vmatmul.f32.gmra.mxu3 %v9731_v11  ;;  %v9835_v14 = vand.u32 4294901760, %v74_v54 }
 0x3f1   :  { %v9828_v49 = vpop.f32.mrf.mxu0 }
 0x3f2   :  { %v3839_v55 = vpop.f32.mrf.mxu2 }
 0x3f3   :  { %v3952_v22 = vpop.f32.mrf.mxu3  ;;  %v3840_v17 = vadd.f32 %v3839_v55, %v3721_v41  ;;  %v9833_v47 = vpop.f32.mrf.mxu1  ;;  %v3725_v41 = vadd.f32 %v9632_v24, %v3528_v40  ;;  %v3536_v24 = vadd.f32 %v9623_v56, %v11139_v35  ;;  %v9878_v35 = vand.u32 4294901760, %v86_v50 }
 0x3f4   :  { %v9831_v18 = vadd.f32 %v3952_v22, %v3835_v20  ;;  %4142 = vmatmul.f32.gmra.mxu0 %v11135_v62  ;;  %v9846_v20 = vsub.f32 %v74_v54, %v9835_v14  ;;  %v9859_v54 = vand.u32 4294901760, %v80_v45 }
 0x3f5   :  { %11140 = vst [vmem:[#allocation6_spill] sm:$0xff] %v9878_v35 }
 0x3f6   :  { %4235 = vmatmul.f32.gmra.mxu1 %v11133_v26  ;;  %11137 = vst [vmem:[#allocation26_spill] sm:$0xff] %v9859_v54 }
 0x3f8   :  { %4332 = vmatmul.f32.gmra.mxu2 %v4331_v34  ;;  %4525 = vmatmul.f32.gmra.mxu3 %v9763_v30  ;;  %v10730_v34 = vand.u32 4294901760, %v9846_v20 }
 0x3f9   :  { %v9852_v26 = vpop.f32.mrf.mxu0 }
 0x3fa   :  { %v3844_v55 = vpop.f32.mrf.mxu2  ;;  %v4346_v40 = vsub.f32 %v9846_v20, %v10730_v34 }
 0x3fb   :  { %v3958_v22 = vpop.f32.mrf.mxu3  ;;  %v3845_v7 = vadd.f32 %v3844_v55, %v3725_v41  ;;  %v9856_v57 = vpop.f32.mrf.mxu1  ;;  %v3729_v41 = vadd.f32 %v9668_v32, %v3536_v24  ;;  %v9888_v32 = vsub.f32 %v86_v50, %v9878_v35  ;;  %v11141_v24 = vld [vmem:[#allocation22_spill] sm:$0xff] }
 0x3fc   :  { %v9854_v46 = vadd.f32 %v3958_v22, %v3840_v17  ;;  %4146 = vmatmul.f32.gmra.mxu0 %v11138_v38  ;;  %v9870_v17 = vsub.f32 %v80_v45, %v9859_v54  ;;  %v4347_v34 = vand.u32 4294901760, %v4346_v40  ;;  %v3544_v6 = vadd.f32 %v9660_v51, %v11141_v24  ;;  %v92_v40 = vld [vmem:[%s10513_s0 + $0x238] sm:$0xff] }
 0x3fe   :  { %4239 = vmatmul.f32.gmra.mxu1 %v11135_v62  ;;  %v10735_v45 = vand.u32 4294901760, %v9870_v17 }
 0x400   :  { %4340 = vmatmul.f32.gmra.mxu2 %v4339_v9  ;;  %4529 = vmatmul.f32.gmra.mxu3 %v9787_v2 }
 0x401   :  { %v9876_v62 = vpop.f32.mrf.mxu0 }
 0x402   :  { %v3849_v55 = vpop.f32.mrf.mxu2 }
 0x403   :  { %v3964_v56 = vpop.f32.mrf.mxu3  ;;  %v3850_v9 = vadd.f32 %v3849_v55, %v3729_v41  ;;  %v9882_v48 = vpop.f32.mrf.mxu1  ;;  %v3733_v41 = vadd.f32 %v9703_v25, %v3544_v6  ;;  %v11144_v25 = vld [vmem:[#allocation25_spill] sm:$0xff] }
 0x404   :  { %v9880_v22 = vadd.f32 %v3964_v56, %v3845_v7  ;;  %4619 = vmatmul.f32.vlgmr.msra.gmra.mxu0 %v9614_v33  ;;  %v4354_v7 = vsub.f32 %v9870_v17, %v10735_v45  ;;  %v10738_v56 = vand.u32 4294901760, %v9888_v32  ;;  %v11143_v45 = vand.u32 4294901760, %v9614_v33 }
 0x405   :  { %v3552_v2 = vadd.f32 %v9696_v53, %v11144_v25  ;;  %v11146_v25 = vand.u32 4294901760, %v9641_v31 }
 0x406   :  { %4243 = vmatmul.f32.gmra.mxu1 %v11138_v38  ;;  %v4355_v28 = vand.u32 4294901760, %v4354_v7  ;;  %v4362_v6 = vsub.f32 %v9888_v32, %v10738_v56  ;;  %v98_v7 = vld [vmem:[%s10513_s0 + $0x268] sm:$0xff] }
 0x407   :  { %v3737_v33 = vadd.f32 %v9736_v3, %v3552_v2  ;;  %v11147_v3 = vld [vmem:[#allocation33_spill] sm:$0xff] }
 0x408   :  { %4348 = vmatmul.f32.gmra.mxu2 %v4347_v34  ;;  %4533 = vmatmul.f32.gmra.mxu3 %v9806_v39  ;;  %v9907_v39 = vand.u32 4294901760, %v92_v40  ;;  %v3560_v2 = vadd.f32 %v9729_v16, %v11147_v3 }
 0x409   :  { %v9900_v38 = vpop.f32.mrf.mxu0 }
 0x40a   :  { %v3854_v50 = vpop.f32.mrf.mxu2 }
 0x40b   :  { %v3970_v55 = vpop.f32.mrf.mxu3  ;;  %v3855_v51 = vadd.f32 %v3854_v50, %v3733_v41  ;;  %v9905_v24 = vpop.f32.mrf.mxu1 }
 0x40c   :  { %v9903_v34 = vadd.f32 %v3970_v55, %v3850_v9  ;;  %4624 = vmatmul.f32.gmra.mxu0 %v9641_v31  ;;  %v9919_v9 = vsub.f32 %v92_v40, %v9907_v39  ;;  %v4363_v55 = vand.u32 4294901760, %v4362_v6  ;;  %v9932_v40 = vand.u32 4294901760, %v98_v7 }
 0x40d   :  { %v3741_v31 = vadd.f32 %v9761_v37, %v3560_v2  ;;  %v3568_v2 = vadd.f32 %v9756_v4, %v9567_v12 }
 0x40e   :  { %11142 = vst [vmem:[#allocation28_spill] sm:$0xff] %v9903_v34  ;;  %4733 = vmatmul.f32.vlgmr.msra.gmra.mxu1 %v11143_v45  ;;  %v10739_v53 = vand.u32 4294901760, %v9919_v9  ;;  %v9944_v6 = vsub.f32 %v98_v7, %v9932_v40 }
 0x410   :  { %4356 = vmatmul.f32.gmra.mxu2 %v4355_v28  ;;  %4537 = vmatmul.f32.gmra.mxu3 %v9835_v14  ;;  %v10744_v7 = vand.u32 4294901760, %v9944_v6 }
 0x411   :  { %v9925_v45 = vpop.f32.mrf.mxu0 }
 0x412   :  { %v3859_v41 = vpop.f32.mrf.mxu2 }
 0x413   :  { %v3976_v50 = vpop.f32.mrf.mxu3  ;;  %v3860_v56 = vadd.f32 %v3859_v41, %v3737_v33  ;;  %v9929_v28 = vpop.f32.mrf.mxu1  ;;  %v104_v33 = vld [vmem:[%s10513_s0 + $0x298] sm:$0xff] }
 0x414   :  { %v9927_v34 = vadd.f32 %v3976_v50, %v3855_v51  ;;  %4629 = vmatmul.f32.gmra.mxu0 %v9687_v36  ;;  %v4370_v51 = vsub.f32 %v9919_v9, %v10739_v53 }
 0x416   :  { %11145 = vst [vmem:[#allocation17_spill] sm:$0xff] %v9927_v34  ;;  %4739 = vmatmul.f32.gmra.mxu1 %v11146_v25  ;;  %v4371_v53 = vand.u32 4294901760, %v4370_v51  ;;  %v110_v51 = vld [vmem:[%s10513_s0 + $0x2c8] sm:$0xff] }
 0x418   :  { %4364 = vmatmul.f32.gmra.mxu2 %v4363_v55  ;;  %4541 = vmatmul.f32.gmra.mxu3 %v9859_v54  ;;  %v9952_v55 = vand.u32 4294901760, %v104_v33  ;;  %v11149_v54 = vand.u32 4294901760, %v9687_v36  ;;  %v3745_v36 = vadd.f32 %v9784_v8, %v3568_v2  ;;  %v3576_v2 = vadd.f32 %v9780_v19, %v9593_v60 }
 0x419   :  { %v9950_v41 = vpop.f32.mrf.mxu0 }
 0x41a   :  { %v3864_v50 = vpop.f32.mrf.mxu2  ;;  %v9963_v37 = vsub.f32 %v104_v33, %v9952_v55 }
 0x41b   :  { %v3982_v16 = vpop.f32.mrf.mxu3  ;;  %v3865_v25 = vadd.f32 %v3864_v50, %v3741_v31  ;;  %v9956_v34 = vpop.f32.mrf.mxu1 }
 0x41c   :  { %v9954_v3 = vadd.f32 %v3982_v16, %v3860_v56  ;;  %4634 = vmatmul.f32.gmra.mxu0 %v9722_v10  ;;  %v4378_v56 = vsub.f32 %v9944_v6, %v10744_v7  ;;  %v10745_v50 = vand.u32 4294901760, %v9963_v37  ;;  %v11150_v7 = vand.u32 4294901760, %v9722_v10 }
 0x41d   :  { %v3749_v10 = vadd.f32 %v9810_v52, %v3576_v2  ;;  %v3584_v52 = vadd.f32 %v9804_v59, %v9630_v29 }
 0x41e   :  { %11148 = vst [vmem:[#allocation19_spill] sm:$0xff] %v9954_v3  ;;  %4745 = vmatmul.f32.gmra.mxu1 %v11149_v54  ;;  %v4379_v16 = vand.u32 4294901760, %v4378_v56  ;;  %v4386_v8 = vsub.f32 %v9963_v37, %v10745_v50  ;;  %v116_v56 = vld [vmem:[%s10513_s0 + $0x2f8] sm:$0xff] }
 0x41f   :  { %v3753_v2 = vadd.f32 %v9833_v47, %v3584_v52  ;;  %v3592_v47 = vadd.f32 %v9828_v49, %v9666_v23  ;;  %v11153_v23 = vand.u32 4294901760, %v9798_v27  ;;  %v3600_v49 = vadd.f32 %v9852_v26, %v9701_v58 }
 0x420   :  { %4372 = vmatmul.f32.gmra.mxu2 %v4371_v53  ;;  %4545 = vmatmul.f32.gmra.mxu3 %v9878_v35  ;;  %v9982_v35 = vand.u32 4294901760, %v110_v51  ;;  %v4088_v58 = vadd.f32 %v9876_v62, %v9734_v61  ;;  %v4092_v61 = vadd.f32 %v9900_v38, %v9759_v13  ;;  %v11156_v13 = vand.u32 4294901760, %v9870_v17 }
 0x421   :  { %v9975_v54 = vpop.f32.mrf.mxu0 }
 0x422   :  { %v3869_v33 = vpop.f32.mrf.mxu2  ;;  %v4189_v62 = vadd.f32 %v9929_v28, %v4092_v61 }
 0x423   :  { %v3988_v31 = vpop.f32.mrf.mxu3  ;;  %v3870_v12 = vadd.f32 %v3869_v33, %v3745_v36  ;;  %v9980_v53 = vpop.f32.mrf.mxu1 }
 0x424   :  { %v9978_v4 = vadd.f32 %v3988_v31, %v3865_v25  ;;  %4639 = vmatmul.f32.gmra.mxu0 %v9743_v21  ;;  %v9994_v25 = vsub.f32 %v110_v51, %v9982_v35  ;;  %v4387_v31 = vand.u32 4294901760, %v4386_v8  ;;  %v10007_v51 = vand.u32 4294901760, %v116_v56 }
 0x426   :  { %4751 = vmatmul.f32.gmra.mxu1 %v11150_v7  ;;  %v10746_v19 = vand.u32 4294901760, %v9994_v25  ;;  %v10019_v8 = vsub.f32 %v116_v56, %v10007_v51  ;;  %v3757_v56 = vadd.f32 %v9856_v57, %v3592_v47  ;;  %v3761_v57 = vadd.f32 %v9882_v48, %v3600_v49 }
 0x427   :  { %v4185_v48 = vadd.f32 %v9905_v24, %v4088_v58 }
 0x428   :  { %4380 = vmatmul.f32.gmra.mxu2 %v4379_v16  ;;  %4549 = vmatmul.f32.gmra.mxu3 %v9907_v39  ;;  %v11151_v16 = vand.u32 4294901760, %v9743_v21 }
 0x429   :  { %v10000_v7 = vpop.f32.mrf.mxu0 }
 0x42a   :  { %v3874_v36 = vpop.f32.mrf.mxu2 }
 0x42b   :  { %v3994_v33 = vpop.f32.mrf.mxu3  ;;  %v3875_v50 = vadd.f32 %v3874_v36, %v3749_v10  ;;  %v10004_v60 = vpop.f32.mrf.mxu1 }
 0x42c   :  { %v10002_v3 = vadd.f32 %v3994_v33, %v3870_v12  ;;  %4644 = vmatmul.f32.gmra.mxu0 %v9774_v44  ;;  %v4394_v12 = vsub.f32 %v9994_v25, %v10746_v19  ;;  %v11152_v19 = vand.u32 4294901760, %v9774_v44 }
 0x42e   :  { %4757 = vmatmul.f32.gmra.mxu1 %v11151_v16  ;;  %v4395_v59 = vand.u32 4294901760, %v4394_v12 }
 0x430   :  { %4388 = vmatmul.f32.gmra.mxu2 %v4387_v31  ;;  %4553 = vmatmul.f32.gmra.mxu3 %v9932_v40  ;;  %v4401_v31 = vand.u32 4294901760, %v10019_v8 }
 0x431   :  { %v10022_v10 = vpop.f32.mrf.mxu0 }
 0x432   :  { %v3879_v36 = vpop.f32.mrf.mxu2 }
 0x433   :  { %v4000_v21 = vpop.f32.mrf.mxu3  ;;  %v3880_v33 = vadd.f32 %v3879_v36, %v3753_v2  ;;  %v10026_v29 = vpop.f32.mrf.mxu1 }
 0x434   :  { %v10024_v16 = vadd.f32 %v4000_v21, %v3875_v50  ;;  %4649 = vmatmul.f32.gmra.mxu0 %v9798_v27  ;;  %v4402_v50 = vsub.f32 %v10019_v8, %v4401_v31  ;;  %v11154_v27 = vand.u32 4294901760, %v9816_v42 }
 0x436   :  { %4763 = vmatmul.f32.gmra.mxu1 %v11152_v19  ;;  %v4403_v19 = vand.u32 4294901760, %v4402_v50 }
 0x438   :  { %4396 = vmatmul.f32.gmra.mxu2 %v4395_v59  ;;  %4557 = vmatmul.f32.gmra.mxu3 %v9952_v55 }
 0x439   :  { %v10039_v52 = vpop.f32.mrf.mxu0 }
 0x43b   :  { %v3884_v12 = vpop.f32.mrf.mxu2  ;;  %v4006_v2 = vpop.f32.mrf.mxu3 }
 0x43c   :  { %v3885_v36 = vadd.f32 %v3884_v12, %v3757_v56  ;;  %v10041_v21 = vadd.f32 %v4006_v2, %v3880_v33  ;;  %v10043_v44 = vpop.f32.mrf.mxu1  ;;  %4654 = vmatmul.f32.gmra.mxu0 %v9816_v42  ;;  %v11155_v42 = vand.u32 4294901760, %v9846_v20 }
 0x43e   :  { %4769 = vmatmul.f32.gmra.mxu1 %v11153_v23 }
 0x440   :  { %4404 = vmatmul.f32.gmra.mxu2 %v4403_v19  ;;  %4561 = vmatmul.f32.gmra.mxu3 %v9982_v35 }
 0x441   :  { %v10052_v59 = vpop.f32.mrf.mxu0 }
 0x443   :  { %v3889_v33 = vpop.f32.mrf.mxu2  ;;  %v4012_v47 = vpop.f32.mrf.mxu3 }
 0x444   :  { %v3890_v56 = vadd.f32 %v3889_v33, %v3761_v57  ;;  %v10054_v12 = vadd.f32 %v4012_v47, %v3885_v36  ;;  %v10056_v50 = vpop.f32.mrf.mxu1  ;;  %4659 = vmatmul.f32.gmra.mxu0 %v9846_v20 }
 0x446   :  { %4775 = vmatmul.f32.gmra.mxu1 %v11154_v27 }
 0x448   :  { %4565 = vmatmul.f32.gmra.mxu3 %v10007_v51  ;;  %4892 = vmatmul.f32.vlgmr.msrb.gmra.mxu2 %v9597_v63 }
 0x449   :  { %v10066_v26 = vpop.f32.mrf.mxu0 }
 0x44b   :  { %v4018_v2 = vpop.f32.mrf.mxu3  ;;  %v4285_v36 = vpop.f32.mrf.mxu2 }
 0x44c   :  { %v10068_v19 = vadd.f32 %v4018_v2, %v3890_v56  ;;  %v4286_v23 = vadd.f32 %v4285_v36, %v4185_v48  ;;  %v10070_v49 = vpop.f32.mrf.mxu1  ;;  %4664 = vmatmul.f32.gmra.mxu0 %v9870_v17 }
 0x44e   :  { %4781 = vmatmul.f32.gmra.mxu1 %v11155_v42 }
 0x450   :  { %4896 = vmatmul.f32.gmra.mxu2 %v9625_v43  ;;  %4989 = vmatmul.f32.vlgmr.msrb.gmra.mxu3 %v9597_v63  ;;  %v4096_v63 = vadd.f32 %v9925_v45, %v9782_v5  ;;  %v11157_v5 = vand.u32 4294901760, %v9888_v32 }
 0x451   :  { %v4127_v24 = vpop.f32.mrf.mxu0 }
 0x452   :  { %v4128_v47 = vadd.f32 %v4127_v24, %v9978_v4  ;;  %v4193_v20 = vadd.f32 %v9956_v34, %v4096_v63 }
 0x453   :  { %v4293_v57 = vpop.f32.mrf.mxu2  ;;  %v4506_v33 = vpop.f32.mrf.mxu3 }
 0x454   :  { %v4294_v56 = vadd.f32 %v4293_v57, %v4189_v62  ;;  %v10081_v27 = vadd.f32 %v4506_v33, %v4286_v23  ;;  %v10083_v58 = vpop.f32.mrf.mxu1  ;;  %4669 = vmatmul.f32.gmra.mxu0 %v9888_v32 }
 0x456   :  { %4787 = vmatmul.f32.gmra.mxu1 %v11156_v13 }
 0x458   :  { %4900 = vmatmul.f32.gmra.mxu2 %v9670_v15  ;;  %4993 = vmatmul.f32.gmra.mxu3 %v9625_v43  ;;  %v4100_v43 = vadd.f32 %v9950_v41, %v9808_v1  ;;  %v11158_v1 = vand.u32 4294901760, %v9919_v9 }
 0x459   :  { %v4131_v38 = vpop.f32.mrf.mxu0 }
 0x45a   :  { %v4132_v48 = vadd.f32 %v4131_v38, %v10002_v3  ;;  %v4197_v34 = vadd.f32 %v9980_v53, %v4100_v43 }
 0x45b   :  { %v4301_v28 = vpop.f32.mrf.mxu2  ;;  %v4510_v4 = vpop.f32.mrf.mxu3 }
 0x45c   :  { %v4302_v2 = vadd.f32 %v4301_v28, %v4193_v20  ;;  %v10094_v36 = vadd.f32 %v4510_v4, %v4294_v56  ;;  %v4224_v23 = vpop.f32.mrf.mxu1  ;;  %4674 = vmatmul.f32.gmra.mxu0 %v9919_v9 }
 0x45d   :  { %v10096_v17 = vadd.f32 %v4224_v23, %v4128_v47 }
 0x45e   :  { %4793 = vmatmul.f32.gmra.mxu1 %v11157_v5 }
 0x460   :  { %4904 = vmatmul.f32.gmra.mxu2 %v9706_v0  ;;  %4997 = vmatmul.f32.gmra.mxu3 %v9670_v15  ;;  %v4104_v15 = vadd.f32 %v9975_v54, %v9831_v18  ;;  %v11159_v18 = vand.u32 4294901760, %v9944_v6 }
 0x461   :  { %v4135_v45 = vpop.f32.mrf.mxu0 }
 0x462   :  { %v4136_v61 = vadd.f32 %v4135_v45, %v10024_v16  ;;  %v4201_v41 = vadd.f32 %v10004_v60, %v4104_v15 }
 0x463   :  { %v4309_v3 = vpop.f32.mrf.mxu2  ;;  %v4514_v42 = vpop.f32.mrf.mxu3 }
 0x464   :  { %v4310_v62 = vadd.f32 %v4309_v3, %v4197_v34  ;;  %v10107_v24 = vadd.f32 %v4514_v42, %v4302_v2  ;;  %v4228_v57 = vpop.f32.mrf.mxu1  ;;  %4679 = vmatmul.f32.gmra.mxu0 %v9944_v6 }
 0x465   :  { %v10109_v32 = vadd.f32 %v4228_v57, %v4132_v48 }
 0x466   :  { %4799 = vmatmul.f32.gmra.mxu1 %v11158_v1 }
 0x468   :  { %4908 = vmatmul.f32.gmra.mxu2 %v9731_v11  ;;  %5001 = vmatmul.f32.gmra.mxu3 %v9706_v0  ;;  %v4108_v0 = vadd.f32 %v10000_v7, %v9854_v46  ;;  %v11160_v46 = vand.u32 4294901760, %v9963_v37  ;;  %v11161_v7 = vld [vmem:[#allocation9_spill] sm:$0xff] }
 0x469   :  { %v4139_v53 = vpop.f32.mrf.mxu0 }
 0x46a   :  { %v4140_v47 = vadd.f32 %v4139_v53, %v10041_v21  ;;  %v4205_v54 = vadd.f32 %v10026_v29, %v4108_v0 }
 0x46b   :  { %v4317_v16 = vpop.f32.mrf.mxu2  ;;  %v4518_v33 = vpop.f32.mrf.mxu3 }
 0x46c   :  { %v4318_v56 = vadd.f32 %v4317_v16, %v4201_v41  ;;  %v10120_v13 = vadd.f32 %v4518_v33, %v4310_v62  ;;  %v4232_v63 = vpop.f32.mrf.mxu1  ;;  %4684 = vmatmul.f32.gmra.mxu0 %v9963_v37 }
 0x46d   :  { %v10122_v9 = vadd.f32 %v4232_v63, %v4136_v61  ;;  %v11166_v63 = vld [vmem:[#allocation26_spill] sm:$0xff] }
 0x46e   :  { %4805 = vmatmul.f32.gmra.mxu1 %v11159_v18 }
 0x470   :  { %4912 = vmatmul.f32.gmra.mxu2 %v9763_v30  ;;  %5005 = vmatmul.f32.gmra.mxu3 %v9731_v11  ;;  %v4112_v11 = vadd.f32 %v10022_v10, %v9880_v22  ;;  %v11162_v22 = vand.u32 4294901760, %v9994_v25  ;;  %v11163_v10 = vld [vmem:[#allocation28_spill] sm:$0xff] }
 0x471   :  { %v4143_v60 = vpop.f32.mrf.mxu0 }
 0x472   :  { %v4144_v38 = vadd.f32 %v4143_v60, %v10054_v12  ;;  %v4209_v29 = vadd.f32 %v10043_v44, %v4112_v11  ;;  %v11164_v44 = vld [vmem:[#allocation32_spill] sm:$0xff] }
 0x473   :  { %v4325_v21 = vpop.f32.mrf.mxu2  ;;  %v4522_v20 = vpop.f32.mrf.mxu3 }
 0x474   :  { %v4326_v28 = vadd.f32 %v4325_v21, %v4205_v54  ;;  %v10133_v4 = vadd.f32 %v4522_v20, %v4318_v56  ;;  %v4236_v48 = vpop.f32.mrf.mxu1  ;;  %4689 = vmatmul.f32.gmra.mxu0 %v9994_v25  ;;  %v11167_v20 = vld [vmem:[#allocation6_spill] sm:$0xff] }
 0x475   :  { %v10135_v6 = vadd.f32 %v4236_v48, %v4140_v47  ;;  %v11165_v47 = vld [vmem:[#allocation19_spill] sm:$0xff] }
 0x476   :  { %4811 = vmatmul.f32.gmra.mxu1 %v11160_v46  ;;  %v4124_v56 = vadd.f32 %v10066_v26, %v11165_v47 }
 0x478   :  { %4916 = vmatmul.f32.gmra.mxu2 %v11161_v7  ;;  %5009 = vmatmul.f32.gmra.mxu3 %v9763_v30  ;;  %v4116_v30 = vadd.f32 %v10039_v52, %v11163_v10 }
 0x479   :  { %v4147_v12 = vpop.f32.mrf.mxu0 }
 0x47a   :  { %v4148_v5 = vadd.f32 %v4147_v12, %v10068_v19  ;;  %v4213_v19 = vadd.f32 %v10056_v50, %v4116_v30 }
 0x47b   :  { %v4333_v2 = vpop.f32.mrf.mxu2  ;;  %v4526_v23 = vpop.f32.mrf.mxu3 }
 0x47c   :  { %v4334_v43 = vadd.f32 %v4333_v2, %v4209_v29  ;;  %v10146_v34 = vadd.f32 %v4526_v23, %v4326_v28  ;;  %v4240_v45 = vpop.f32.mrf.mxu1  ;;  %4694 = vmatmul.f32.gmra.mxu0 %v10019_v8  ;;  %v4221_v8 = vadd.f32 %v10083_v58, %v4124_v56 }
 0x47d   :  { %v10148_v37 = vadd.f32 %v4240_v45, %v4144_v38 }
 0x47e   :  { %4817 = vmatmul.f32.gmra.mxu1 %v11162_v22 }
 0x480   :  { %4920 = vmatmul.f32.gmra.mxu2 %v11164_v44  ;;  %5013 = vmatmul.f32.gmra.mxu3 %v11161_v7 }
 0x481   :  { %v4620_v3 = vpop.f32.mrf.mxu0 }
 0x482   :  { %v4621_v62 = vadd.f32 %v4620_v3, %v10081_v27 }
 0x483   :  { %v4341_v42 = vpop.f32.mrf.mxu2  ;;  %v4530_v61 = vpop.f32.mrf.mxu3 }
 0x484   :  { %v4342_v57 = vadd.f32 %v4341_v42, %v4213_v19  ;;  %v4531_v1 = vadd.f32 %v4530_v61, %v4334_v43  ;;  %v4244_v15 = vpop.f32.mrf.mxu1 }
 0x485   :  { %v10159_v41 = vadd.f32 %v4244_v15, %v4148_v5 }
 0x486   :  { %4823 = vmatmul.f32.gmra.mxu1 %v4401_v31 }
 0x488   :  { %4924 = vmatmul.f32.gmra.mxu2 %v9835_v14  ;;  %5017 = vmatmul.f32.gmra.mxu3 %v11164_v44 }
 0x489   :  { %v4625_v25 = vpop.f32.mrf.mxu0 }
 0x48a   :  { %v4626_v53 = vadd.f32 %v4625_v25, %v10094_v36 }
 0x48b   :  { %v10165_v52 = vpop.f32.mrf.mxu2  ;;  %v4534_v50 = vpop.f32.mrf.mxu3 }
 0x48c   :  { %v4535_v16 = vadd.f32 %v4534_v50, %v4342_v57  ;;  %v4734_v27 = vpop.f32.mrf.mxu1  ;;  %v11168_v57 = vld [vmem:[#allocation17_spill] sm:$0xff] }
 0x48d   :  { %v10168_v33 = vadd.f32 %v4734_v27, %v4621_v62  ;;  %v4120_v15 = vadd.f32 %v10052_v59, %v11168_v57 }
 0x48f   :  { %v4217_v27 = vadd.f32 %v10070_v49, %v4120_v15 }
 0x490   :  { %4928 = vmatmul.f32.gmra.mxu2 %v11166_v63  ;;  %5021 = vmatmul.f32.gmra.mxu3 %v9835_v14 }
 0x491   :  { %v4630_v31 = vpop.f32.mrf.mxu0  ;;  %v4350_v56 = vadd.f32 %v10165_v52, %v4217_v27 }
 0x492   :  { %v4631_v54 = vadd.f32 %v4630_v31, %v10107_v24 }
 0x493   :  { %v4357_v18 = vpop.f32.mrf.mxu2  ;;  %v4538_v0 = vpop.f32.mrf.mxu3 }
 0x494   :  { %v4358_v60 = vadd.f32 %v4357_v18, %v4221_v8  ;;  %v4740_v36 = vpop.f32.mrf.mxu1 }
 0x495   :  { %v10176_v21 = vadd.f32 %v4740_v36, %v4626_v53 }
 0x498   :  { %4932 = vmatmul.f32.gmra.mxu2 %v11167_v20  ;;  %5025 = vmatmul.f32.gmra.mxu3 %v11166_v63 }
 0x499   :  { %v4635_v26 = vpop.f32.mrf.mxu0 }
 0x49a   :  { %v4636_v14 = vadd.f32 %v4635_v26, %v10120_v13 }
 0x49b   :  { %v4365_v38 = vpop.f32.mrf.mxu2  ;;  %v4542_v28 = vpop.f32.mrf.mxu3 }
 0x49c   :  { %v4366_v58 = vadd.f32 %v4365_v38, %v10096_v17  ;;  %v4543_v48 = vadd.f32 %v4542_v28, %v4358_v60  ;;  %v4746_v46 = vpop.f32.mrf.mxu1 }
 0x49d   :  { %v10182_v11 = vadd.f32 %v4746_v46, %v4631_v54 }
 0x4a0   :  { %4936 = vmatmul.f32.gmra.mxu2 %v9907_v39  ;;  %5029 = vmatmul.f32.gmra.mxu3 %v11167_v20 }
 0x4a1   :  { %v4640_v24 = vpop.f32.mrf.mxu0 }
 0x4a2   :  { %v4641_v12 = vadd.f32 %v4640_v24, %v10133_v4 }
 0x4a3   :  { %v4373_v7 = vpop.f32.mrf.mxu2  ;;  %v4546_v29 = vpop.f32.mrf.mxu3 }
 0x4a4   :  { %v4374_v2 = vadd.f32 %v4373_v7, %v10109_v32  ;;  %v10188_v23 = vadd.f32 %v4546_v29, %v4366_v58  ;;  %v4752_v13 = vpop.f32.mrf.mxu1 }
 0x4a5   :  { %v10190_v5 = vadd.f32 %v4752_v13, %v4636_v14 }
 0x4a8   :  { %4940 = vmatmul.f32.gmra.mxu2 %v9932_v40  ;;  %5033 = vmatmul.f32.gmra.mxu3 %v9907_v39 }
 0x4a9   :  { %v4645_v17 = vpop.f32.mrf.mxu0 }
 0x4aa   :  { %v4646_v22 = vadd.f32 %v4645_v17, %v10146_v34 }
 0x4ab   :  { %v4381_v43 = vpop.f32.mrf.mxu2  ;;  %v4550_v45 = vpop.f32.mrf.mxu3 }
 0x4ac   :  { %v4382_v10 = vadd.f32 %v4381_v43, %v10122_v9  ;;  %v10196_v30 = vadd.f32 %v4550_v45, %v4374_v2  ;;  %v4758_v4 = vpop.f32.mrf.mxu1 }
 0x4ad   :  { %v4759_v32 = vadd.f32 %v4758_v4, %v4641_v12 }
 0x4b0   :  { %4944 = vmatmul.f32.gmra.mxu2 %v9952_v55  ;;  %5037 = vmatmul.f32.gmra.mxu3 %v9932_v40 }
 0x4b1   :  { %v4650_v44 = vpop.f32.mrf.mxu0 }
 0x4b2   :  { %v4651_v42 = vadd.f32 %v4650_v44, %v4531_v1 }
 0x4b3   :  { %v4389_v19 = vpop.f32.mrf.mxu2  ;;  %v4554_v3 = vpop.f32.mrf.mxu3 }
 0x4b4   :  { %v4390_v39 = vadd.f32 %v4389_v19, %v10135_v6  ;;  %v10201_v61 = vadd.f32 %v4554_v3, %v4382_v10  ;;  %v4764_v62 = vpop.f32.mrf.mxu1 }
 0x4b5   :  { %v4765_v34 = vadd.f32 %v4764_v62, %v4646_v22 }
 0x4b8   :  { %4948 = vmatmul.f32.gmra.mxu2 %v9982_v35  ;;  %5041 = vmatmul.f32.gmra.mxu3 %v9952_v55  ;;  %v4539_v55 = vadd.f32 %v4538_v0, %v4350_v56 }
 0x4b9   :  { %v4655_v9 = vpop.f32.mrf.mxu0 }
 0x4ba   :  { %v4656_v50 = vadd.f32 %v4655_v9, %v4535_v16 }
 0x4bb   :  { %v4397_v25 = vpop.f32.mrf.mxu2  ;;  %v4558_v40 = vpop.f32.mrf.mxu3 }
 0x4bc   :  { %v4398_v53 = vadd.f32 %v4397_v25, %v10148_v37  ;;  %v10208_v1 = vadd.f32 %v4558_v40, %v4390_v39  ;;  %v4770_v6 = vpop.f32.mrf.mxu1 }
 0x4bd   :  { %v4771_v47 = vadd.f32 %v4770_v6, %v4651_v42 }
 0x4c0   :  { %4952 = vmatmul.f32.gmra.mxu2 %v10007_v51  ;;  %5045 = vmatmul.f32.gmra.mxu3 %v9982_v35 }
 0x4c1   :  { %v4660_v63 = vpop.f32.mrf.mxu0 }
 0x4c2   :  { %v4661_v31 = vadd.f32 %v4660_v63, %v4539_v55 }
 0x4c3   :  { %v4405_v59 = vpop.f32.mrf.mxu2  ;;  %v4562_v8 = vpop.f32.mrf.mxu3 }
 0x4c4   :  { %v4406_v16 = vadd.f32 %v4405_v59, %v10159_v41  ;;  %v10215_v37 = vadd.f32 %v4562_v8, %v4398_v53  ;;  %v4776_v18 = vpop.f32.mrf.mxu1 }
 0x4c5   :  { %v4777_v54 = vadd.f32 %v4776_v18, %v4656_v50 }
 0x4c8   :  { %5049 = vmatmul.f32.gmra.mxu3 %v10007_v51 }
 0x4c9   :  { %v4665_v49 = vpop.f32.mrf.mxu0 }
 0x4ca   :  { %v4666_v36 = vadd.f32 %v4665_v49, %v4543_v48 }
 0x4cb   :  { %v4566_v60 = vpop.f32.mrf.mxu3  ;;  %v4893_v52 = vpop.f32.mrf.mxu2 }
 0x4cc   :  { %v10218_v20 = vadd.f32 %v4566_v60, %v4406_v16  ;;  %v4894_v35 = vadd.f32 %v4893_v52, %v10168_v33  ;;  %v4782_v0 = vpop.f32.mrf.mxu1 }
 0x4cd   :  { %v4783_v26 = vadd.f32 %v4782_v0, %v4661_v31 }
 0x4d1   :  { %v4670_v25 = vpop.f32.mrf.mxu0 }
 0x4d3   :  { %v4897_v38 = vpop.f32.mrf.mxu2  ;;  %v4990_v28 = vpop.f32.mrf.mxu3 }
 0x4d4   :  { %v4898_v41 = vadd.f32 %v4897_v38, %v10176_v21  ;;  %v10222_v14 = vadd.f32 %v4990_v28, %v4894_v35  ;;  %v4788_v58 = vpop.f32.mrf.mxu1 }
 0x4d5   :  { %v4789_v46 = vadd.f32 %v4788_v58, %v4666_v36 }
 0x4d9   :  { %v4675_v27 = vpop.f32.mrf.mxu0 }
 0x4db   :  { %v4901_v24 = vpop.f32.mrf.mxu2  ;;  %v4994_v51 = vpop.f32.mrf.mxu3 }
 0x4dc   :  { %v4902_v7 = vadd.f32 %v4901_v24, %v10182_v11  ;;  %v10225_v29 = vadd.f32 %v4994_v51, %v4898_v41  ;;  %v4794_v40 = vpop.f32.mrf.mxu1 }
 0x4e1   :  { %v4680_v31 = vpop.f32.mrf.mxu0 }
 0x4e2   :  { %v4681_v51 = vadd.f32 %v4680_v31, %v10201_v61 }
 0x4e3   :  { %v4905_v48 = vpop.f32.mrf.mxu2  ;;  %v4998_v12 = vpop.f32.mrf.mxu3 }
 0x4e4   :  { %v4906_v33 = vadd.f32 %v4905_v48, %v10190_v5  ;;  %v10228_v2 = vadd.f32 %v4998_v12, %v4902_v7  ;;  %v4800_v63 = vpop.f32.mrf.mxu1 }
 0x4e9   :  { %v4685_v49 = vpop.f32.mrf.mxu0 }
 0x4ea   :  { %v4686_v41 = vadd.f32 %v4685_v49, %v10208_v1 }
 0x4eb   :  { %v4909_v13 = vpop.f32.mrf.mxu2  ;;  %v5002_v17 = vpop.f32.mrf.mxu3 }
 0x4ec   :  { %v4910_v43 = vadd.f32 %v4909_v13, %v4759_v32  ;;  %v10230_v21 = vadd.f32 %v5002_v17, %v4906_v33  ;;  %v4806_v16 = vpop.f32.mrf.mxu1 }
 0x4ed   :  { %v4807_v13 = vadd.f32 %v4806_v16, %v4681_v51 }
 0x4f1   :  { %v4690_v35 = vpop.f32.mrf.mxu0 }
 0x4f2   :  { %v4691_v28 = vadd.f32 %v4690_v35, %v10215_v37 }
 0x4f3   :  { %v4913_v45 = vpop.f32.mrf.mxu2  ;;  %v5006_v22 = vpop.f32.mrf.mxu3 }
 0x4f4   :  { %v4914_v10 = vadd.f32 %v4913_v45, %v4765_v34  ;;  %v10232_v4 = vadd.f32 %v5006_v22, %v4910_v43  ;;  %v4812_v60 = vpop.f32.mrf.mxu1  ;;  %v4676_v43 = vadd.f32 %v4675_v27, %v10196_v30 }
 0x4f6   :  { %v4801_v1 = vadd.f32 %v4800_v63, %v4676_v43 }
 0x4f9   :  { %v4695_v7 = vpop.f32.mrf.mxu0 }
 0x4fa   :  { %v4696_v45 = vadd.f32 %v4695_v7, %v10218_v20 }
 0x4fb   :  { %v4917_v44 = vpop.f32.mrf.mxu2  ;;  %v5010_v11 = vpop.f32.mrf.mxu3 }
 0x4fc   :  { %v4918_v19 = vadd.f32 %v4917_v44, %v4771_v47  ;;  %v10234_v3 = vadd.f32 %v5010_v11, %v4914_v10  ;;  %v4818_v0 = vpop.f32.mrf.mxu1 }
 0x4fd   :  { %v4819_v58 = vadd.f32 %v4818_v0, %v4691_v28 }
 0x503   :  { %v4921_v42 = vpop.f32.mrf.mxu2  ;;  %v5014_v39 = vpop.f32.mrf.mxu3 }
 0x504   :  { %v4922_v5 = vadd.f32 %v4921_v42, %v4777_v54  ;;  %v10236_v62 = vadd.f32 %v5014_v39, %v4918_v19  ;;  %v4824_v17 = vpop.f32.mrf.mxu1  ;;  %v4671_v19 = vadd.f32 %v4670_v25, %v10188_v23 }
 0x505   :  { %v4825_v44 = vadd.f32 %v4824_v17, %v4696_v45 }
 0x50b   :  { %v4925_v9 = vpop.f32.mrf.mxu2  ;;  %v5018_v57 = vpop.f32.mrf.mxu3 }
 0x50c   :  { %v4926_v32 = vadd.f32 %v4925_v9, %v4783_v26  ;;  %v10238_v15 = vadd.f32 %v5018_v57, %v4922_v5  ;;  %v4795_v9 = vadd.f32 %v4794_v40, %v4671_v19 }
 0x513   :  { %v4929_v34 = vpop.f32.mrf.mxu2  ;;  %v5022_v50 = vpop.f32.mrf.mxu3 }
 0x514   :  { %v4930_v53 = vadd.f32 %v4929_v34, %v4789_v46  ;;  %v10240_v6 = vadd.f32 %v5022_v50, %v4926_v32  ;;  %v4813_v46 = vadd.f32 %v4812_v60, %v4686_v41 }
 0x51b   :  { %v4933_v47 = vpop.f32.mrf.mxu2  ;;  %v5026_v56 = vpop.f32.mrf.mxu3 }
 0x51c   :  { %v10242_v55 = vadd.f32 %v5026_v56, %v4930_v53  ;;  %v4934_v30 = vadd.f32 %v4933_v47, %v4795_v9 }
 0x523   :  { %v4937_v59 = vpop.f32.mrf.mxu2  ;;  %v5030_v8 = vpop.f32.mrf.mxu3 }
 0x524   :  { %v4938_v61 = vadd.f32 %v4937_v59, %v4801_v1  ;;  %v5031_v50 = vadd.f32 %v5030_v8, %v4934_v30 }
 0x52b   :  { %v4941_v18 = vpop.f32.mrf.mxu2  ;;  %v5034_v54 = vpop.f32.mrf.mxu3 }
 0x52c   :  { %v4942_v37 = vadd.f32 %v4941_v18, %v4807_v13  ;;  %v5035_v57 = vadd.f32 %v5034_v54, %v4938_v61 }
 0x533   :  { %v4945_v52 = vpop.f32.mrf.mxu2  ;;  %v5038_v36 = vpop.f32.mrf.mxu3 }
 0x534   :  { %v4946_v12 = vadd.f32 %v4945_v52, %v4813_v46  ;;  %v5039_v11 = vadd.f32 %v5038_v36, %v4942_v37 }
 0x53b   :  { %v5042_v26 = vpop.f32.mrf.mxu3  ;;  %v4949_v38 = vpop.f32.mrf.mxu2 }
 0x53c   :  { %v4950_v24 = vadd.f32 %v4949_v38, %v4819_v58  ;;  %v5043_v22 = vadd.f32 %v5042_v26, %v4946_v12 }
 0x543   :  { %v5046_v48 = vpop.f32.mrf.mxu3  ;;  %v4953_v10 = vpop.f32.mrf.mxu2 }
 0x544   :  { %v5047_v33 = vadd.f32 %v5046_v48, %v4950_v24  ;;  %v4954_v42 = vadd.f32 %v4953_v10, %v4825_v44 }
 0x546   :  { %5522 = vtanh.f32 %v5047_v33 }
 0x547   :  { %5524 = vtanh.f32 %v5043_v22 }
 0x548   :  { %5526 = vtanh.f32 %v5039_v11 }
 0x54b   :  { %v5050_v39 = vpop.f32.mrf.mxu3 }
 0x54c   :  { %v5523_v5 = vpop.eup %5522  ;;  %v5051_v32 = vadd.f32 %v5050_v39, %v4954_v42 }
 0x54d   :  { %v5123_v20 = vsel %vm5076_vm0, %v5523_v5, 0  ;;  %v5525_v34 = vpop.eup %5524 }
 0x54e   :  { %5528 = vtanh.f32 %v5051_v32  ;;  %v10251_v53 = vand.u32 4294901760, %v5123_v20  ;;  %v5527_v23 = vpop.eup %5526  ;;  %v5120_v25 = vsel %vm5076_vm0, %v5525_v34, 0 }
 0x54f   :  { %5530 = vtanh.f32 %v5035_v57  ;;  %v10260_v59 = vand.u32 4294901760, %v5120_v25  ;;  %v5117_v8 = vsel %vm5076_vm0, %v5527_v23, 0 }
 0x550   :  { %5532 = vtanh.f32 %v5031_v50  ;;  %v10258_v47 = vsub.f32 %v5123_v20, %v10251_v53  ;;  %v10275_v60 = vand.u32 4294901760, %v5117_v8 }
 0x551   :  { %5534 = vtanh.f32 %v10242_v55  ;;  %v10273_v49 = vsub.f32 %v5120_v25, %v10260_v59 }
 0x552   :  { %v5177_v55 = vand.u32 4294901760, %v10258_v47  ;;  %5536 = vtanh.f32 %v10240_v6  ;;  %v10292_v38 = vsub.f32 %v5117_v8, %v10275_v60 }
 0x553   :  { %v5183_v28 = vand.u32 4294901760, %v10273_v49  ;;  %5538 = vtanh.f32 %v10238_v15 }
 0x554   :  { %v5529_v27 = vpop.eup %5528  ;;  %v5178_v6 = vsub.f32 %v10258_v47, %v5177_v55  ;;  %v5189_v15 = vand.u32 4294901760, %v10292_v38  ;;  %5540 = vtanh.f32 %v10236_v62 }
 0x555   :  { %v5126_v40 = vsel %vm5076_vm0, %v5529_v27, 0  ;;  %v5531_v56 = vpop.eup %5530  ;;  %v5184_v51 = vsub.f32 %v10273_v49, %v5183_v28  ;;  %5542 = vtanh.f32 %v10234_v3 }
 0x556   :  { %v10255_v63 = vand.u32 4294901760, %v5126_v40  ;;  %v5114_v16 = vsel %vm5076_vm0, %v5531_v56, 0  ;;  %v5533_v18 = vpop.eup %5532  ;;  %v5179_v24 = vand.u32 4294901760, %v5178_v6  ;;  %v5190_v17 = vsub.f32 %v10292_v38, %v5189_v15 }
 0x557   :  { %v5111_v36 = vsel %vm5076_vm0, %v5533_v18, 0  ;;  %v10285_v35 = vand.u32 4294901760, %v5114_v16  ;;  %v5535_v0 = vpop.eup %5534  ;;  %v5185_v13 = vand.u32 4294901760, %v5184_v51  ;;  %5544 = vtanh.f32 %v10232_v4 }
 0x558   :  { %5129 = vmatpush.xpose.msrb.mxu0 %v10255_v63  ;;  %5325 = vmatpush.xpose.msra.mxu3 %v10255_v63  ;;  %v10267_v31 = vsub.f32 %v5126_v40, %v10255_v63  ;;  %v5108_v41 = vsel %vm5076_vm0, %v5535_v0, 0  ;;  %v10299_v58 = vand.u32 4294901760, %v5111_v36  ;;  %v5537_v46 = vpop.eup %5536  ;;  %v5191_v10 = vand.u32 4294901760, %v5190_v17 }
 0x559   :  { %v10306_v7 = vsub.f32 %v5114_v16, %v10285_v35  ;;  %v5105_v48 = vsel %vm5076_vm0, %v5537_v46, 0  ;;  %v10313_v12 = vand.u32 4294901760, %v5108_v41  ;;  %v5539_v33 = vpop.eup %5538  ;;  %5546 = vtanh.f32 %v10230_v21 }
 0x55a   :  { %5272 = vmatpush.xpose.msra.mxu2 %v10267_v31  ;;  %v5171_v54 = vand.u32 4294901760, %v10267_v31  ;;  %v10320_v43 = vsub.f32 %v5111_v36, %v10299_v58  ;;  %v5102_v45 = vsel %vm5076_vm0, %v5539_v33, 0  ;;  %v10327_v22 = vand.u32 4294901760, %v5105_v48  ;;  %v5541_v37 = vpop.eup %5540 }
 0x55b   :  { %v5195_v62 = vand.u32 4294901760, %v10306_v7  ;;  %v10334_v44 = vsub.f32 %v5108_v41, %v10313_v12  ;;  %v5099_v11 = vsel %vm5076_vm0, %v5541_v37, 0  ;;  %v10341_v19 = vand.u32 4294901760, %v5102_v45  ;;  %v5543_v61 = vpop.eup %5542 }
 0x55c   :  { %5131 = vmatpush.xpose.msrb.mxu0 %v10251_v53  ;;  %5327 = vmatpush.xpose.msra.mxu3 %v10251_v53  ;;  %v5172_v52 = vsub.f32 %v10267_v31, %v5171_v54  ;;  %v5201_v3 = vand.u32 4294901760, %v10320_v43  ;;  %v10348_v5 = vsub.f32 %v5105_v48, %v10327_v22  ;;  %v5096_v9 = vsel %vm5076_vm0, %v5543_v61, 0 }
 0x55d   :  { %v5196_v1 = vsub.f32 %v10306_v7, %v5195_v62  ;;  %v5207_v4 = vand.u32 4294901760, %v10334_v44  ;;  %v10355_v57 = vand.u32 4294901760, %v5099_v11  ;;  %v5545_v32 = vpop.eup %5544  ;;  %v10362_v34 = vsub.f32 %v5102_v45, %v10341_v19 }
 0x55e   :  { %5275 = vmatpush.xpose.msra.mxu2 %v10258_v47  ;;  %v5173_v26 = vand.u32 4294901760, %v5172_v52  ;;  %v5202_v39 = vsub.f32 %v10320_v43, %v5201_v3  ;;  %v5213_v21 = vand.u32 4294901760, %v10348_v5  ;;  %5548 = vtanh.f32 %v10228_v2  ;;  %v5069_v47 = vld [vmem:[%s10516_s3] sm:$0x3] }
 0x55f   :  { %v5197_v42 = vand.u32 4294901760, %v5196_v1  ;;  %v5208_v20 = vsub.f32 %v10334_v44, %v5207_v4  ;;  %v5093_v50 = vsel %vm5076_vm0, %v5545_v32, 0  ;;  %v10369_v23 = vand.u32 4294901760, %v5096_v9  ;;  %v5547_v25 = vpop.eup %5546 }
 0x560   :  { %5133 = vmatpush.xpose.msrb.mxu0 %v10260_v59  ;;  %5174 = vmatpush.xpose.msrb.mxu1 %v5173_v26  ;;  %v5203_v30 = vand.u32 4294901760, %v5202_v39  ;;  %v5214_v40 = vsub.f32 %v10348_v5, %v5213_v21  ;;  %v10376_v56 = vsub.f32 %v5099_v11, %v10355_v57  ;;  %v5219_v2 = vand.u32 4294901760, %v10362_v34 }
 0x561   :  { %5329 = vmatpush.xpose.msra.mxu3 %v10260_v59  ;;  %v5209_v27 = vand.u32 4294901760, %v5208_v20  ;;  %5550 = vtanh.f32 %v10225_v29  ;;  %v5090_v8 = vsel %vm5076_vm0, %v5547_v25, 0  ;;  %v10383_v16 = vand.u32 4294901760, %v5093_v50 }
 0x562   :  { %5278 = vmatpush.xpose.msra.mxu2 %v10273_v49  ;;  %v5215_v52 = vand.u32 4294901760, %v5214_v40  ;;  %v5220_v36 = vsub.f32 %v10362_v34, %v5219_v2  ;;  %v10390_v0 = vsub.f32 %v5096_v9, %v10369_v23  ;;  %v5225_v29 = vand.u32 4294901760, %v10376_v56 }
 0x563   :  { %5552 = vtanh.f32 %v10222_v14  ;;  %v10397_v6 = vand.u32 4294901760, %v5090_v8  ;;  %v10404_v51 = vsub.f32 %v5093_v50, %v10383_v16  ;;  %v5078_v31 = vsel %vm5076_vm0, %v5069_v47, 0 }
 0x564   :  { %5135 = vmatpush.xpose.msrb.mxu0 %v10275_v60  ;;  %5180 = vmatpush.xpose.msrb.mxu1 %v5179_v24  ;;  %v5549_v18 = vpop.eup %5548  ;;  %v5221_v46 = vand.u32 4294901760, %v5220_v36  ;;  %v5226_v24 = vsub.f32 %v10376_v56, %v5225_v29  ;;  %v5231_v14 = vand.u32 4294901760, %v10390_v0 }
 0x565   :  { %5331 = vmatpush.xpose.msra.mxu3 %v10275_v60  ;;  %v5087_v26 = vsel %vm5076_vm0, %v5549_v18, 0  ;;  %v10417_v37 = vsub.f32 %v5090_v8, %v10397_v6 }
 0x566   :  { %5281 = vmatpush.xpose.msra.mxu2 %v10292_v38  ;;  %v10410_v33 = vand.u32 4294901760, %v5087_v26  ;;  %v5227_v17 = vand.u32 4294901760, %v5226_v24  ;;  %v5232_v45 = vsub.f32 %v10390_v0, %v5231_v14 }
 0x567   :  { %v5551_v41 = vpop.eup %5550  ;;  %v5243_v9 = vand.u32 4294901760, %v10417_v37 }
 0x568   :  { %5137 = vmatpush.xpose.msrb.mxu0 %v10285_v35  ;;  %5186 = vmatpush.xpose.msrb.mxu1 %v5185_v13  ;;  %v5084_v48 = vsel %vm5076_vm0, %v5551_v41, 0  ;;  %v5233_v61 = vand.u32 4294901760, %v5232_v45  ;;  %v10430_v39 = vsub.f32 %v5087_v26, %v10410_v33 }
 0x569   :  { %5333 = vmatpush.xpose.msra.mxu3 %v10285_v35  ;;  %v5553_v13 = vpop.eup %5552  ;;  %v10423_v11 = vand.u32 4294901760, %v5084_v48  ;;  %v5244_v20 = vsub.f32 %v10417_v37, %v5243_v9 }
 0x56a   :  { %5284 = vmatpush.xpose.msra.mxu2 %v10306_v7  ;;  %v5081_v1 = vsel %vm5076_vm0, %v5553_v13, 0  ;;  %v5249_v25 = vand.u32 4294901760, %v10430_v39 }
 0x56b   :  { %v10435_v32 = vand.u32 4294901760, %v5081_v1  ;;  %v10442_v50 = vsub.f32 %v5084_v48, %v10423_v11 }
 0x56c   :  { %5139 = vmatpush.xpose.msrb.mxu0 %v10299_v58  ;;  %5192 = vmatpush.xpose.msrb.mxu1 %v5191_v10  ;;  %v5237_v10 = vand.u32 4294901760, %v10404_v51  ;;  %v5250_v40 = vsub.f32 %v10430_v39, %v5249_v25 }
 0x56d   :  { %5335 = vmatpush.xpose.msra.mxu3 %v10299_v58  ;;  %v5260_v8 = vsub.f32 %v5081_v1, %v10435_v32  ;;  %v5255_v18 = vand.u32 4294901760, %v10442_v50 }
 0x56e   :  { %5287 = vmatpush.xpose.msra.mxu2 %v10320_v43 }
 0x56f   :  { %v5256_v36 = vsub.f32 %v10442_v50, %v5255_v18  ;;  %v5261_v26 = vand.u32 4294901760, %v5260_v8 }
 0x570   :  { %5141 = vmatpush.xpose.msrb.mxu0 %v10313_v12  ;;  %5198 = vmatpush.xpose.msrb.mxu1 %v5197_v42  ;;  %v5238_v42 = vsub.f32 %v10404_v51, %v5237_v10 }
 0x571   :  { %5337 = vmatpush.xpose.msra.mxu3 %v10313_v12  ;;  %v5257_v41 = vand.u32 4294901760, %v5256_v36 }
 0x572   :  { %5290 = vmatpush.xpose.msra.mxu2 %v10334_v44 }
 0x574   :  { %5143 = vmatpush.xpose.msrb.mxu0 %v10327_v22  ;;  %5204 = vmatpush.xpose.msrb.mxu1 %v5203_v30  ;;  %v5239_v30 = vand.u32 4294901760, %v5238_v42 }
 0x575   :  { %5339 = vmatpush.xpose.msra.mxu3 %v10327_v22 }
 0x576   :  { %5293 = vmatpush.xpose.msra.mxu2 %v10348_v5 }
 0x578   :  { %5145 = vmatpush.xpose.msrb.mxu0 %v10341_v19  ;;  %5210 = vmatpush.xpose.msrb.mxu1 %v5209_v27  ;;  %v5245_v27 = vand.u32 4294901760, %v5244_v20 }
 0x579   :  { %5341 = vmatpush.xpose.msra.mxu3 %v10341_v19 }
 0x57a   :  { %5296 = vmatpush.xpose.msra.mxu2 %v10362_v34 }
 0x57c   :  { %5147 = vmatpush.xpose.msrb.mxu0 %v10355_v57  ;;  %5216 = vmatpush.xpose.msrb.mxu1 %v5215_v52  ;;  %v5251_v52 = vand.u32 4294901760, %v5250_v40 }
 0x57d   :  { %5343 = vmatpush.xpose.msra.mxu3 %v10355_v57 }
 0x57e   :  { %5299 = vmatpush.xpose.msra.mxu2 %v10376_v56 }
 0x580   :  { %5149 = vmatpush.xpose.msrb.mxu0 %v10369_v23  ;;  %5222 = vmatpush.xpose.msrb.mxu1 %v5221_v46  ;;  %v5262_v46 = vsub.f32 %v5260_v8, %v5261_v26 }
 0x581   :  { %5345 = vmatpush.xpose.msra.mxu3 %v10369_v23 }
 0x582   :  { %5302 = vmatpush.xpose.msra.mxu2 %v10390_v0  ;;  %v5263_v24 = vand.u32 4294901760, %v5262_v46 }
 0x584   :  { %5151 = vmatpush.xpose.msrb.mxu0 %v10383_v16  ;;  %5228 = vmatpush.xpose.msrb.mxu1 %v5227_v17 }
 0x585   :  { %5347 = vmatpush.xpose.msra.mxu3 %v10383_v16 }
 0x586   :  { %5305 = vmatpush.xpose.msra.mxu2 %v10404_v51 }
 0x588   :  { %5153 = vmatpush.xpose.msrb.mxu0 %v10397_v6  ;;  %5234 = vmatpush.xpose.msrb.mxu1 %v5233_v61 }
 0x589   :  { %5349 = vmatpush.xpose.msra.mxu3 %v10397_v6 }
 0x58a   :  { %5308 = vmatpush.xpose.msra.mxu2 %v10417_v37 }
 0x58c   :  { %5155 = vmatpush.xpose.msrb.mxu0 %v10410_v33  ;;  %5240 = vmatpush.xpose.msrb.mxu1 %v5239_v30 }
 0x58d   :  { %5351 = vmatpush.xpose.msra.mxu3 %v10410_v33 }
 0x58e   :  { %5311 = vmatpush.xpose.msra.mxu2 %v10430_v39 }
 0x590   :  { %5157 = vmatpush.xpose.msrb.mxu0 %v10423_v11  ;;  %5246 = vmatpush.xpose.msrb.mxu1 %v5245_v27 }
 0x591   :  { %5353 = vmatpush.xpose.msra.mxu3 %v10423_v11 }
 0x592   :  { %5314 = vmatpush.xpose.msra.mxu2 %v10442_v50 }
 0x594   :  { %5159 = vmatpush.xpose.msrb.mxu0 %v10435_v32  ;;  %5252 = vmatpush.xpose.msrb.mxu1 %v5251_v52 }
 0x595   :  { %5355 = vmatpush.xpose.msra.mxu3 %v10435_v32 }
 0x596   :  { %5317 = vmatpush.xpose.msra.mxu2 %v5260_v8 }
 0x598   :  { %5366 = vmatpush.xpose.msra.mxu0 %v5171_v54  ;;  %5258 = vmatpush.xpose.msrb.mxu1 %v5257_v41 }
 0x59c   :  { %5370 = vmatpush.xpose.msra.mxu0 %v5177_v55  ;;  %5264 = vmatpush.xpose.msrb.mxu1 %v5263_v24  ;;  %v5070_v55 = vld [vmem:[%s10517_s4] sm:$0x3]  ;;  %s5581_s4 = smov [#allocation2]  }
 0x59d   :  { %s5475_s17 = sshll.u32 %s5581_s4, 4  ;;  %s5476_s17 = int_to_ptr.vmem [resolvable:$true] %s5475_s17 }
 0x5a0   :  { %5374 = vmatpush.xpose.msra.mxu0 %v5183_v28  ;;  %5433 = vmatpush.xpose.msra.mxu1 %v10255_v63  ;;  %v5160_v63 = vand.u32 4294901760, %v5078_v31 }
 0x5a2   :  { %v5161_v54 = vsub.f32 %v5078_v31, %v5160_v63  ;;  %5266 = vmatmul.f32.vlgmr.msrb.gmra.mxu1 %v5160_v63 }
 0x5a4   :  { %5378 = vmatpush.xpose.msra.mxu0 %v5189_v15  ;;  %5435 = vmatpush.xpose.msra.mxu1 %v10251_v53  ;;  %v5162_v53 = vand.u32 4294901760, %v5161_v54 }
 0x5a5   :  { %5320 = vmatmul.f32.vlgmr.msra.gmra.mxu2 %v5161_v54 }
 0x5a6   :  { %5359 = vmatmul.f32.vlgmr.msra.gmra.mxu3 %v5162_v53 }
 0x5a8   :  { %5382 = vmatpush.xpose.msra.mxu0 %v5195_v62  ;;  %5437 = vmatpush.xpose.msra.mxu1 %v10260_v59  ;;  %v5163_v59 = vsub.f32 %v5161_v54, %v5162_v53 }
 0x5aa   :  { %v5164_v49 = vand.u32 4294901760, %v5163_v59 }
 0x5ac   :  { %5386 = vmatpush.xpose.msra.mxu0 %v5201_v3  ;;  %5439 = vmatpush.xpose.msra.mxu1 %v10275_v60  ;;  %v5580_v60 = vmov 0  }
 0x5ad   :  { %5165 = vmatmul.f32.vlgmr.msrb.gmra.mxu0 %v5164_v49  ;;  %5520 = vset.pattern.permute.xlu0 %v5580_v60 }
 0x5ae   :  { %5073 = vperm.xlu0 %5520, %v5070_v55  }
 0x5b0   :  { %5390 = vmatpush.xpose.msra.mxu0 %v5207_v4  ;;  %5441 = vmatpush.xpose.msra.mxu1 %v10285_v35 }
 0x5b4   :  { %5394 = vmatpush.xpose.msra.mxu0 %v5213_v21  ;;  %5443 = vmatpush.xpose.msra.mxu1 %v10299_v58 }
 0x5b8   :  { %5398 = vmatpush.xpose.msra.mxu0 %v5219_v2  ;;  %5445 = vmatpush.xpose.msra.mxu1 %v10313_v12 }
 0x5bc   :  { %5402 = vmatpush.xpose.msra.mxu0 %v5225_v29  ;;  %5447 = vmatpush.xpose.msra.mxu1 %v10327_v22 }
 0x5c0   :  { %5406 = vmatpush.xpose.msra.mxu0 %v5231_v14  ;;  %5449 = vmatpush.xpose.msra.mxu1 %v10341_v19 }
 0x5c4   :  { %5410 = vmatpush.xpose.msra.mxu0 %v5237_v10  ;;  %5451 = vmatpush.xpose.msra.mxu1 %v10355_v57 }
 0x5c8   :  { %5414 = vmatpush.xpose.msra.mxu0 %v5243_v9  ;;  %5453 = vmatpush.xpose.msra.mxu1 %v10369_v23 }
 0x5cc   :  { %5418 = vmatpush.xpose.msra.mxu0 %v5249_v25  ;;  %5455 = vmatpush.xpose.msra.mxu1 %v10383_v16 }
 0x5d0   :  { %5422 = vmatpush.xpose.msra.mxu0 %v5255_v18  ;;  %5457 = vmatpush.xpose.msra.mxu1 %v10397_v6 }
 0x5d4   :  { %5426 = vmatpush.xpose.msra.mxu0 %v5261_v26  ;;  %5459 = vmatpush.xpose.msra.mxu1 %v10410_v33 }
 0x5d7   :  { %5428 = vmatmul.f32.vlgmr.msra.gmra.mxu0 %v5160_v63 }
 0x5d8   :  { %5461 = vmatpush.xpose.msra.mxu1 %v10423_v11 }
 0x5dc   :  { %5463 = vmatpush.xpose.msra.mxu1 %v10435_v32 }
 0x5df   :  { %5465 = vmatmul.f32.vlgmr.msra.gmra.mxu1 %v5160_v63 }
 0x61f   :  { %v5267_v58 = vpop.f32.mrf.mxu1 }
 0x620   :  { %v5074_v35 = vpop.permute.xlu0 %5073 }
 0x628   :  { %v5321_v15 = vpop.f32.mrf.mxu2 }
 0x629   :  { %v5360_v43 = vpop.f32.mrf.mxu3 }
 0x62a   :  { %v5166_v38 = vpop.f32.mrf.mxu0 }
 0x62b   :  { %v5167_v28 = vadd.f32 %v5166_v38, %v5074_v35 }
 0x62d   :  { %v5268_v7 = vadd.f32 %v5267_v58, %v5167_v28 }
 0x62f   :  { %v5322_v12 = vadd.f32 %v5321_v15, %v5268_v7 }
 0x631   :  { %v5361_v62 = vadd.f32 %v5360_v43, %v5322_v12 }
 0x654   :  { %v5429_v22 = vpop.f32.mrf.mxu0 }
 0x655   :  { %v5430_v44 = vadd.f32 %v5429_v22, %v5361_v62 }
 0x65c   :  { %v5466_v3 = vpop.f32.mrf.mxu1 }
 0x65d   :  { %v5467_v19 = vadd.f32 %v5466_v3, %v5430_v44 }
 0x65f   :  { %5469 = vst [vmem:[#allocation2] sm:$0x3] %v5467_v19 }
 0x660   :  { %5480 = dma.vmem_to_hbm [thread:$0]  %s5476_s17, 32, %s5478_s20, [#allocation3]  }
 0x661   :  { %5578 = dma.done.wait [#allocation3], 32  }
 0x662   :  { %5579 = vsyncadd [#allocation3], 4294967264 }
 0x663   :  { %5485 = vsyncpa [#allocation3], 1 }

</bundles_post_ra>
